<compile_context>
chip_gen: v7x
topology: tpu7x:2x2x1
jax: 0.10.0
libtpu: 0.0.40
codegen_flags: <defaults>
</compile_context>

<pallas_src>
import functools

import jax
import jax.numpy as jnp
from jax import lax
from jax.experimental import pallas as pl
from jax.experimental.pallas import tpu as pltpu

NUM_SPLITS = 2          # number of "worker nodes" each Conv2d is split across
BN_EPS = 1e-5
EXPANSION = 4           # Bottleneck.expansion (ResNet-50 style blocks)


# ----------------------------- Pallas kernels ------------------------------

def _conv_bn_kernel(a_ref, b_ref, scale_ref, shift_ref, o_ref, acc_ref, *,
                    relu):
    """Tiled matmul with fused BN affine (+ optional ReLU) epilogue."""
    @pl.when(pl.program_id(2) == 0)
    def _():
        acc_ref[...] = jnp.zeros_like(acc_ref)

    acc_ref[...] += jnp.dot(a_ref[...], b_ref[...],
                            preferred_element_type=jnp.float32)

    @pl.when(pl.program_id(2) == pl.num_programs(2) - 1)
    def _():
        y = acc_ref[...] * scale_ref[...] + shift_ref[...]
        if relu:
            y = jnp.maximum(y, 0.0)
        o_ref[...] = y


def _conv_bn_add_relu_kernel(a_ref, b_ref, scale_ref, shift_ref, res_ref,
                             o_ref, acc_ref):
    """Tiled matmul with fused BN affine + residual add + ReLU epilogue."""
    @pl.when(pl.program_id(2) == 0)
    def _():
        acc_ref[...] = jnp.zeros_like(acc_ref)

    acc_ref[...] += jnp.dot(a_ref[...], b_ref[...],
                            preferred_element_type=jnp.float32)

    @pl.when(pl.program_id(2) == pl.num_programs(2) - 1)
    def _():
        y = acc_ref[...] * scale_ref[...] + shift_ref[...] + res_ref[...]
        o_ref[...] = jnp.maximum(y, 0.0)


# --------------------------- kernel wrappers --------------------------------

def _round_up(x, m):
    return (x + m - 1) // m * m


def fused_conv_matmul(patches, w2d, scale, shift, residual=None, relu=True):
    """patches: [M, K] bf16, w2d: [K, N] -> [M, N] f32, with BN(+ReLU)
    (and optional residual add + ReLU) fused into the matmul epilogue."""
    M, K = patches.shape
    K2, N = w2d.shape
    assert K == K2

    # Lane-dense tiling: N, K padded to multiples of 128; 256-wide N tiles when
    # possible (fills v6e/v7x 256-wide MXU; harmless on v5e).
    Np = _round_up(N, 128)
    tn = 256 if Np % 256 == 0 else 128
    Kp = _round_up(K, 128)
    if Kp <= 1024:
        tk = Kp                          # single K block -> no K loop
    elif Kp % 256 == 0:
        tk = 256
    else:
        tk = 128
    tm = min(_round_up(M, 128), 512)
    Mp = _round_up(M, tm)

    a_p = jnp.pad(patches.astype(jnp.bfloat16), ((0, Mp - M), (0, Kp - K)))
    b_p = jnp.pad(w2d.astype(jnp.bfloat16), ((0, Kp - K), (0, Np - N)))
    scale_p = jnp.pad(scale.astype(jnp.float32), (0, Np - N)).reshape(1, Np)
    shift_p = jnp.pad(shift.astype(jnp.float32), (0, Np - N)).reshape(1, Np)

    grid = (Mp // tm, Np // tn, Kp // tk)
    in_specs = [
        pl.BlockSpec((tm, tk), lambda i, j, k: (i, k)),
        pl.BlockSpec((tk, tn), lambda i, j, k: (k, j)),
        pl.BlockSpec((1, tn), lambda i, j, k: (0, j)),
        pl.BlockSpec((1, tn), lambda i, j, k: (0, j)),
    ]
    inputs = [a_p, b_p, scale_p, shift_p]

    if residual is not None:
        res_p = jnp.pad(residual.astype(jnp.float32),
                        ((0, Mp - M), (0, Np - N)))
        in_specs.append(pl.BlockSpec((tm, tn), lambda i, j, k: (i, j)))
        inputs.append(res_p)
        kernel = _conv_bn_add_relu_kernel
    else:
        kernel = functools.partial(_conv_bn_kernel, relu=relu)

    out = pl.pallas_call(
        kernel,
        out_shape=jax.ShapeDtypeStruct((Mp, Np), jnp.float32),
        grid_spec=pltpu.PrefetchScalarGridSpec(
            num_scalar_prefetch=0,
            grid=grid,
            in_specs=in_specs,
            out_specs=pl.BlockSpec((tm, tn), lambda i, j, k: (i, j)),
            scratch_shapes=[pltpu.VMEM((tm, tn), jnp.float32)]),
        compiler_params=pltpu.CompilerParams(
            dimension_semantics=("parallel", "parallel", "arbitrary")),
    )(*inputs)
    return out[:M, :N]


# --------------------- DistributedConv2d / SplitConv2d ----------------------

def distribute_channels(total_channels, num_splits):
    """Channel split sizes per worker (kept for the DistributedConv2d
    semantics; concat of per-split partial convs over Cout == full conv, so the
    splits are collapsed into a single fused kernel)."""
    base = total_channels // num_splits
    rem = total_channels % num_splits
    parts = [base] * num_splits
    for i in range(rem):
        parts[i] += 1
    return parts


def im2col(x_nhwc, kh, kw, stride, pad):
    """Extract conv patches (bf16).  1x1/stride-1 convs are a pure reshape."""
    x_nhwc = x_nhwc.astype(jnp.bfloat16)
    B, H, W, C = x_nhwc.shape
    if kh == 1 and kw == 1 and pad == 0:
        xs = x_nhwc[:, ::stride, ::stride, :]
        oh, ow = xs.shape[1], xs.shape[2]
        return xs.reshape(B * oh * ow, C), oh, ow
    xp = jnp.pad(x_nhwc, ((0, 0), (pad, pad), (pad, pad), (0, 0)))
    Hp, Wp = H + 2 * pad, W + 2 * pad
    oh = (Hp - kh) // stride + 1
    ow = (Wp - kw) // stride + 1
    cols = []
    for i in range(kh):
        for j in range(kw):
            cols.append(xp[:, i:i + stride * oh:stride,
                           j:j + stride * ow:stride, :])
    patches = jnp.stack(cols, axis=3)            # [B, oh, ow, kh*kw, C]
    return patches.reshape(B * oh * ow, kh * kw * C), oh, ow


def distributed_conv_bn(x_nhwc, w_hwio, bn, *, stride, pad, relu,
                        residual=None):
    """DistributedConv2d (+ following BatchNorm / ReLU / residual-add fused).

    The output-channel splits of DistributedConv2d/SplitConv2d + torch.cat are
    mathematically the full convolution, so all NUM_SPLITS partial convs are
    executed as one fused Pallas matmul over the full Cout."""
    B = x_nhwc.shape[0]
    kh, kw, cin, cout = w_hwio.shape
    parts = distribute_channels(cout, NUM_SPLITS)   # split bookkeeping only
    assert sum(parts) == cout

    patches, oh, ow = im2col(x_nhwc, kh, kw, stride, pad)
    w2d = w_hwio.reshape(kh * kw * cin, cout)
    scale = bn['gamma'] / jnp.sqrt(bn['var'] + BN_EPS)
    shift = bn['beta'] - bn['mean'] * scale

    res2d = None
    if residual is not None:
        res2d = residual.reshape(B * oh * ow, cout)

    y2d = fused_conv_matmul(patches, w2d, scale, shift,
                            residual=res2d, relu=relu)
    return y2d.reshape(B, oh, ow, cout)


# --------------------------- parameter creation -----------------------------

class KeyGen:
    def __init__(self, seed):
        self._key = jax.random.PRNGKey(seed)

    def __call__(self):
        self._key, sub = jax.random.split(self._key)
        return sub


def init_conv(kg, kh, kw, cin, cout):
    fan_in = kh * kw * cin
    w = jax.random.normal(kg(), (kh, kw, cin, cout), jnp.float32)
    return w * jnp.sqrt(2.0 / fan_in)


def init_bn(kg, c):
    return dict(
        gamma=jax.random.uniform(kg(), (c,), jnp.float32, 0.5, 1.5),
        beta=0.1 * jax.random.normal(kg(), (c,), jnp.float32),
        mean=0.1 * jax.random.normal(kg(), (c,), jnp.float32),
        var=jax.random.uniform(kg(), (c,), jnp.float32, 0.5, 1.5),
    )


def init_bottleneck(kg, inplanes, planes, stride):
    p = dict(stride=stride)
    p['conv1'] = init_conv(kg, 1, 1, inplanes, planes)
    p['bn1'] = init_bn(kg, planes)
    p['conv2'] = init_conv(kg, 3, 3, planes, planes)
    p['bn2'] = init_bn(kg, planes)
    p['conv3'] = init_conv(kg, 1, 1, planes, planes * EXPANSION)
    p['bn3'] = init_bn(kg, planes * EXPANSION)
    if stride != 1 or inplanes != planes * EXPANSION:
        p['down_conv'] = init_conv(kg, 1, 1, inplanes, planes * EXPANSION)
        p['down_bn'] = init_bn(kg, planes * EXPANSION)
    return p


def init_resnet(kg, inplanes=16, planes_per_stage=(8, 16, 32, 64),
                blocks_per_stage=(1, 1, 1, 1), num_classes=10):
    # ResNet-50 *structure* (Bottleneck blocks, stem, downsample shortcuts),
    # with reduced widths / depth so the synthetic test stays small.
    params = dict()
    params['conv1'] = init_conv(kg, 7, 7, 3, inplanes)
    params['bn1'] = init_bn(kg, inplanes)
    cur = inplanes
    for s, (planes, nblocks) in enumerate(zip(planes_per_stage,
                                              blocks_per_stage)):
        stride = 1 if s == 0 else 2
        blocks = []
        for b in range(nblocks):
            blocks.append(init_bottleneck(kg, cur, planes,
                                          stride if b == 0 else 1))
            cur = planes * EXPANSION
        params['layer{}'.format(s + 1)] = blocks
    params['fc_w'] = (jax.random.normal(kg(), (cur, num_classes), jnp.float32)
                      * jnp.sqrt(1.0 / cur))
    params['fc_b'] = 0.01 * jax.random.normal(kg(), (num_classes,), jnp.float32)
    return params


# ------------------------------ forward pass --------------------------------

def bottleneck_forward(x, p):
    if 'down_conv' in p:
        identity = distributed_conv_bn(x, p['down_conv'], p['down_bn'],
                                       stride=p['stride'], pad=0, relu=False)
    else:
        identity = x
    out = distributed_conv_bn(x, p['conv1'], p['bn1'],
                              stride=1, pad=0, relu=True)
    out = distributed_conv_bn(out, p['conv2'], p['bn2'],
                              stride=p['stride'], pad=1, relu=True)
    # conv3 + BN + residual add + ReLU, all fused in the matmul epilogue.
    out = distributed_conv_bn(out, p['conv3'], p['bn3'],
                              stride=1, pad=0, relu=False, residual=identity)
    return out


def resnet_forward(params, x_nchw):
    x = jnp.transpose(x_nchw.astype(jnp.float32), (0, 2, 3, 1))  # NCHW -> NHWC
    # stem: (split) conv 7x7/2 + BN + ReLU (fused) + maxpool 3x3/2
    x = distributed_conv_bn(x, params['conv1'], params['bn1'],
                            stride=2, pad=3, relu=True)
    # maxpool kept in JAX glue (window reduction)
    x = lax.reduce_window(x, -jnp.inf, lax.max,
                          window_dimensions=(1, 3, 3, 1),
                          window_strides=(1, 2, 2, 1),
                          padding=((0, 0), (1, 1), (1, 1), (0, 0)))
    for name in ('layer1', 'layer2', 'layer3', 'layer4'):
        for block in params[name]:
            x = bottleneck_forward(x, block)
    x = jnp.mean(x, axis=(1, 2))                 # AdaptiveAvgPool2d((1, 1))
    # Tiny (B, 256) x (256, 10) FC: plain JAX (MXU tile padding would be >98%
    # zero work + launch overhead).
    logits = jnp.dot(x, params['fc_w']) + params['fc_b']
    return logits


# ----------------------------------- main ------------------------------------

if __name__ == "__main__":
    kg = KeyGen(0)
    params = init_resnet(kg)

    x = jax.random.normal(jax.random.PRNGKey(0), (2, 3, 32, 32), jnp.float32)

    fwd = jax.jit(functools.partial(resnet_forward, params))
    out = jax.block_until_ready(fwd(x))

    assert out.shape == (2, 10), out.shape
    assert bool(jnp.all(jnp.isfinite(out)))
    print("KERNEL_OK")
</pallas_src>

<mosaic_0001>
module attributes {stable_mosaic.version = 11 : i64} {
  func.func @_conv_bn_kernel(%arg0: i32, %arg1: i32, %arg2: i32, %arg3: memref<512x256xbf16, #tpu.memory_space<vmem>>, %arg4: memref<256x128xbf16, #tpu.memory_space<vmem>>, %arg5: memref<1x128xf32, #tpu.memory_space<vmem>>, %arg6: memref<1x128xf32, #tpu.memory_space<vmem>>, %arg7: memref<512x128xf32, #tpu.memory_space<vmem>>, %arg8: memref<512x128xf32, #tpu.memory_space<vmem>>) attributes {dimension_semantics = [#tpu.dimension_semantics<parallel>, #tpu.dimension_semantics<parallel>, #tpu.dimension_semantics<arbitrary>], iteration_bounds = array<i64: 1, 1, 1>, scalar_prefetch = 0 : i64, scratch_operands = 1 : i64, tpu.core_type = #tpu.core_type<tc>, window_params = [{transform_indices = @transform_0, window_bounds = array<i64: 512, 256>}, {transform_indices = @transform_1, window_bounds = array<i64: 256, 128>}, {transform_indices = @transform_2, window_bounds = array<i64: 1, 128>}, {transform_indices = @transform_3, window_bounds = array<i64: 1, 128>}, {transform_indices = @transform_4, window_bounds = array<i64: 512, 128>}]} {
    %c0_i32 = arith.constant 0 : i32
    %0 = arith.cmpi eq, %arg2, %c0_i32 : i32
    %1 = arith.extui %0 : i1 to i32
    %c0_i32_0 = arith.constant 0 : i32
    %2 = arith.cmpi ne, %1, %c0_i32_0 : i32
    scf.if %2 {
      %cst_10 = arith.constant 0.000000e+00 : f32
      %12 = vector.broadcast %cst_10 : f32 to vector<512x128xf32>
      %c0_11 = arith.constant 0 : index
      %c0_12 = arith.constant 0 : index
      %13 = vector.load %arg8[%c0_11, %c0_12] : memref<512x128xf32, #tpu.memory_space<vmem>>, vector<512x128xf32>
      tpu.vector_store %arg8[%c0_11, %c0_12], %12 {strides = array<i32>} : memref<512x128xf32, #tpu.memory_space<vmem>>, vector<512x128xf32>,
    } else {
    }
    %c0 = arith.constant 0 : index
    %c0_1 = arith.constant 0 : index
    %3 = vector.load %arg8[%c0, %c0_1] : memref<512x128xf32, #tpu.memory_space<vmem>>, vector<512x128xf32>
    %c0_2 = arith.constant 0 : index
    %c0_3 = arith.constant 0 : index
    %4 = vector.load %arg3[%c0_2, %c0_3] : memref<512x256xbf16, #tpu.memory_space<vmem>>, vector<512x256xbf16>
    %c0_4 = arith.constant 0 : index
    %c0_5 = arith.constant 0 : index
    %5 = vector.load %arg4[%c0_4, %c0_5] : memref<256x128xbf16, #tpu.memory_space<vmem>>, vector<256x128xbf16>
    %cst = arith.constant dense<0.000000e+00> : vector<512x128xf32>
    %6 = tpu.matmul %4, %5, %cst {dimension_numbers = #tpu.dot_dimension_numbers<[1], [0], [0], [1], [0, 0, 1, 1], [], []>} : vector<512x256xbf16>, vector<256x128xbf16>, vector<512x128xf32> -> vector<512x128xf32>
    %7 = arith.addf %3, %6 : vector<512x128xf32>
    %c0_6 = arith.constant 0 : index
    %c0_7 = arith.constant 0 : index
    %8 = vector.load %arg8[%c0_6, %c0_7] : memref<512x128xf32, #tpu.memory_space<vmem>>, vector<512x128xf32>
    tpu.vector_store %arg8[%c0_6, %c0_7], %7 {strides = array<i32>} : memref<512x128xf32, #tpu.memory_space<vmem>>, vector<512x128xf32>,
    %c0_i32_8 = arith.constant 0 : i32
    %9 = arith.cmpi eq, %arg2, %c0_i32_8 : i32
    %10 = arith.extui %9 : i1 to i32
    %c0_i32_9 = arith.constant 0 : i32
    %11 = arith.cmpi ne, %10, %c0_i32_9 : i32
    scf.if %11 {
      %c0_10 = arith.constant 0 : index
      %c0_11 = arith.constant 0 : index
      %12 = vector.load %arg8[%c0_10, %c0_11] : memref<512x128xf32, #tpu.memory_space<vmem>>, vector<512x128xf32>
      %c0_12 = arith.constant 0 : index
      %c0_13 = arith.constant 0 : index
      %13 = vector.load %arg5[%c0_12, %c0_13] : memref<1x128xf32, #tpu.memory_space<vmem>>, vector<1x128xf32>
      %14 = vector.broadcast %13 : vector<1x128xf32> to vector<512x128xf32>
      %15 = arith.mulf %12, %14 : vector<512x128xf32>
      %c0_14 = arith.constant 0 : index
      %c0_15 = arith.constant 0 : index
      %16 = vector.load %arg6[%c0_14, %c0_15] : memref<1x128xf32, #tpu.memory_space<vmem>>, vector<1x128xf32>
      %17 = vector.broadcast %16 : vector<1x128xf32> to vector<512x128xf32>
      %18 = arith.addf %15, %17 : vector<512x128xf32>
      %cst_16 = arith.constant 0.000000e+00 : f32
      %19 = vector.broadcast %cst_16 : f32 to vector<512x128xf32>
      %20 = arith.maximumf %18, %19 : vector<512x128xf32>
      %c0_17 = arith.constant 0 : index
      %c0_18 = arith.constant 0 : index
      %21 = vector.load %arg7[%c0_17, %c0_18] : memref<512x128xf32, #tpu.memory_space<vmem>>, vector<512x128xf32>
      tpu.vector_store %arg7[%c0_17, %c0_18], %20 {strides = array<i32>} : memref<512x128xf32, #tpu.memory_space<vmem>>, vector<512x128xf32>,
    } else {
    }
    return
  }
  func.func @transform_0(%arg0: i32, %arg1: i32, %arg2: i32) -> (i32, i32) {
    %c0_i32 = arith.constant 0 : i32
    return %arg0, %arg2 : i32, i32
  }
  func.func @transform_1(%arg0: i32, %arg1: i32, %arg2: i32) -> (i32, i32) {
    %c0_i32 = arith.constant 0 : i32
    return %arg2, %arg1 : i32, i32
  }
  func.func @transform_2(%arg0: i32, %arg1: i32, %arg2: i32) -> (i32, i32) {
    %c0_i32 = arith.constant 0 : i32
    %c0_i32_0 = arith.constant 0 : i32
    return %c0_i32, %arg1 : i32, i32
  }
  func.func @transform_3(%arg0: i32, %arg1: i32, %arg2: i32) -> (i32, i32) {
    %c0_i32 = arith.constant 0 : i32
    %c0_i32_0 = arith.constant 0 : i32
    return %c0_i32, %arg1 : i32, i32
  }
  func.func @transform_4(%arg0: i32, %arg1: i32, %arg2: i32) -> (i32, i32) {
    %c0_i32 = arith.constant 0 : i32
    return %arg0, %arg1 : i32, i32
  }
}

module attributes {stable_mosaic.version = 11 : i64} {
  func.func @_conv_bn_kernel(%arg0: i32, %arg1: i32, %arg2: i32, %arg3: memref<128x128xbf16, #tpu.memory_space<vmem>>, %arg4: memref<128x128xbf16, #tpu.memory_space<vmem>>, %arg5: memref<1x128xf32, #tpu.memory_space<vmem>>, %arg6: memref<1x128xf32, #tpu.memory_space<vmem>>, %arg7: memref<128x128xf32, #tpu.memory_space<vmem>>, %arg8: memref<128x128xf32, #tpu.memory_space<vmem>>) attributes {dimension_semantics = [#tpu.dimension_semantics<parallel>, #tpu.dimension_semantics<parallel>, #tpu.dimension_semantics<arbitrary>], iteration_bounds = array<i64: 1, 1, 1>, scalar_prefetch = 0 : i64, scratch_operands = 1 : i64, tpu.core_type = #tpu.core_type<tc>, window_params = [{transform_indices = @transform_0, window_bounds = array<i64: 128, 128>}, {transform_indices = @transform_1, window_bounds = array<i64: 128, 128>}, {transform_indices = @transform_2, window_bounds = array<i64: 1, 128>}, {transform_indices = @transform_3, window_bounds = array<i64: 1, 128>}, {transform_indices = @transform_4, window_bounds = array<i64: 128, 128>}]} {
    %c0_i32 = arith.constant 0 : i32
    %0 = arith.cmpi eq, %arg2, %c0_i32 : i32
    %1 = arith.extui %0 : i1 to i32
    %c0_i32_0 = arith.constant 0 : i32
    %2 = arith.cmpi ne, %1, %c0_i32_0 : i32
    scf.if %2 {
      %cst_10 = arith.constant 0.000000e+00 : f32
      %12 = vector.broadcast %cst_10 : f32 to vector<128x128xf32>
      %c0_11 = arith.constant 0 : index
      %c0_12 = arith.constant 0 : index
      %13 = vector.load %arg8[%c0_11, %c0_12] : memref<128x128xf32, #tpu.memory_space<vmem>>, vector<128x128xf32>
      tpu.vector_store %arg8[%c0_11, %c0_12], %12 {strides = array<i32>} : memref<128x128xf32, #tpu.memory_space<vmem>>, vector<128x128xf32>,
    } else {
    }
    %c0 = arith.constant 0 : index
    %c0_1 = arith.constant 0 : index
    %3 = vector.load %arg8[%c0, %c0_1] : memref<128x128xf32, #tpu.memory_space<vmem>>, vector<128x128xf32>
    %c0_2 = arith.constant 0 : index
    %c0_3 = arith.constant 0 : index
    %4 = vector.load %arg3[%c0_2, %c0_3] : memref<128x128xbf16, #tpu.memory_space<vmem>>, vector<128x128xbf16>
    %c0_4 = arith.constant 0 : index
    %c0_5 = arith.constant 0 : index
    %5 = vector.load %arg4[%c0_4, %c0_5] : memref<128x128xbf16, #tpu.memory_space<vmem>>, vector<128x128xbf16>
    %cst = arith.constant dense<0.000000e+00> : vector<128x128xf32>
    %6 = tpu.matmul %4, %5, %cst {dimension_numbers = #tpu.dot_dimension_numbers<[1], [0], [0], [1], [0, 0, 1, 1], [], []>} : vector<128x128xbf16>, vector<128x128xbf16>, vector<128x128xf32> -> vector<128x128xf32>
    %7 = arith.addf %3, %6 : vector<128x128xf32>
    %c0_6 = arith.constant 0 : index
    %c0_7 = arith.constant 0 : index
    %8 = vector.load %arg8[%c0_6, %c0_7] : memref<128x128xf32, #tpu.memory_space<vmem>>, vector<128x128xf32>
    tpu.vector_store %arg8[%c0_6, %c0_7], %7 {strides = array<i32>} : memref<128x128xf32, #tpu.memory_space<vmem>>, vector<128x128xf32>,
    %c0_i32_8 = arith.constant 0 : i32
    %9 = arith.cmpi eq, %arg2, %c0_i32_8 : i32
    %10 = arith.extui %9 : i1 to i32
    %c0_i32_9 = arith.constant 0 : i32
    %11 = arith.cmpi ne, %10, %c0_i32_9 : i32
    scf.if %11 {
      %c0_10 = arith.constant 0 : index
      %c0_11 = arith.constant 0 : index
      %12 = vector.load %arg8[%c0_10, %c0_11] : memref<128x128xf32, #tpu.memory_space<vmem>>, vector<128x128xf32>
      %c0_12 = arith.constant 0 : index
      %c0_13 = arith.constant 0 : index
      %13 = vector.load %arg5[%c0_12, %c0_13] : memref<1x128xf32, #tpu.memory_space<vmem>>, vector<1x128xf32>
      %14 = vector.broadcast %13 : vector<1x128xf32> to vector<128x128xf32>
      %15 = arith.mulf %12, %14 : vector<128x128xf32>
      %c0_14 = arith.constant 0 : index
      %c0_15 = arith.constant 0 : index
      %16 = vector.load %arg6[%c0_14, %c0_15] : memref<1x128xf32, #tpu.memory_space<vmem>>, vector<1x128xf32>
      %17 = vector.broadcast %16 : vector<1x128xf32> to vector<128x128xf32>
      %18 = arith.addf %15, %17 : vector<128x128xf32>
      %cst_16 = arith.constant 0.000000e+00 : f32
      %19 = vector.broadcast %cst_16 : f32 to vector<128x128xf32>
      %20 = arith.maximumf %18, %19 : vector<128x128xf32>
      %c0_17 = arith.constant 0 : index
      %c0_18 = arith.constant 0 : index
      %21 = vector.load %arg7[%c0_17, %c0_18] : memref<128x128xf32, #tpu.memory_space<vmem>>, vector<128x128xf32>
      tpu.vector_store %arg7[%c0_17, %c0_18], %20 {strides = array<i32>} : memref<128x128xf32, #tpu.memory_space<vmem>>, vector<128x128xf32>,
    } else {
    }
    return
  }
  func.func @transform_0(%arg0: i32, %arg1: i32, %arg2: i32) -> (i32, i32) {
    %c0_i32 = arith.constant 0 : i32
    return %arg0, %arg2 : i32, i32
  }
  func.func @transform_1(%arg0: i32, %arg1: i32, %arg2: i32) -> (i32, i32) {
    %c0_i32 = arith.constant 0 : i32
    return %arg2, %arg1 : i32, i32
  }
  func.func @transform_2(%arg0: i32, %arg1: i32, %arg2: i32) -> (i32, i32) {
    %c0_i32 = arith.constant 0 : i32
    %c0_i32_0 = arith.constant 0 : i32
    return %c0_i32, %arg1 : i32, i32
  }
  func.func @transform_3(%arg0: i32, %arg1: i32, %arg2: i32) -> (i32, i32) {
    %c0_i32 = arith.constant 0 : i32
    %c0_i32_0 = arith.constant 0 : i32
    return %c0_i32, %arg1 : i32, i32
  }
  func.func @transform_4(%arg0: i32, %arg1: i32, %arg2: i32) -> (i32, i32) {
    %c0_i32 = arith.constant 0 : i32
    return %arg0, %arg1 : i32, i32
  }
}

module attributes {stable_mosaic.version = 11 : i64} {
  func.func @_conv_bn_kernel(%arg0: i32, %arg1: i32, %arg2: i32, %arg3: memref<128x128xbf16, #tpu.memory_space<vmem>>, %arg4: memref<128x128xbf16, #tpu.memory_space<vmem>>, %arg5: memref<1x128xf32, #tpu.memory_space<vmem>>, %arg6: memref<1x128xf32, #tpu.memory_space<vmem>>, %arg7: memref<128x128xf32, #tpu.memory_space<vmem>>, %arg8: memref<128x128xf32, #tpu.memory_space<vmem>>) attributes {dimension_semantics = [#tpu.dimension_semantics<parallel>, #tpu.dimension_semantics<parallel>, #tpu.dimension_semantics<arbitrary>], iteration_bounds = array<i64: 1, 1, 1>, scalar_prefetch = 0 : i64, scratch_operands = 1 : i64, tpu.core_type = #tpu.core_type<tc>, window_params = [{transform_indices = @transform_0, window_bounds = array<i64: 128, 128>}, {transform_indices = @transform_1, window_bounds = array<i64: 128, 128>}, {transform_indices = @transform_2, window_bounds = array<i64: 1, 128>}, {transform_indices = @transform_3, window_bounds = array<i64: 1, 128>}, {transform_indices = @transform_4, window_bounds = array<i64: 128, 128>}]} {
    %c0_i32 = arith.constant 0 : i32
    %0 = arith.cmpi eq, %arg2, %c0_i32 : i32
    %1 = arith.extui %0 : i1 to i32
    %c0_i32_0 = arith.constant 0 : i32
    %2 = arith.cmpi ne, %1, %c0_i32_0 : i32
    scf.if %2 {
      %cst_10 = arith.constant 0.000000e+00 : f32
      %12 = vector.broadcast %cst_10 : f32 to vector<128x128xf32>
      %c0_11 = arith.constant 0 : index
      %c0_12 = arith.constant 0 : index
      %13 = vector.load %arg8[%c0_11, %c0_12] : memref<128x128xf32, #tpu.memory_space<vmem>>, vector<128x128xf32>
      tpu.vector_store %arg8[%c0_11, %c0_12], %12 {strides = array<i32>} : memref<128x128xf32, #tpu.memory_space<vmem>>, vector<128x128xf32>,
    } else {
    }
    %c0 = arith.constant 0 : index
    %c0_1 = arith.constant 0 : index
    %3 = vector.load %arg8[%c0, %c0_1] : memref<128x128xf32, #tpu.memory_space<vmem>>, vector<128x128xf32>
    %c0_2 = arith.constant 0 : index
    %c0_3 = arith.constant 0 : index
    %4 = vector.load %arg3[%c0_2, %c0_3] : memref<128x128xbf16, #tpu.memory_space<vmem>>, vector<128x128xbf16>
    %c0_4 = arith.constant 0 : index
    %c0_5 = arith.constant 0 : index
    %5 = vector.load %arg4[%c0_4, %c0_5] : memref<128x128xbf16, #tpu.memory_space<vmem>>, vector<128x128xbf16>
    %cst = arith.constant dense<0.000000e+00> : vector<128x128xf32>
    %6 = tpu.matmul %4, %5, %cst {dimension_numbers = #tpu.dot_dimension_numbers<[1], [0], [0], [1], [0, 0, 1, 1], [], []>} : vector<128x128xbf16>, vector<128x128xbf16>, vector<128x128xf32> -> vector<128x128xf32>
    %7 = arith.addf %3, %6 : vector<128x128xf32>
    %c0_6 = arith.constant 0 : index
    %c0_7 = arith.constant 0 : index
    %8 = vector.load %arg8[%c0_6, %c0_7] : memref<128x128xf32, #tpu.memory_space<vmem>>, vector<128x128xf32>
    tpu.vector_store %arg8[%c0_6, %c0_7], %7 {strides = array<i32>} : memref<128x128xf32, #tpu.memory_space<vmem>>, vector<128x128xf32>,
    %c0_i32_8 = arith.constant 0 : i32
    %9 = arith.cmpi eq, %arg2, %c0_i32_8 : i32
    %10 = arith.extui %9 : i1 to i32
    %c0_i32_9 = arith.constant 0 : i32
    %11 = arith.cmpi ne, %10, %c0_i32_9 : i32
    scf.if %11 {
      %c0_10 = arith.constant 0 : index
      %c0_11 = arith.constant 0 : index
      %12 = vector.load %arg8[%c0_10, %c0_11] : memref<128x128xf32, #tpu.memory_space<vmem>>, vector<128x128xf32>
      %c0_12 = arith.constant 0 : index
      %c0_13 = arith.constant 0 : index
      %13 = vector.load %arg5[%c0_12, %c0_13] : memref<1x128xf32, #tpu.memory_space<vmem>>, vector<1x128xf32>
      %14 = vector.broadcast %13 : vector<1x128xf32> to vector<128x128xf32>
      %15 = arith.mulf %12, %14 : vector<128x128xf32>
      %c0_14 = arith.constant 0 : index
      %c0_15 = arith.constant 0 : index
      %16 = vector.load %arg6[%c0_14, %c0_15] : memref<1x128xf32, #tpu.memory_space<vmem>>, vector<1x128xf32>
      %17 = vector.broadcast %16 : vector<1x128xf32> to vector<128x128xf32>
      %18 = arith.addf %15, %17 : vector<128x128xf32>
      %c0_16 = arith.constant 0 : index
      %c0_17 = arith.constant 0 : index
      %19 = vector.load %arg7[%c0_16, %c0_17] : memref<128x128xf32, #tpu.memory_space<vmem>>, vector<128x128xf32>
      tpu.vector_store %arg7[%c0_16, %c0_17], %18 {strides = array<i32>} : memref<128x128xf32, #tpu.memory_space<vmem>>, vector<128x128xf32>,
    } else {
    }
    return
  }
  func.func @transform_0(%arg0: i32, %arg1: i32, %arg2: i32) -> (i32, i32) {
    %c0_i32 = arith.constant 0 : i32
    return %arg0, %arg2 : i32, i32
  }
  func.func @transform_1(%arg0: i32, %arg1: i32, %arg2: i32) -> (i32, i32) {
    %c0_i32 = arith.constant 0 : i32
    return %arg2, %arg1 : i32, i32
  }
  func.func @transform_2(%arg0: i32, %arg1: i32, %arg2: i32) -> (i32, i32) {
    %c0_i32 = arith.constant 0 : i32
    %c0_i32_0 = arith.constant 0 : i32
    return %c0_i32, %arg1 : i32, i32
  }
  func.func @transform_3(%arg0: i32, %arg1: i32, %arg2: i32) -> (i32, i32) {
    %c0_i32 = arith.constant 0 : i32
    %c0_i32_0 = arith.constant 0 : i32
    return %c0_i32, %arg1 : i32, i32
  }
  func.func @transform_4(%arg0: i32, %arg1: i32, %arg2: i32) -> (i32, i32) {
    %c0_i32 = arith.constant 0 : i32
    return %arg0, %arg1 : i32, i32
  }
}

module attributes {stable_mosaic.version = 11 : i64} {
  func.func @_conv_bn_add_relu_kernel(%arg0: i32, %arg1: i32, %arg2: i32, %arg3: memref<128x128xbf16, #tpu.memory_space<vmem>>, %arg4: memref<128x128xbf16, #tpu.memory_space<vmem>>, %arg5: memref<1x128xf32, #tpu.memory_space<vmem>>, %arg6: memref<1x128xf32, #tpu.memory_space<vmem>>, %arg7: memref<128x128xf32, #tpu.memory_space<vmem>>, %arg8: memref<128x128xf32, #tpu.memory_space<vmem>>, %arg9: memref<128x128xf32, #tpu.memory_space<vmem>>) attributes {dimension_semantics = [#tpu.dimension_semantics<parallel>, #tpu.dimension_semantics<parallel>, #tpu.dimension_semantics<arbitrary>], iteration_bounds = array<i64: 1, 1, 1>, scalar_prefetch = 0 : i64, scratch_operands = 1 : i64, tpu.core_type = #tpu.core_type<tc>, window_params = [{transform_indices = @transform_0, window_bounds = array<i64: 128, 128>}, {transform_indices = @transform_1, window_bounds = array<i64: 128, 128>}, {transform_indices = @transform_2, window_bounds = array<i64: 1, 128>}, {transform_indices = @transform_3, window_bounds = array<i64: 1, 128>}, {transform_indices = @transform_4, window_bounds = array<i64: 128, 128>}, {transform_indices = @transform_5, window_bounds = array<i64: 128, 128>}]} {
    %c0_i32 = arith.constant 0 : i32
    %0 = arith.cmpi eq, %arg2, %c0_i32 : i32
    %1 = arith.extui %0 : i1 to i32
    %c0_i32_0 = arith.constant 0 : i32
    %2 = arith.cmpi ne, %1, %c0_i32_0 : i32
    scf.if %2 {
      %cst_10 = arith.constant 0.000000e+00 : f32
      %12 = vector.broadcast %cst_10 : f32 to vector<128x128xf32>
      %c0_11 = arith.constant 0 : index
      %c0_12 = arith.constant 0 : index
      %13 = vector.load %arg9[%c0_11, %c0_12] : memref<128x128xf32, #tpu.memory_space<vmem>>, vector<128x128xf32>
      tpu.vector_store %arg9[%c0_11, %c0_12], %12 {strides = array<i32>} : memref<128x128xf32, #tpu.memory_space<vmem>>, vector<128x128xf32>,
    } else {
    }
    %c0 = arith.constant 0 : index
    %c0_1 = arith.constant 0 : index
    %3 = vector.load %arg9[%c0, %c0_1] : memref<128x128xf32, #tpu.memory_space<vmem>>, vector<128x128xf32>
    %c0_2 = arith.constant 0 : index
    %c0_3 = arith.constant 0 : index
    %4 = vector.load %arg3[%c0_2, %c0_3] : memref<128x128xbf16, #tpu.memory_space<vmem>>, vector<128x128xbf16>
    %c0_4 = arith.constant 0 : index
    %c0_5 = arith.constant 0 : index
    %5 = vector.load %arg4[%c0_4, %c0_5] : memref<128x128xbf16, #tpu.memory_space<vmem>>, vector<128x128xbf16>
    %cst = arith.constant dense<0.000000e+00> : vector<128x128xf32>
    %6 = tpu.matmul %4, %5, %cst {dimension_numbers = #tpu.dot_dimension_numbers<[1], [0], [0], [1], [0, 0, 1, 1], [], []>} : vector<128x128xbf16>, vector<128x128xbf16>, vector<128x128xf32> -> vector<128x128xf32>
    %7 = arith.addf %3, %6 : vector<128x128xf32>
    %c0_6 = arith.constant 0 : index
    %c0_7 = arith.constant 0 : index
    %8 = vector.load %arg9[%c0_6, %c0_7] : memref<128x128xf32, #tpu.memory_space<vmem>>, vector<128x128xf32>
    tpu.vector_store %arg9[%c0_6, %c0_7], %7 {strides = array<i32>} : memref<128x128xf32, #tpu.memory_space<vmem>>, vector<128x128xf32>,
    %c0_i32_8 = arith.constant 0 : i32
    %9 = arith.cmpi eq, %arg2, %c0_i32_8 : i32
    %10 = arith.extui %9 : i1 to i32
    %c0_i32_9 = arith.constant 0 : i32
    %11 = arith.cmpi ne, %10, %c0_i32_9 : i32
    scf.if %11 {
      %c0_10 = arith.constant 0 : index
      %c0_11 = arith.constant 0 : index
      %12 = vector.load %arg9[%c0_10, %c0_11] : memref<128x128xf32, #tpu.memory_space<vmem>>, vector<128x128xf32>
      %c0_12 = arith.constant 0 : index
      %c0_13 = arith.constant 0 : index
      %13 = vector.load %arg5[%c0_12, %c0_13] : memref<1x128xf32, #tpu.memory_space<vmem>>, vector<1x128xf32>
      %14 = vector.broadcast %13 : vector<1x128xf32> to vector<128x128xf32>
      %15 = arith.mulf %12, %14 : vector<128x128xf32>
      %c0_14 = arith.constant 0 : index
      %c0_15 = arith.constant 0 : index
      %16 = vector.load %arg6[%c0_14, %c0_15] : memref<1x128xf32, #tpu.memory_space<vmem>>, vector<1x128xf32>
      %17 = vector.broadcast %16 : vector<1x128xf32> to vector<128x128xf32>
      %18 = arith.addf %15, %17 : vector<128x128xf32>
      %c0_16 = arith.constant 0 : index
      %c0_17 = arith.constant 0 : index
      %19 = vector.load %arg7[%c0_16, %c0_17] : memref<128x128xf32, #tpu.memory_space<vmem>>, vector<128x128xf32>
      %20 = arith.addf %18, %19 : vector<128x128xf32>
      %cst_18 = arith.constant 0.000000e+00 : f32
      %21 = vector.broadcast %cst_18 : f32 to vector<128x128xf32>
      %22 = arith.maximumf %20, %21 : vector<128x128xf32>
      %c0_19 = arith.constant 0 : index
      %c0_20 = arith.constant 0 : index
      %23 = vector.load %arg8[%c0_19, %c0_20] : memref<128x128xf32, #tpu.memory_space<vmem>>, vector<128x128xf32>
      tpu.vector_store %arg8[%c0_19, %c0_20], %22 {strides = array<i32>} : memref<128x128xf32, #tpu.memory_space<vmem>>, vector<128x128xf32>,
    } else {
    }
    return
  }
  func.func @transform_0(%arg0: i32, %arg1: i32, %arg2: i32) -> (i32, i32) {
    %c0_i32 = arith.constant 0 : i32
    return %arg0, %arg2 : i32, i32
  }
  func.func @transform_1(%arg0: i32, %arg1: i32, %arg2: i32) -> (i32, i32) {
    %c0_i32 = arith.constant 0 : i32
    return %arg2, %arg1 : i32, i32
  }
  func.func @transform_2(%arg0: i32, %arg1: i32, %arg2: i32) -> (i32, i32) {
    %c0_i32 = arith.constant 0 : i32
    %c0_i32_0 = arith.constant 0 : i32
    return %c0_i32, %arg1 : i32, i32
  }
  func.func @transform_3(%arg0: i32, %arg1: i32, %arg2: i32) -> (i32, i32) {
    %c0_i32 = arith.constant 0 : i32
    %c0_i32_0 = arith.constant 0 : i32
    return %c0_i32, %arg1 : i32, i32
  }
  func.func @transform_4(%arg0: i32, %arg1: i32, %arg2: i32) -> (i32, i32) {
    %c0_i32 = arith.constant 0 : i32
    return %arg0, %arg1 : i32, i32
  }
  func.func @transform_5(%arg0: i32, %arg1: i32, %arg2: i32) -> (i32, i32) {
    %c0_i32 = arith.constant 0 : i32
    return %arg0, %arg1 : i32, i32
  }
}

module attributes {stable_mosaic.version = 11 : i64} {
  func.func @_conv_bn_kernel(%arg0: i32, %arg1: i32, %arg2: i32, %arg3: memref<128x256xbf16, #tpu.memory_space<vmem>>, %arg4: memref<256x128xbf16, #tpu.memory_space<vmem>>, %arg5: memref<1x128xf32, #tpu.memory_space<vmem>>, %arg6: memref<1x128xf32, #tpu.memory_space<vmem>>, %arg7: memref<128x128xf32, #tpu.memory_space<vmem>>, %arg8: memref<128x128xf32, #tpu.memory_space<vmem>>) attributes {dimension_semantics = [#tpu.dimension_semantics<parallel>, #tpu.dimension_semantics<parallel>, #tpu.dimension_semantics<arbitrary>], iteration_bounds = array<i64: 1, 1, 1>, scalar_prefetch = 0 : i64, scratch_operands = 1 : i64, tpu.core_type = #tpu.core_type<tc>, window_params = [{transform_indices = @transform_0, window_bounds = array<i64: 128, 256>}, {transform_indices = @transform_1, window_bounds = array<i64: 256, 128>}, {transform_indices = @transform_2, window_bounds = array<i64: 1, 128>}, {transform_indices = @transform_3, window_bounds = array<i64: 1, 128>}, {transform_indices = @transform_4, window_bounds = array<i64: 128, 128>}]} {
    %c0_i32 = arith.constant 0 : i32
    %0 = arith.cmpi eq, %arg2, %c0_i32 : i32
    %1 = arith.extui %0 : i1 to i32
    %c0_i32_0 = arith.constant 0 : i32
    %2 = arith.cmpi ne, %1, %c0_i32_0 : i32
    scf.if %2 {
      %cst_10 = arith.constant 0.000000e+00 : f32
      %12 = vector.broadcast %cst_10 : f32 to vector<128x128xf32>
      %c0_11 = arith.constant 0 : index
      %c0_12 = arith.constant 0 : index
      %13 = vector.load %arg8[%c0_11, %c0_12] : memref<128x128xf32, #tpu.memory_space<vmem>>, vector<128x128xf32>
      tpu.vector_store %arg8[%c0_11, %c0_12], %12 {strides = array<i32>} : memref<128x128xf32, #tpu.memory_space<vmem>>, vector<128x128xf32>,
    } else {
    }
    %c0 = arith.constant 0 : index
    %c0_1 = arith.constant 0 : index
    %3 = vector.load %arg8[%c0, %c0_1] : memref<128x128xf32, #tpu.memory_space<vmem>>, vector<128x128xf32>
    %c0_2 = arith.constant 0 : index
    %c0_3 = arith.constant 0 : index
    %4 = vector.load %arg3[%c0_2, %c0_3] : memref<128x256xbf16, #tpu.memory_space<vmem>>, vector<128x256xbf16>
    %c0_4 = arith.constant 0 : index
    %c0_5 = arith.constant 0 : index
    %5 = vector.load %arg4[%c0_4, %c0_5] : memref<256x128xbf16, #tpu.memory_space<vmem>>, vector<256x128xbf16>
    %cst = arith.constant dense<0.000000e+00> : vector<128x128xf32>
    %6 = tpu.matmul %4, %5, %cst {dimension_numbers = #tpu.dot_dimension_numbers<[1], [0], [0], [1], [0, 0, 1, 1], [], []>} : vector<128x256xbf16>, vector<256x128xbf16>, vector<128x128xf32> -> vector<128x128xf32>
    %7 = arith.addf %3, %6 : vector<128x128xf32>
    %c0_6 = arith.constant 0 : index
    %c0_7 = arith.constant 0 : index
    %8 = vector.load %arg8[%c0_6, %c0_7] : memref<128x128xf32, #tpu.memory_space<vmem>>, vector<128x128xf32>
    tpu.vector_store %arg8[%c0_6, %c0_7], %7 {strides = array<i32>} : memref<128x128xf32, #tpu.memory_space<vmem>>, vector<128x128xf32>,
    %c0_i32_8 = arith.constant 0 : i32
    %9 = arith.cmpi eq, %arg2, %c0_i32_8 : i32
    %10 = arith.extui %9 : i1 to i32
    %c0_i32_9 = arith.constant 0 : i32
    %11 = arith.cmpi ne, %10, %c0_i32_9 : i32
    scf.if %11 {
      %c0_10 = arith.constant 0 : index
      %c0_11 = arith.constant 0 : index
      %12 = vector.load %arg8[%c0_10, %c0_11] : memref<128x128xf32, #tpu.memory_space<vmem>>, vector<128x128xf32>
      %c0_12 = arith.constant 0 : index
      %c0_13 = arith.constant 0 : index
      %13 = vector.load %arg5[%c0_12, %c0_13] : memref<1x128xf32, #tpu.memory_space<vmem>>, vector<1x128xf32>
      %14 = vector.broadcast %13 : vector<1x128xf32> to vector<128x128xf32>
      %15 = arith.mulf %12, %14 : vector<128x128xf32>
      %c0_14 = arith.constant 0 : index
      %c0_15 = arith.constant 0 : index
      %16 = vector.load %arg6[%c0_14, %c0_15] : memref<1x128xf32, #tpu.memory_space<vmem>>, vector<1x128xf32>
      %17 = vector.broadcast %16 : vector<1x128xf32> to vector<128x128xf32>
      %18 = arith.addf %15, %17 : vector<128x128xf32>
      %cst_16 = arith.constant 0.000000e+00 : f32
      %19 = vector.broadcast %cst_16 : f32 to vector<128x128xf32>
      %20 = arith.maximumf %18, %19 : vector<128x128xf32>
      %c0_17 = arith.constant 0 : index
      %c0_18 = arith.constant 0 : index
      %21 = vector.load %arg7[%c0_17, %c0_18] : memref<128x128xf32, #tpu.memory_space<vmem>>, vector<128x128xf32>
      tpu.vector_store %arg7[%c0_17, %c0_18], %20 {strides = array<i32>} : memref<128x128xf32, #tpu.memory_space<vmem>>, vector<128x128xf32>,
    } else {
    }
    return
  }
  func.func @transform_0(%arg0: i32, %arg1: i32, %arg2: i32) -> (i32, i32) {
    %c0_i32 = arith.constant 0 : i32
    return %arg0, %arg2 : i32, i32
  }
  func.func @transform_1(%arg0: i32, %arg1: i32, %arg2: i32) -> (i32, i32) {
    %c0_i32 = arith.constant 0 : i32
    return %arg2, %arg1 : i32, i32
  }
  func.func @transform_2(%arg0: i32, %arg1: i32, %arg2: i32) -> (i32, i32) {
    %c0_i32 = arith.constant 0 : i32
    %c0_i32_0 = arith.constant 0 : i32
    return %c0_i32, %arg1 : i32, i32
  }
  func.func @transform_3(%arg0: i32, %arg1: i32, %arg2: i32) -> (i32, i32) {
    %c0_i32 = arith.constant 0 : i32
    %c0_i32_0 = arith.constant 0 : i32
    return %c0_i32, %arg1 : i32, i32
  }
  func.func @transform_4(%arg0: i32, %arg1: i32, %arg2: i32) -> (i32, i32) {
    %c0_i32 = arith.constant 0 : i32
    return %arg0, %arg1 : i32, i32
  }
}

module attributes {stable_mosaic.version = 11 : i64} {
  func.func @_conv_bn_kernel(%arg0: i32, %arg1: i32, %arg2: i32, %arg3: memref<128x384xbf16, #tpu.memory_space<vmem>>, %arg4: memref<384x128xbf16, #tpu.memory_space<vmem>>, %arg5: memref<1x128xf32, #tpu.memory_space<vmem>>, %arg6: memref<1x128xf32, #tpu.memory_space<vmem>>, %arg7: memref<128x128xf32, #tpu.memory_space<vmem>>, %arg8: memref<128x128xf32, #tpu.memory_space<vmem>>) attributes {dimension_semantics = [#tpu.dimension_semantics<parallel>, #tpu.dimension_semantics<parallel>, #tpu.dimension_semantics<arbitrary>], iteration_bounds = array<i64: 1, 1, 1>, scalar_prefetch = 0 : i64, scratch_operands = 1 : i64, tpu.core_type = #tpu.core_type<tc>, window_params = [{transform_indices = @transform_0, window_bounds = array<i64: 128, 384>}, {transform_indices = @transform_1, window_bounds = array<i64: 384, 128>}, {transform_indices = @transform_2, window_bounds = array<i64: 1, 128>}, {transform_indices = @transform_3, window_bounds = array<i64: 1, 128>}, {transform_indices = @transform_4, window_bounds = array<i64: 128, 128>}]} {
    %c0_i32 = arith.constant 0 : i32
    %0 = arith.cmpi eq, %arg2, %c0_i32 : i32
    %1 = arith.extui %0 : i1 to i32
    %c0_i32_0 = arith.constant 0 : i32
    %2 = arith.cmpi ne, %1, %c0_i32_0 : i32
    scf.if %2 {
      %cst_10 = arith.constant 0.000000e+00 : f32
      %12 = vector.broadcast %cst_10 : f32 to vector<128x128xf32>
      %c0_11 = arith.constant 0 : index
      %c0_12 = arith.constant 0 : index
      %13 = vector.load %arg8[%c0_11, %c0_12] : memref<128x128xf32, #tpu.memory_space<vmem>>, vector<128x128xf32>
      tpu.vector_store %arg8[%c0_11, %c0_12], %12 {strides = array<i32>} : memref<128x128xf32, #tpu.memory_space<vmem>>, vector<128x128xf32>,
    } else {
    }
    %c0 = arith.constant 0 : index
    %c0_1 = arith.constant 0 : index
    %3 = vector.load %arg8[%c0, %c0_1] : memref<128x128xf32, #tpu.memory_space<vmem>>, vector<128x128xf32>
    %c0_2 = arith.constant 0 : index
    %c0_3 = arith.constant 0 : index
    %4 = vector.load %arg3[%c0_2, %c0_3] : memref<128x384xbf16, #tpu.memory_space<vmem>>, vector<128x384xbf16>
    %c0_4 = arith.constant 0 : index
    %c0_5 = arith.constant 0 : index
    %5 = vector.load %arg4[%c0_4, %c0_5] : memref<384x128xbf16, #tpu.memory_space<vmem>>, vector<384x128xbf16>
    %cst = arith.constant dense<0.000000e+00> : vector<128x128xf32>
    %6 = tpu.matmul %4, %5, %cst {dimension_numbers = #tpu.dot_dimension_numbers<[1], [0], [0], [1], [0, 0, 1, 1], [], []>} : vector<128x384xbf16>, vector<384x128xbf16>, vector<128x128xf32> -> vector<128x128xf32>
    %7 = arith.addf %3, %6 : vector<128x128xf32>
    %c0_6 = arith.constant 0 : index
    %c0_7 = arith.constant 0 : index
    %8 = vector.load %arg8[%c0_6, %c0_7] : memref<128x128xf32, #tpu.memory_space<vmem>>, vector<128x128xf32>
    tpu.vector_store %arg8[%c0_6, %c0_7], %7 {strides = array<i32>} : memref<128x128xf32, #tpu.memory_space<vmem>>, vector<128x128xf32>,
    %c0_i32_8 = arith.constant 0 : i32
    %9 = arith.cmpi eq, %arg2, %c0_i32_8 : i32
    %10 = arith.extui %9 : i1 to i32
    %c0_i32_9 = arith.constant 0 : i32
    %11 = arith.cmpi ne, %10, %c0_i32_9 : i32
    scf.if %11 {
      %c0_10 = arith.constant 0 : index
      %c0_11 = arith.constant 0 : index
      %12 = vector.load %arg8[%c0_10, %c0_11] : memref<128x128xf32, #tpu.memory_space<vmem>>, vector<128x128xf32>
      %c0_12 = arith.constant 0 : index
      %c0_13 = arith.constant 0 : index
      %13 = vector.load %arg5[%c0_12, %c0_13] : memref<1x128xf32, #tpu.memory_space<vmem>>, vector<1x128xf32>
      %14 = vector.broadcast %13 : vector<1x128xf32> to vector<128x128xf32>
      %15 = arith.mulf %12, %14 : vector<128x128xf32>
      %c0_14 = arith.constant 0 : index
      %c0_15 = arith.constant 0 : index
      %16 = vector.load %arg6[%c0_14, %c0_15] : memref<1x128xf32, #tpu.memory_space<vmem>>, vector<1x128xf32>
      %17 = vector.broadcast %16 : vector<1x128xf32> to vector<128x128xf32>
      %18 = arith.addf %15, %17 : vector<128x128xf32>
      %cst_16 = arith.constant 0.000000e+00 : f32
      %19 = vector.broadcast %cst_16 : f32 to vector<128x128xf32>
      %20 = arith.maximumf %18, %19 : vector<128x128xf32>
      %c0_17 = arith.constant 0 : index
      %c0_18 = arith.constant 0 : index
      %21 = vector.load %arg7[%c0_17, %c0_18] : memref<128x128xf32, #tpu.memory_space<vmem>>, vector<128x128xf32>
      tpu.vector_store %arg7[%c0_17, %c0_18], %20 {strides = array<i32>} : memref<128x128xf32, #tpu.memory_space<vmem>>, vector<128x128xf32>,
    } else {
    }
    return
  }
  func.func @transform_0(%arg0: i32, %arg1: i32, %arg2: i32) -> (i32, i32) {
    %c0_i32 = arith.constant 0 : i32
    return %arg0, %arg2 : i32, i32
  }
  func.func @transform_1(%arg0: i32, %arg1: i32, %arg2: i32) -> (i32, i32) {
    %c0_i32 = arith.constant 0 : i32
    return %arg2, %arg1 : i32, i32
  }
  func.func @transform_2(%arg0: i32, %arg1: i32, %arg2: i32) -> (i32, i32) {
    %c0_i32 = arith.constant 0 : i32
    %c0_i32_0 = arith.constant 0 : i32
    return %c0_i32, %arg1 : i32, i32
  }
  func.func @transform_3(%arg0: i32, %arg1: i32, %arg2: i32) -> (i32, i32) {
    %c0_i32 = arith.constant 0 : i32
    %c0_i32_0 = arith.constant 0 : i32
    return %c0_i32, %arg1 : i32, i32
  }
  func.func @transform_4(%arg0: i32, %arg1: i32, %arg2: i32) -> (i32, i32) {
    %c0_i32 = arith.constant 0 : i32
    return %arg0, %arg1 : i32, i32
  }
}

module attributes {stable_mosaic.version = 11 : i64} {
  func.func @_conv_bn_kernel(%arg0: i32, %arg1: i32, %arg2: i32, %arg3: memref<128x640xbf16, #tpu.memory_space<vmem>>, %arg4: memref<640x128xbf16, #tpu.memory_space<vmem>>, %arg5: memref<1x128xf32, #tpu.memory_space<vmem>>, %arg6: memref<1x128xf32, #tpu.memory_space<vmem>>, %arg7: memref<128x128xf32, #tpu.memory_space<vmem>>, %arg8: memref<128x128xf32, #tpu.memory_space<vmem>>) attributes {dimension_semantics = [#tpu.dimension_semantics<parallel>, #tpu.dimension_semantics<parallel>, #tpu.dimension_semantics<arbitrary>], iteration_bounds = array<i64: 1, 1, 1>, scalar_prefetch = 0 : i64, scratch_operands = 1 : i64, tpu.core_type = #tpu.core_type<tc>, window_params = [{transform_indices = @transform_0, window_bounds = array<i64: 128, 640>}, {transform_indices = @transform_1, window_bounds = array<i64: 640, 128>}, {transform_indices = @transform_2, window_bounds = array<i64: 1, 128>}, {transform_indices = @transform_3, window_bounds = array<i64: 1, 128>}, {transform_indices = @transform_4, window_bounds = array<i64: 128, 128>}]} {
    %c0_i32 = arith.constant 0 : i32
    %0 = arith.cmpi eq, %arg2, %c0_i32 : i32
    %1 = arith.extui %0 : i1 to i32
    %c0_i32_0 = arith.constant 0 : i32
    %2 = arith.cmpi ne, %1, %c0_i32_0 : i32
    scf.if %2 {
      %cst_10 = arith.constant 0.000000e+00 : f32
      %12 = vector.broadcast %cst_10 : f32 to vector<128x128xf32>
      %c0_11 = arith.constant 0 : index
      %c0_12 = arith.constant 0 : index
      %13 = vector.load %arg8[%c0_11, %c0_12] : memref<128x128xf32, #tpu.memory_space<vmem>>, vector<128x128xf32>
      tpu.vector_store %arg8[%c0_11, %c0_12], %12 {strides = array<i32>} : memref<128x128xf32, #tpu.memory_space<vmem>>, vector<128x128xf32>,
    } else {
    }
    %c0 = arith.constant 0 : index
    %c0_1 = arith.constant 0 : index
    %3 = vector.load %arg8[%c0, %c0_1] : memref<128x128xf32, #tpu.memory_space<vmem>>, vector<128x128xf32>
    %c0_2 = arith.constant 0 : index
    %c0_3 = arith.constant 0 : index
    %4 = vector.load %arg3[%c0_2, %c0_3] : memref<128x640xbf16, #tpu.memory_space<vmem>>, vector<128x640xbf16>
    %c0_4 = arith.constant 0 : index
    %c0_5 = arith.constant 0 : index
    %5 = vector.load %arg4[%c0_4, %c0_5] : memref<640x128xbf16, #tpu.memory_space<vmem>>, vector<640x128xbf16>
    %cst = arith.constant dense<0.000000e+00> : vector<128x128xf32>
    %6 = tpu.matmul %4, %5, %cst {dimension_numbers = #tpu.dot_dimension_numbers<[1], [0], [0], [1], [0, 0, 1, 1], [], []>} : vector<128x640xbf16>, vector<640x128xbf16>, vector<128x128xf32> -> vector<128x128xf32>
    %7 = arith.addf %3, %6 : vector<128x128xf32>
    %c0_6 = arith.constant 0 : index
    %c0_7 = arith.constant 0 : index
    %8 = vector.load %arg8[%c0_6, %c0_7] : memref<128x128xf32, #tpu.memory_space<vmem>>, vector<128x128xf32>
    tpu.vector_store %arg8[%c0_6, %c0_7], %7 {strides = array<i32>} : memref<128x128xf32, #tpu.memory_space<vmem>>, vector<128x128xf32>,
    %c0_i32_8 = arith.constant 0 : i32
    %9 = arith.cmpi eq, %arg2, %c0_i32_8 : i32
    %10 = arith.extui %9 : i1 to i32
    %c0_i32_9 = arith.constant 0 : i32
    %11 = arith.cmpi ne, %10, %c0_i32_9 : i32
    scf.if %11 {
      %c0_10 = arith.constant 0 : index
      %c0_11 = arith.constant 0 : index
      %12 = vector.load %arg8[%c0_10, %c0_11] : memref<128x128xf32, #tpu.memory_space<vmem>>, vector<128x128xf32>
      %c0_12 = arith.constant 0 : index
      %c0_13 = arith.constant 0 : index
      %13 = vector.load %arg5[%c0_12, %c0_13] : memref<1x128xf32, #tpu.memory_space<vmem>>, vector<1x128xf32>
      %14 = vector.broadcast %13 : vector<1x128xf32> to vector<128x128xf32>
      %15 = arith.mulf %12, %14 : vector<128x128xf32>
      %c0_14 = arith.constant 0 : index
      %c0_15 = arith.constant 0 : index
      %16 = vector.load %arg6[%c0_14, %c0_15] : memref<1x128xf32, #tpu.memory_space<vmem>>, vector<1x128xf32>
      %17 = vector.broadcast %16 : vector<1x128xf32> to vector<128x128xf32>
      %18 = arith.addf %15, %17 : vector<128x128xf32>
      %cst_16 = arith.constant 0.000000e+00 : f32
      %19 = vector.broadcast %cst_16 : f32 to vector<128x128xf32>
      %20 = arith.maximumf %18, %19 : vector<128x128xf32>
      %c0_17 = arith.constant 0 : index
      %c0_18 = arith.constant 0 : index
      %21 = vector.load %arg7[%c0_17, %c0_18] : memref<128x128xf32, #tpu.memory_space<vmem>>, vector<128x128xf32>
      tpu.vector_store %arg7[%c0_17, %c0_18], %20 {strides = array<i32>} : memref<128x128xf32, #tpu.memory_space<vmem>>, vector<128x128xf32>,
    } else {
    }
    return
  }
  func.func @transform_0(%arg0: i32, %arg1: i32, %arg2: i32) -> (i32, i32) {
    %c0_i32 = arith.constant 0 : i32
    return %arg0, %arg2 : i32, i32
  }
  func.func @transform_1(%arg0: i32, %arg1: i32, %arg2: i32) -> (i32, i32) {
    %c0_i32 = arith.constant 0 : i32
    return %arg2, %arg1 : i32, i32
  }
  func.func @transform_2(%arg0: i32, %arg1: i32, %arg2: i32) -> (i32, i32) {
    %c0_i32 = arith.constant 0 : i32
    %c0_i32_0 = arith.constant 0 : i32
    return %c0_i32, %arg1 : i32, i32
  }
  func.func @transform_3(%arg0: i32, %arg1: i32, %arg2: i32) -> (i32, i32) {
    %c0_i32 = arith.constant 0 : i32
    %c0_i32_0 = arith.constant 0 : i32
    return %c0_i32, %arg1 : i32, i32
  }
  func.func @transform_4(%arg0: i32, %arg1: i32, %arg2: i32) -> (i32, i32) {
    %c0_i32 = arith.constant 0 : i32
    return %arg0, %arg1 : i32, i32
  }
}

module attributes {stable_mosaic.version = 11 : i64} {
  func.func @_conv_bn_add_relu_kernel(%arg0: i32, %arg1: i32, %arg2: i32, %arg3: memref<128x128xbf16, #tpu.memory_space<vmem>>, %arg4: memref<128x256xbf16, #tpu.memory_space<vmem>>, %arg5: memref<1x256xf32, #tpu.memory_space<vmem>>, %arg6: memref<1x256xf32, #tpu.memory_space<vmem>>, %arg7: memref<128x256xf32, #tpu.memory_space<vmem>>, %arg8: memref<128x256xf32, #tpu.memory_space<vmem>>, %arg9: memref<128x256xf32, #tpu.memory_space<vmem>>) attributes {dimension_semantics = [#tpu.dimension_semantics<parallel>, #tpu.dimension_semantics<parallel>, #tpu.dimension_semantics<arbitrary>], iteration_bounds = array<i64: 1, 1, 1>, scalar_prefetch = 0 : i64, scratch_operands = 1 : i64, tpu.core_type = #tpu.core_type<tc>, window_params = [{transform_indices = @transform_0, window_bounds = array<i64: 128, 128>}, {transform_indices = @transform_1, window_bounds = array<i64: 128, 256>}, {transform_indices = @transform_2, window_bounds = array<i64: 1, 256>}, {transform_indices = @transform_3, window_bounds = array<i64: 1, 256>}, {transform_indices = @transform_4, window_bounds = array<i64: 128, 256>}, {transform_indices = @transform_5, window_bounds = array<i64: 128, 256>}]} {
    %c0_i32 = arith.constant 0 : i32
    %0 = arith.cmpi eq, %arg2, %c0_i32 : i32
    %1 = arith.extui %0 : i1 to i32
    %c0_i32_0 = arith.constant 0 : i32
    %2 = arith.cmpi ne, %1, %c0_i32_0 : i32
    scf.if %2 {
      %cst_10 = arith.constant 0.000000e+00 : f32
      %12 = vector.broadcast %cst_10 : f32 to vector<128x256xf32>
      %c0_11 = arith.constant 0 : index
      %c0_12 = arith.constant 0 : index
      %13 = vector.load %arg9[%c0_11, %c0_12] : memref<128x256xf32, #tpu.memory_space<vmem>>, vector<128x256xf32>
      tpu.vector_store %arg9[%c0_11, %c0_12], %12 {strides = array<i32>} : memref<128x256xf32, #tpu.memory_space<vmem>>, vector<128x256xf32>,
    } else {
    }
    %c0 = arith.constant 0 : index
    %c0_1 = arith.constant 0 : index
    %3 = vector.load %arg9[%c0, %c0_1] : memref<128x256xf32, #tpu.memory_space<vmem>>, vector<128x256xf32>
    %c0_2 = arith.constant 0 : index
    %c0_3 = arith.constant 0 : index
    %4 = vector.load %arg3[%c0_2, %c0_3] : memref<128x128xbf16, #tpu.memory_space<vmem>>, vector<128x128xbf16>
    %c0_4 = arith.constant 0 : index
    %c0_5 = arith.constant 0 : index
    %5 = vector.load %arg4[%c0_4, %c0_5] : memref<128x256xbf16, #tpu.memory_space<vmem>>, vector<128x256xbf16>
    %cst = arith.constant dense<0.000000e+00> : vector<128x256xf32>
    %6 = tpu.matmul %4, %5, %cst {dimension_numbers = #tpu.dot_dimension_numbers<[1], [0], [0], [1], [0, 0, 1, 1], [], []>} : vector<128x128xbf16>, vector<128x256xbf16>, vector<128x256xf32> -> vector<128x256xf32>
    %7 = arith.addf %3, %6 : vector<128x256xf32>
    %c0_6 = arith.constant 0 : index
    %c0_7 = arith.constant 0 : index
    %8 = vector.load %arg9[%c0_6, %c0_7] : memref<128x256xf32, #tpu.memory_space<vmem>>, vector<128x256xf32>
    tpu.vector_store %arg9[%c0_6, %c0_7], %7 {strides = array<i32>} : memref<128x256xf32, #tpu.memory_space<vmem>>, vector<128x256xf32>,
    %c0_i32_8 = arith.constant 0 : i32
    %9 = arith.cmpi eq, %arg2, %c0_i32_8 : i32
    %10 = arith.extui %9 : i1 to i32
    %c0_i32_9 = arith.constant 0 : i32
    %11 = arith.cmpi ne, %10, %c0_i32_9 : i32
    scf.if %11 {
      %c0_10 = arith.constant 0 : index
      %c0_11 = arith.constant 0 : index
      %12 = vector.load %arg9[%c0_10, %c0_11] : memref<128x256xf32, #tpu.memory_space<vmem>>, vector<128x256xf32>
      %c0_12 = arith.constant 0 : index
      %c0_13 = arith.constant 0 : index
      %13 = vector.load %arg5[%c0_12, %c0_13] : memref<1x256xf32, #tpu.memory_space<vmem>>, vector<1x256xf32>
      %14 = vector.broadcast %13 : vector<1x256xf32> to vector<128x256xf32>
      %15 = arith.mulf %12, %14 : vector<128x256xf32>
      %c0_14 = arith.constant 0 : index
      %c0_15 = arith.constant 0 : index
      %16 = vector.load %arg6[%c0_14, %c0_15] : memref<1x256xf32, #tpu.memory_space<vmem>>, vector<1x256xf32>
      %17 = vector.broadcast %16 : vector<1x256xf32> to vector<128x256xf32>
      %18 = arith.addf %15, %17 : vector<128x256xf32>
      %c0_16 = arith.constant 0 : index
      %c0_17 = arith.constant 0 : index
      %19 = vector.load %arg7[%c0_16, %c0_17] : memref<128x256xf32, #tpu.memory_space<vmem>>, vector<128x256xf32>
      %20 = arith.addf %18, %19 : vector<128x256xf32>
      %cst_18 = arith.constant 0.000000e+00 : f32
      %21 = vector.broadcast %cst_18 : f32 to vector<128x256xf32>
      %22 = arith.maximumf %20, %21 : vector<128x256xf32>
      %c0_19 = arith.constant 0 : index
      %c0_20 = arith.constant 0 : index
      %23 = vector.load %arg8[%c0_19, %c0_20] : memref<128x256xf32, #tpu.memory_space<vmem>>, vector<128x256xf32>
      tpu.vector_store %arg8[%c0_19, %c0_20], %22 {strides = array<i32>} : memref<128x256xf32, #tpu.memory_space<vmem>>, vector<128x256xf32>,
    } else {
    }
    return
  }
  func.func @transform_0(%arg0: i32, %arg1: i32, %arg2: i32) -> (i32, i32) {
    %c0_i32 = arith.constant 0 : i32
    return %arg0, %arg2 : i32, i32
  }
  func.func @transform_1(%arg0: i32, %arg1: i32, %arg2: i32) -> (i32, i32) {
    %c0_i32 = arith.constant 0 : i32
    return %arg2, %arg1 : i32, i32
  }
  func.func @transform_2(%arg0: i32, %arg1: i32, %arg2: i32) -> (i32, i32) {
    %c0_i32 = arith.constant 0 : i32
    %c0_i32_0 = arith.constant 0 : i32
    return %c0_i32, %arg1 : i32, i32
  }
  func.func @transform_3(%arg0: i32, %arg1: i32, %arg2: i32) -> (i32, i32) {
    %c0_i32 = arith.constant 0 : i32
    %c0_i32_0 = arith.constant 0 : i32
    return %c0_i32, %arg1 : i32, i32
  }
  func.func @transform_4(%arg0: i32, %arg1: i32, %arg2: i32) -> (i32, i32) {
    %c0_i32 = arith.constant 0 : i32
    return %arg0, %arg1 : i32, i32
  }
  func.func @transform_5(%arg0: i32, %arg1: i32, %arg2: i32) -> (i32, i32) {
    %c0_i32 = arith.constant 0 : i32
    return %arg0, %arg1 : i32, i32
  }
}

module attributes {stable_mosaic.version = 11 : i64} {
  func.func @_conv_bn_kernel(%arg0: i32, %arg1: i32, %arg2: i32, %arg3: memref<128x128xbf16, #tpu.memory_space<vmem>>, %arg4: memref<128x256xbf16, #tpu.memory_space<vmem>>, %arg5: memref<1x256xf32, #tpu.memory_space<vmem>>, %arg6: memref<1x256xf32, #tpu.memory_space<vmem>>, %arg7: memref<128x256xf32, #tpu.memory_space<vmem>>, %arg8: memref<128x256xf32, #tpu.memory_space<vmem>>) attributes {dimension_semantics = [#tpu.dimension_semantics<parallel>, #tpu.dimension_semantics<parallel>, #tpu.dimension_semantics<arbitrary>], iteration_bounds = array<i64: 1, 1, 1>, scalar_prefetch = 0 : i64, scratch_operands = 1 : i64, tpu.core_type = #tpu.core_type<tc>, window_params = [{transform_indices = @transform_0, window_bounds = array<i64: 128, 128>}, {transform_indices = @transform_1, window_bounds = array<i64: 128, 256>}, {transform_indices = @transform_2, window_bounds = array<i64: 1, 256>}, {transform_indices = @transform_3, window_bounds = array<i64: 1, 256>}, {transform_indices = @transform_4, window_bounds = array<i64: 128, 256>}]} {
    %c0_i32 = arith.constant 0 : i32
    %0 = arith.cmpi eq, %arg2, %c0_i32 : i32
    %1 = arith.extui %0 : i1 to i32
    %c0_i32_0 = arith.constant 0 : i32
    %2 = arith.cmpi ne, %1, %c0_i32_0 : i32
    scf.if %2 {
      %cst_10 = arith.constant 0.000000e+00 : f32
      %12 = vector.broadcast %cst_10 : f32 to vector<128x256xf32>
      %c0_11 = arith.constant 0 : index
      %c0_12 = arith.constant 0 : index
      %13 = vector.load %arg8[%c0_11, %c0_12] : memref<128x256xf32, #tpu.memory_space<vmem>>, vector<128x256xf32>
      tpu.vector_store %arg8[%c0_11, %c0_12], %12 {strides = array<i32>} : memref<128x256xf32, #tpu.memory_space<vmem>>, vector<128x256xf32>,
    } else {
    }
    %c0 = arith.constant 0 : index
    %c0_1 = arith.constant 0 : index
    %3 = vector.load %arg8[%c0, %c0_1] : memref<128x256xf32, #tpu.memory_space<vmem>>, vector<128x256xf32>
    %c0_2 = arith.constant 0 : index
    %c0_3 = arith.constant 0 : index
    %4 = vector.load %arg3[%c0_2, %c0_3] : memref<128x128xbf16, #tpu.memory_space<vmem>>, vector<128x128xbf16>
    %c0_4 = arith.constant 0 : index
    %c0_5 = arith.constant 0 : index
    %5 = vector.load %arg4[%c0_4, %c0_5] : memref<128x256xbf16, #tpu.memory_space<vmem>>, vector<128x256xbf16>
    %cst = arith.constant dense<0.000000e+00> : vector<128x256xf32>
    %6 = tpu.matmul %4, %5, %cst {dimension_numbers = #tpu.dot_dimension_numbers<[1], [0], [0], [1], [0, 0, 1, 1], [], []>} : vector<128x128xbf16>, vector<128x256xbf16>, vector<128x256xf32> -> vector<128x256xf32>
    %7 = arith.addf %3, %6 : vector<128x256xf32>
    %c0_6 = arith.constant 0 : index
    %c0_7 = arith.constant 0 : index
    %8 = vector.load %arg8[%c0_6, %c0_7] : memref<128x256xf32, #tpu.memory_space<vmem>>, vector<128x256xf32>
    tpu.vector_store %arg8[%c0_6, %c0_7], %7 {strides = array<i32>} : memref<128x256xf32, #tpu.memory_space<vmem>>, vector<128x256xf32>,
    %c0_i32_8 = arith.constant 0 : i32
    %9 = arith.cmpi eq, %arg2, %c0_i32_8 : i32
    %10 = arith.extui %9 : i1 to i32
    %c0_i32_9 = arith.constant 0 : i32
    %11 = arith.cmpi ne, %10, %c0_i32_9 : i32
    scf.if %11 {
      %c0_10 = arith.constant 0 : index
      %c0_11 = arith.constant 0 : index
      %12 = vector.load %arg8[%c0_10, %c0_11] : memref<128x256xf32, #tpu.memory_space<vmem>>, vector<128x256xf32>
      %c0_12 = arith.constant 0 : index
      %c0_13 = arith.constant 0 : index
      %13 = vector.load %arg5[%c0_12, %c0_13] : memref<1x256xf32, #tpu.memory_space<vmem>>, vector<1x256xf32>
      %14 = vector.broadcast %13 : vector<1x256xf32> to vector<128x256xf32>
      %15 = arith.mulf %12, %14 : vector<128x256xf32>
      %c0_14 = arith.constant 0 : index
      %c0_15 = arith.constant 0 : index
      %16 = vector.load %arg6[%c0_14, %c0_15] : memref<1x256xf32, #tpu.memory_space<vmem>>, vector<1x256xf32>
      %17 = vector.broadcast %16 : vector<1x256xf32> to vector<128x256xf32>
      %18 = arith.addf %15, %17 : vector<128x256xf32>
      %c0_16 = arith.constant 0 : index
      %c0_17 = arith.constant 0 : index
      %19 = vector.load %arg7[%c0_16, %c0_17] : memref<128x256xf32, #tpu.memory_space<vmem>>, vector<128x256xf32>
      tpu.vector_store %arg7[%c0_16, %c0_17], %18 {strides = array<i32>} : memref<128x256xf32, #tpu.memory_space<vmem>>, vector<128x256xf32>,
    } else {
    }
    return
  }
  func.func @transform_0(%arg0: i32, %arg1: i32, %arg2: i32) -> (i32, i32) {
    %c0_i32 = arith.constant 0 : i32
    return %arg0, %arg2 : i32, i32
  }
  func.func @transform_1(%arg0: i32, %arg1: i32, %arg2: i32) -> (i32, i32) {
    %c0_i32 = arith.constant 0 : i32
    return %arg2, %arg1 : i32, i32
  }
  func.func @transform_2(%arg0: i32, %arg1: i32, %arg2: i32) -> (i32, i32) {
    %c0_i32 = arith.constant 0 : i32
    %c0_i32_0 = arith.constant 0 : i32
    return %c0_i32, %arg1 : i32, i32
  }
  func.func @transform_3(%arg0: i32, %arg1: i32, %arg2: i32) -> (i32, i32) {
    %c0_i32 = arith.constant 0 : i32
    %c0_i32_0 = arith.constant 0 : i32
    return %c0_i32, %arg1 : i32, i32
  }
  func.func @transform_4(%arg0: i32, %arg1: i32, %arg2: i32) -> (i32, i32) {
    %c0_i32 = arith.constant 0 : i32
    return %arg0, %arg1 : i32, i32
  }
}

</mosaic_0001>

<bundles_post_ra>
// kernel: resnet_forward.19
= control target key start
LH: loop header
LB: loop body
LE: loop exit
PB: predicated region body
PF: predicated region fallthrough
CT: control target
= control target key end

     0   :  { %s655_s1 = inlined_call_operand.vmem [shape: bf16[128,128], index: 1, kind: input, shape index: {}]   ;;  %s656_s0 = inlined_call_operand.vmem [shape: bf16[128,128], index: 0, kind: input, shape index: {}]   ;;  %s657_s2 = inlined_call_operand.vmem [shape: f32[1,128], index: 2, kind: input, shape index: {}]   ;;  %s658_s3 = inlined_call_operand.vmem [shape: f32[1,128], index: 3, kind: input, shape index: {}]   ;;  %s659_s4 = inlined_call_operand.vmem [shape: f32[128,128], index: 4, kind: output, shape index: {}]  }
   0x1   :  { %v494_v0 = vld [vmem:[%s655_s1] sm:$0xff]   ;;  %v495_v1 = vld [vmem:[%s655_s1 + $0x8] sm:$0xff]   ;;  %v496_v2 = vld [vmem:[%s655_s1 + $0x10] sm:$0xff]  }
   0x2   :  { %446 = vmatprep.subr.bf16.mxu0 %v494_v0  ;;  %478 = vmatprep.subr.bf16.mxu1 %v494_v0  ;;  %v497_v3 = vld [vmem:[%s655_s1 + $0x18] sm:$0xff]   ;;  %v502_v4 = vld [vmem:[%s656_s0] sm:$0xff]   ;;  %v499_v7 = vld [vmem:[%s655_s1 + $0x28] sm:$0xff]  }
   0x3   :  { %447 = vmatpush3.bf16.msra.mxu0 %v494_v0  ;;  %486 = vmatpush3.bf16.msra.mxu1 %v494_v0  ;;  %v503_v5 = vld [vmem:[%s656_s0 + $0x20] sm:$0xff]   ;;  %v500_v8 = vld [vmem:[%s655_s1 + $0x30] sm:$0xff]   ;;  %v501_v9 = vld [vmem:[%s655_s1 + $0x38] sm:$0xff]  }
   0x4   :  { %448 = vmatprep.subr.bf16.mxu0 %v495_v1  ;;  %479 = vmatprep.subr.bf16.mxu1 %v495_v1  ;;  %v498_v6 = vld [vmem:[%s655_s1 + $0x20] sm:$0xff]   ;;  %v504_v10 = vld [vmem:[%s656_s0 + $0x8] sm:$0xff]   ;;  %v506_v12 = vld [vmem:[%s656_s0 + $0x10] sm:$0xff]  }
   0x5   :  { %462 = vmatprep.mubr.bf16.mxu0 %v502_v4  ;;  %470 = vmatprep.mubr.bf16.mxu1 %v503_v5  ;;  %v505_v11 = vld [vmem:[%s656_s0 + $0x28] sm:$0xff]   ;;  %v507_v13 = vld [vmem:[%s656_s0 + $0x30] sm:$0xff]   ;;  %v508_v14 = vld [vmem:[%s656_s0 + $0x18] sm:$0xff]  }
   0x6   :  { %v509_v15 = vld [vmem:[%s656_s0 + $0x38] sm:$0xff]   ;;  %v428_v16 = vld [vmem:[%s657_s2] ss:$0 sm:$0xff] }
   0x7   :  { %449 = vmatpush3.bf16.msra.mxu0 %v495_v1  ;;  %487 = vmatpush3.bf16.msra.mxu1 %v495_v1  ;;  %v589_v18 = vld [vmem:[%s658_s3] ss:$0 sm:$0xff] }
   0x8   :  { %450 = vmatprep.subr.bf16.mxu0 %v496_v2  ;;  %480 = vmatprep.subr.bf16.mxu1 %v496_v2 }
   0xb   :  { %451 = vmatpush3.bf16.msra.mxu0 %v496_v2  ;;  %488 = vmatpush3.bf16.msra.mxu1 %v496_v2 }
   0xc   :  { %452 = vmatprep.subr.bf16.mxu0 %v497_v3  ;;  %481 = vmatprep.subr.bf16.mxu1 %v497_v3 }
   0xf   :  { %453 = vmatpush3.bf16.msra.mxu0 %v497_v3  ;;  %489 = vmatpush3.bf16.msra.mxu1 %v497_v3 }
  0x10   :  { %454 = vmatprep.subr.bf16.mxu0 %v498_v6  ;;  %482 = vmatprep.subr.bf16.mxu1 %v498_v6 }
  0x13   :  { %455 = vmatpush3.bf16.msra.mxu0 %v498_v6  ;;  %490 = vmatpush3.bf16.msra.mxu1 %v498_v6 }
  0x14   :  { %456 = vmatprep.subr.bf16.mxu0 %v499_v7  ;;  %483 = vmatprep.subr.bf16.mxu1 %v499_v7 }
  0x17   :  { %457 = vmatpush3.bf16.msra.mxu0 %v499_v7  ;;  %491 = vmatpush3.bf16.msra.mxu1 %v499_v7 }
  0x18   :  { %458 = vmatprep.subr.bf16.mxu0 %v500_v8  ;;  %484 = vmatprep.subr.bf16.mxu1 %v500_v8 }
  0x1b   :  { %459 = vmatpush3.bf16.msra.mxu0 %v500_v8  ;;  %492 = vmatpush3.bf16.msra.mxu1 %v500_v8 }
  0x1c   :  { %460 = vmatprep.subr.bf16.mxu0 %v501_v9  ;;  %485 = vmatprep.subr.bf16.mxu1 %v501_v9 }
  0x1f   :  { %461 = vmatpush3.bf16.msra.mxu0 %v501_v9  ;;  %493 = vmatpush3.bf16.msra.mxu1 %v501_v9 }
  0x22   :  { %463 = vmatmul.mubr.bf16.vlgmr.msra.gmra.mrb[0].mxu0 %v504_v10  ;;  %471 = vmatmul.mubr.bf16.vlgmr.msra.gmra.mrb[0].mxu1 %v505_v11 }
  0x23   :  { %466 = vmatprep.mubr.bf16.mxu0 %v506_v12  ;;  %474 = vmatprep.mubr.bf16.mxu1 %v507_v13 }
  0x2a   :  { %467 = vmatmul.mubr.bf16.gmra.mrb[4].mxu0 %v508_v14  ;;  %475 = vmatmul.mubr.bf16.gmra.mrb[4].mxu1 %v509_v15 }
  0xf5   :  { %v464_v17 = vpop.f32.mrb[0].mxu0  ;;  %v472_v19 = vpop.f32.mrb[0].mxu1 }
  0xf6   :  { %v339_v20 = vmul.f32 %v464_v17, %v428_v16  ;;  %v347_v21 = vmul.f32 %v472_v19, %v428_v16  ;;  %v216_v22 = vpop.f32.mrb[1].mxu0  ;;  %v248_v23 = vpop.f32.mrb[1].mxu1 }
  0xf7   :  { %v337_v24 = vmul.f32 %v428_v16, %v216_v22  ;;  %v345_v25 = vmul.f32 %v428_v16, %v248_v23  ;;  %v465_v26 = vpop.f32.mrb[2].mxu0  ;;  %v473_v27 = vpop.f32.mrb[2].mxu1 }
  0xf8   :  { %v362_v28 = vadd.f32 %v589_v18, %v339_v20  ;;  %v370_v29 = vadd.f32 %v589_v18, %v347_v21  ;;  %v340_v30 = vmul.f32 %v465_v26, %v428_v16  ;;  %v348_v31 = vmul.f32 %v473_v27, %v428_v16  ;;  %v219_v32 = vpop.f32.mrb[3].mxu0  ;;  %v251_v33 = vpop.f32.mrb[3].mxu1 }
  0xf9   :  { %v360_v34 = vadd.f32 %v589_v18, %v337_v24  ;;  %v368_v35 = vadd.f32 %v589_v18, %v345_v25  ;;  %v338_v36 = vmul.f32 %v428_v16, %v219_v32  ;;  %v346_v37 = vmul.f32 %v428_v16, %v251_v33 }
  0xfa   :  { %v378_v38 = vmax.f32 %v362_v28, 0.0  ;;  %v386_v39 = vmax.f32 %v370_v29, 0.0  ;;  %v363_v40 = vadd.f32 %v589_v18, %v340_v30  ;;  %v371_v41 = vadd.f32 %v589_v18, %v348_v31 }
  0xfb   :  { %v376_v42 = vmax.f32 %v360_v34, 0.0  ;;  %v384_v43 = vmax.f32 %v368_v35, 0.0  ;;  %v361_v44 = vadd.f32 %v589_v18, %v338_v36  ;;  %v369_v45 = vadd.f32 %v589_v18, %v346_v37 }
  0xfc   :  { %394 = vst [vmem:[%s659_s4 + $0x10] sm:$0xff] %v378_v38  ;;  %402 = vst [vmem:[%s659_s4 + $0x50] sm:$0xff] %v386_v39  ;;  %v379_v46 = vmax.f32 %v363_v40, 0.0  ;;  %v387_v47 = vmax.f32 %v371_v41, 0.0 }
  0xfd   :  { %392 = vst [vmem:[%s659_s4] sm:$0xff] %v376_v42  ;;  %400 = vst [vmem:[%s659_s4 + $0x40] sm:$0xff] %v384_v43  ;;  %v377_v48 = vmax.f32 %v361_v44, 0.0  ;;  %v385_v49 = vmax.f32 %v369_v45, 0.0  ;;  %v468_v50 = vpop.f32.mrb[4].mxu0  ;;  %v476_v51 = vpop.f32.mrb[4].mxu1 }
  0xfe   :  { %395 = vst [vmem:[%s659_s4 + $0x18] sm:$0xff] %v379_v46  ;;  %403 = vst [vmem:[%s659_s4 + $0x58] sm:$0xff] %v387_v47  ;;  %v343_v52 = vmul.f32 %v468_v50, %v428_v16  ;;  %v351_v53 = vmul.f32 %v476_v51, %v428_v16  ;;  %v232_v54 = vpop.f32.mrb[5].mxu0  ;;  %v264_v55 = vpop.f32.mrb[5].mxu1 }
  0xff   :  { %393 = vst [vmem:[%s659_s4 + $0x8] sm:$0xff] %v377_v48  ;;  %401 = vst [vmem:[%s659_s4 + $0x48] sm:$0xff] %v385_v49  ;;  %v341_v56 = vmul.f32 %v428_v16, %v232_v54  ;;  %v349_v57 = vmul.f32 %v428_v16, %v264_v55  ;;  %v469_v58 = vpop.f32.mrb[6].mxu0  ;;  %v477_v59 = vpop.f32.mrb[6].mxu1 }
 0x100   :  { %v366_v60 = vadd.f32 %v589_v18, %v343_v52  ;;  %v374_v61 = vadd.f32 %v589_v18, %v351_v53  ;;  %v344_v62 = vmul.f32 %v469_v58, %v428_v16  ;;  %v352_v63 = vmul.f32 %v477_v59, %v428_v16  ;;  %v235_v0 = vpop.f32.mrb[7].mxu0  ;;  %v267_v1 = vpop.f32.mrb[7].mxu1 }
 0x101   :  { %v364_v2 = vadd.f32 %v589_v18, %v341_v56  ;;  %v372_v3 = vadd.f32 %v589_v18, %v349_v57  ;;  %v342_v4 = vmul.f32 %v428_v16, %v235_v0  ;;  %v350_v5 = vmul.f32 %v428_v16, %v267_v1 }
 0x102   :  { %v382_v6 = vmax.f32 %v366_v60, 0.0  ;;  %v390_v7 = vmax.f32 %v374_v61, 0.0  ;;  %v367_v8 = vadd.f32 %v589_v18, %v344_v62  ;;  %v375_v9 = vadd.f32 %v589_v18, %v352_v63 }
 0x103   :  { %v380_v10 = vmax.f32 %v364_v2, 0.0  ;;  %v388_v11 = vmax.f32 %v372_v3, 0.0  ;;  %v365_v12 = vadd.f32 %v589_v18, %v342_v4  ;;  %v373_v13 = vadd.f32 %v589_v18, %v350_v5 }
 0x104   :  { %398 = vst [vmem:[%s659_s4 + $0x30] sm:$0xff] %v382_v6  ;;  %406 = vst [vmem:[%s659_s4 + $0x70] sm:$0xff] %v390_v7  ;;  %v383_v14 = vmax.f32 %v367_v8, 0.0  ;;  %v391_v15 = vmax.f32 %v375_v9, 0.0 }
 0x105   :  { %396 = vst [vmem:[%s659_s4 + $0x20] sm:$0xff] %v380_v10  ;;  %404 = vst [vmem:[%s659_s4 + $0x60] sm:$0xff] %v388_v11  ;;  %v381_v16 = vmax.f32 %v365_v12, 0.0  ;;  %v389_v17 = vmax.f32 %v373_v13, 0.0 }
 0x106   :  { %399 = vst [vmem:[%s659_s4 + $0x38] sm:$0xff] %v383_v14  ;;  %407 = vst [vmem:[%s659_s4 + $0x78] sm:$0xff] %v391_v15 }
 0x107   :  { %397 = vst [vmem:[%s659_s4 + $0x28] sm:$0xff] %v381_v16  ;;  %405 = vst [vmem:[%s659_s4 + $0x68] sm:$0xff] %v389_v17 }

// kernel: resnet_forward.17
= control target key start
LH: loop header
LB: loop body
LE: loop exit
PB: predicated region body
PF: predicated region fallthrough
CT: control target
= control target key end

     0   :  { %v1647_v0 = vmov 0   ;;  %s2275_s1 = inlined_call_operand.vmem [shape: bf16[256,128], index: 1, kind: input, shape index: {}]   ;;  %s2276_s0 = inlined_call_operand.vmem [shape: bf16[512,256], index: 0, kind: input, shape index: {}]   ;;  %s2277_s2 = inlined_call_operand.vmem [shape: f32[1,128], index: 2, kind: input, shape index: {}]   ;;  %s2278_s3 = inlined_call_operand.vmem [shape: f32[1,128], index: 3, kind: input, shape index: {}]   ;;  %s2279_s4 = inlined_call_operand.vmem [shape: f32[512,128], index: 4, kind: output, shape index: {}]  }
   0x1   :  { %662 = vmatprep.subr.bf16.mxu0 %v1647_v0  ;;  %1502 = vmatprep.subr.bf16.mxu1 %v1647_v0  ;;  %v1535_v1 = vld [vmem:[%s2275_s1] sm:$0xff]   ;;  %v1536_v2 = vld [vmem:[%s2275_s1 + $0x8] sm:$0xff]   ;;  %v1537_v3 = vld [vmem:[%s2275_s1 + $0x10] sm:$0xff]  }
   0x2   :  { %663 = vmatpush1.bf16.msra.mxu0 %v1535_v1  ;;  %1518 = vmatpush1.bf16.msra.mxu1 %v1535_v1  ;;  %v1538_v4 = vld [vmem:[%s2275_s1 + $0x18] sm:$0xff]   ;;  %v1539_v5 = vld [vmem:[%s2275_s1 + $0x20] sm:$0xff]   ;;  %v1540_v7 = vld [vmem:[%s2275_s1 + $0x28] sm:$0xff]  }
   0x3   :  { %664 = vmatprep.subr.bf16.mxu0 %v1647_v0  ;;  %1503 = vmatprep.subr.bf16.mxu1 %v1647_v0  ;;  %v1553_v6 = vld [vmem:[%s2276_s0 + $0x4] ss:$8 sps:$4 sm:$0xff]   ;;  %v1541_v9 = vld [vmem:[%s2275_s1 + $0x30] sm:$0xff]   ;;  %v1542_v10 = vld [vmem:[%s2275_s1 + $0x38] sm:$0xff]  }
   0x4   :  { %v1556_v8 = vld [vmem:[%s2276_s0 + $0x104] ss:$8 sps:$4 sm:$0xff]   ;;  %694 = vmatprep.mubr.bf16.mxu0 %v1553_v6  ;;  %v1545_v13 = vld [vmem:[%s2275_s1 + $0x50] sm:$0xff]   ;;  %v1546_v14 = vld [vmem:[%s2275_s1 + $0x58] sm:$0xff]  }
   0x5   :  { %822 = vmatprep.mubr.bf16.mxu1 %v1556_v8  ;;  %v1543_v11 = vld [vmem:[%s2275_s1 + $0x40] sm:$0xff]   ;;  %v1544_v12 = vld [vmem:[%s2275_s1 + $0x48] sm:$0xff]   ;;  %v1549_v17 = vld [vmem:[%s2275_s1 + $0x70] sm:$0xff]  }
   0x6   :  { %665 = vmatpush1.bf16.msra.mxu0 %v1536_v2  ;;  %1519 = vmatpush1.bf16.msra.mxu1 %v1536_v2  ;;  %v1547_v15 = vld [vmem:[%s2275_s1 + $0x60] sm:$0xff]   ;;  %v1548_v16 = vld [vmem:[%s2275_s1 + $0x68] sm:$0xff]   ;;  %v1550_v18 = vld [vmem:[%s2275_s1 + $0x78] sm:$0xff]  }
   0x7   :  { %666 = vmatprep.subr.bf16.mxu0 %v1647_v0  ;;  %1504 = vmatprep.subr.bf16.mxu1 %v1647_v0  ;;  %v1551_v19 = vld [vmem:[%s2276_s0] ss:$8 sps:$4 sm:$0xff]   ;;  %v1557_v21 = vld [vmem:[%s2276_s0 + $0x14] ss:$8 sps:$4 sm:$0xff]   ;;  %v1561_v23 = vld [vmem:[%s2276_s0 + $0x10] ss:$8 sps:$4 sm:$0xff]  }
   0x8   :  { %v1554_v20 = vld [vmem:[%s2276_s0 + $0x100] ss:$8 sps:$4 sm:$0xff]   ;;  %v1559_v22 = vld [vmem:[%s2276_s0 + $0x114] ss:$8 sps:$4 sm:$0xff]   ;;  %v1562_v24 = vld [vmem:[%s2276_s0 + $0x110] ss:$8 sps:$4 sm:$0xff]  }
   0x9   :  { %v1563_v25 = vld [vmem:[%s2276_s0 + $0x24] ss:$8 sps:$4 sm:$0xff]   ;;  %v1567_v27 = vld [vmem:[%s2276_s0 + $0x20] ss:$8 sps:$4 sm:$0xff]   ;;  %v1569_v29 = vld [vmem:[%s2276_s0 + $0x34] ss:$8 sps:$4 sm:$0xff]  }
   0xa   :  { %667 = vmatpush1.bf16.msra.mxu0 %v1537_v3  ;;  %1520 = vmatpush1.bf16.msra.mxu1 %v1537_v3  ;;  %v1565_v26 = vld [vmem:[%s2276_s0 + $0x124] ss:$8 sps:$4 sm:$0xff]   ;;  %v1568_v28 = vld [vmem:[%s2276_s0 + $0x120] ss:$8 sps:$4 sm:$0xff]   ;;  %v1571_v30 = vld [vmem:[%s2276_s0 + $0x134] ss:$8 sps:$4 sm:$0xff]  }
   0xb   :  { %668 = vmatprep.subr.bf16.mxu0 %v1647_v0  ;;  %1505 = vmatprep.subr.bf16.mxu1 %v1647_v0  ;;  %v1573_v31 = vld [vmem:[%s2276_s0 + $0x30] ss:$8 sps:$4 sm:$0xff]   ;;  %v1575_v33 = vld [vmem:[%s2276_s0 + $0x44] ss:$8 sps:$4 sm:$0xff]   ;;  %v1579_v35 = vld [vmem:[%s2276_s0 + $0x40] ss:$8 sps:$4 sm:$0xff]  }
   0xc   :  { %v1574_v32 = vld [vmem:[%s2276_s0 + $0x130] ss:$8 sps:$4 sm:$0xff]   ;;  %v1577_v34 = vld [vmem:[%s2276_s0 + $0x144] ss:$8 sps:$4 sm:$0xff]   ;;  %v1580_v36 = vld [vmem:[%s2276_s0 + $0x140] ss:$8 sps:$4 sm:$0xff]  }
   0xd   :  { %v1581_v37 = vld [vmem:[%s2276_s0 + $0x54] ss:$8 sps:$4 sm:$0xff]   ;;  %v1585_v39 = vld [vmem:[%s2276_s0 + $0x50] ss:$8 sps:$4 sm:$0xff]   ;;  %v1587_v41 = vld [vmem:[%s2276_s0 + $0x64] ss:$8 sps:$4 sm:$0xff]  }
   0xe   :  { %669 = vmatpush1.bf16.msra.mxu0 %v1538_v4  ;;  %1521 = vmatpush1.bf16.msra.mxu1 %v1538_v4  ;;  %v1583_v38 = vld [vmem:[%s2276_s0 + $0x154] ss:$8 sps:$4 sm:$0xff]   ;;  %v1586_v40 = vld [vmem:[%s2276_s0 + $0x150] ss:$8 sps:$4 sm:$0xff]   ;;  %v1589_v42 = vld [vmem:[%s2276_s0 + $0x164] ss:$8 sps:$4 sm:$0xff]  }
   0xf   :  { %670 = vmatprep.subr.bf16.mxu0 %v1647_v0  ;;  %1506 = vmatprep.subr.bf16.mxu1 %v1647_v0  ;;  %v1591_v43 = vld [vmem:[%s2276_s0 + $0x60] ss:$8 sps:$4 sm:$0xff]   ;;  %v1593_v45 = vld [vmem:[%s2276_s0 + $0x74] ss:$8 sps:$4 sm:$0xff]   ;;  %v1597_v47 = vld [vmem:[%s2276_s0 + $0x70] ss:$8 sps:$4 sm:$0xff]  }
  0x10   :  { %v1592_v44 = vld [vmem:[%s2276_s0 + $0x160] ss:$8 sps:$4 sm:$0xff]   ;;  %v1595_v46 = vld [vmem:[%s2276_s0 + $0x174] ss:$8 sps:$4 sm:$0xff]   ;;  %v1598_v48 = vld [vmem:[%s2276_s0 + $0x170] ss:$8 sps:$4 sm:$0xff]  }
  0x11   :  { %v1599_v49 = vld [vmem:[%s2276_s0 + $0x84] ss:$8 sps:$4 sm:$0xff]   ;;  %v1603_v51 = vld [vmem:[%s2276_s0 + $0x80] ss:$8 sps:$4 sm:$0xff]   ;;  %v1605_v53 = vld [vmem:[%s2276_s0 + $0x94] ss:$8 sps:$4 sm:$0xff]  }
  0x12   :  { %671 = vmatpush1.bf16.msra.mxu0 %v1539_v5  ;;  %1522 = vmatpush1.bf16.msra.mxu1 %v1539_v5  ;;  %v1601_v50 = vld [vmem:[%s2276_s0 + $0x184] ss:$8 sps:$4 sm:$0xff]   ;;  %v1604_v52 = vld [vmem:[%s2276_s0 + $0x180] ss:$8 sps:$4 sm:$0xff]   ;;  %v1607_v54 = vld [vmem:[%s2276_s0 + $0x194] ss:$8 sps:$4 sm:$0xff]  }
  0x13   :  { %672 = vmatprep.subr.bf16.mxu0 %v1647_v0  ;;  %1507 = vmatprep.subr.bf16.mxu1 %v1647_v0  ;;  %v1609_v55 = vld [vmem:[%s2276_s0 + $0x90] ss:$8 sps:$4 sm:$0xff]   ;;  %v1611_v57 = vld [vmem:[%s2276_s0 + $0xa4] ss:$8 sps:$4 sm:$0xff]   ;;  %v1615_v59 = vld [vmem:[%s2276_s0 + $0xa0] ss:$8 sps:$4 sm:$0xff]  }
  0x14   :  { %v1610_v56 = vld [vmem:[%s2276_s0 + $0x190] ss:$8 sps:$4 sm:$0xff]   ;;  %v1613_v58 = vld [vmem:[%s2276_s0 + $0x1a4] ss:$8 sps:$4 sm:$0xff]   ;;  %v1616_v60 = vld [vmem:[%s2276_s0 + $0x1a0] ss:$8 sps:$4 sm:$0xff]  }
  0x15   :  { %v1617_v61 = vld [vmem:[%s2276_s0 + $0xb4] ss:$8 sps:$4 sm:$0xff]   ;;  %v1621_v63 = vld [vmem:[%s2276_s0 + $0xb0] ss:$8 sps:$4 sm:$0xff]   ;;  %v1623_v1 = vld [vmem:[%s2276_s0 + $0xc4] ss:$8 sps:$4 sm:$0xff]  }
  0x16   :  { %673 = vmatpush1.bf16.msra.mxu0 %v1540_v7  ;;  %1523 = vmatpush1.bf16.msra.mxu1 %v1540_v7  ;;  %v1619_v62 = vld [vmem:[%s2276_s0 + $0x1b4] ss:$8 sps:$4 sm:$0xff]   ;;  %v1625_v2 = vld [vmem:[%s2276_s0 + $0x1c4] ss:$8 sps:$4 sm:$0xff]   ;;  %v1627_v3 = vld [vmem:[%s2276_s0 + $0xc0] ss:$8 sps:$4 sm:$0xff]  }
  0x17   :  { %674 = vmatprep.subr.bf16.mxu0 %v1647_v0  ;;  %1508 = vmatprep.subr.bf16.mxu1 %v1647_v0  ;;  %v1628_v4 = vld [vmem:[%s2276_s0 + $0x1c0] ss:$8 sps:$4 sm:$0xff]   ;;  %v1629_v5 = vld [vmem:[%s2276_s0 + $0xd4] ss:$8 sps:$4 sm:$0xff]   ;;  %v1633_v7 = vld [vmem:[%s2276_s0 + $0xd0] ss:$8 sps:$4 sm:$0xff]  }
  0x18   :  { %v1631_v6 = vld [vmem:[%s2276_s0 + $0x1d4] ss:$8 sps:$4 sm:$0xff]   ;;  %v1634_v8 = vld [vmem:[%s2276_s0 + $0x1d0] ss:$8 sps:$4 sm:$0xff]  }
  0x1a   :  { %675 = vmatpush1.bf16.msra.mxu0 %v1541_v9  ;;  %1524 = vmatpush1.bf16.msra.mxu1 %v1541_v9  ;;  %v1635_v9 = vld [vmem:[%s2276_s0 + $0xe4] ss:$8 sps:$4 sm:$0xff]  }
  0x1b   :  { %676 = vmatprep.subr.bf16.mxu0 %v1647_v0  ;;  %1509 = vmatprep.subr.bf16.mxu1 %v1647_v0 }
  0x1e   :  { %677 = vmatpush1.bf16.msra.mxu0 %v1542_v10  ;;  %1525 = vmatpush1.bf16.msra.mxu1 %v1542_v10  ;;  %v1637_v10 = vld [vmem:[%s2276_s0 + $0x1e4] ss:$8 sps:$4 sm:$0xff]  }
  0x1f   :  { %678 = vmatprep.subr.bf16.mxu0 %v1647_v0  ;;  %1510 = vmatprep.subr.bf16.mxu1 %v1647_v0 }
  0x22   :  { %679 = vmatpush1.bf16.msra.mxu0 %v1543_v11  ;;  %1526 = vmatpush1.bf16.msra.mxu1 %v1543_v11  ;;  %v1639_v11 = vld [vmem:[%s2276_s0 + $0xe0] ss:$8 sps:$4 sm:$0xff]  }
  0x23   :  { %680 = vmatprep.subr.bf16.mxu0 %v1647_v0  ;;  %1511 = vmatprep.subr.bf16.mxu1 %v1647_v0 }
  0x26   :  { %681 = vmatpush1.bf16.msra.mxu0 %v1544_v12  ;;  %1527 = vmatpush1.bf16.msra.mxu1 %v1544_v12  ;;  %v1640_v12 = vld [vmem:[%s2276_s0 + $0x1e0] ss:$8 sps:$4 sm:$0xff]  }
  0x27   :  { %682 = vmatprep.subr.bf16.mxu0 %v1647_v0  ;;  %1512 = vmatprep.subr.bf16.mxu1 %v1647_v0 }
  0x2a   :  { %683 = vmatpush1.bf16.msra.mxu0 %v1545_v13  ;;  %1528 = vmatpush1.bf16.msra.mxu1 %v1545_v13  ;;  %v1641_v13 = vld [vmem:[%s2276_s0 + $0xf4] ss:$8 sps:$4 sm:$0xff]  }
  0x2b   :  { %684 = vmatprep.subr.bf16.mxu0 %v1647_v0  ;;  %1513 = vmatprep.subr.bf16.mxu1 %v1647_v0 }
  0x2e   :  { %685 = vmatpush1.bf16.msra.mxu0 %v1546_v14  ;;  %1529 = vmatpush1.bf16.msra.mxu1 %v1546_v14  ;;  %v1643_v14 = vld [vmem:[%s2276_s0 + $0x1f4] ss:$8 sps:$4 sm:$0xff]  }
  0x2f   :  { %686 = vmatprep.subr.bf16.mxu0 %v1647_v0  ;;  %1514 = vmatprep.subr.bf16.mxu1 %v1647_v0 }
  0x32   :  { %687 = vmatpush1.bf16.msra.mxu0 %v1547_v15  ;;  %1530 = vmatpush1.bf16.msra.mxu1 %v1547_v15  ;;  %v1645_v15 = vld [vmem:[%s2276_s0 + $0xf0] ss:$8 sps:$4 sm:$0xff]  }
  0x33   :  { %688 = vmatprep.subr.bf16.mxu0 %v1647_v0  ;;  %1515 = vmatprep.subr.bf16.mxu1 %v1647_v0 }
  0x36   :  { %689 = vmatpush1.bf16.msra.mxu0 %v1548_v16  ;;  %1531 = vmatpush1.bf16.msra.mxu1 %v1548_v16  ;;  %v1646_v16 = vld [vmem:[%s2276_s0 + $0x1f0] ss:$8 sps:$4 sm:$0xff]  }
  0x37   :  { %690 = vmatprep.subr.bf16.mxu0 %v1647_v0  ;;  %1516 = vmatprep.subr.bf16.mxu1 %v1647_v0 }
  0x3a   :  { %691 = vmatpush1.bf16.msra.mxu0 %v1549_v17  ;;  %1532 = vmatpush1.bf16.msra.mxu1 %v1549_v17  ;;  %v1948_v17 = vld [vmem:[%s2277_s2] ss:$0 sm:$0xff] }
  0x3b   :  { %692 = vmatprep.subr.bf16.mxu0 %v1647_v0  ;;  %1517 = vmatprep.subr.bf16.mxu1 %v1647_v0  ;;  %v1622_v0 = vld [vmem:[%s2276_s0 + $0x1b0] ss:$8 sps:$4 sm:$0xff]  }
  0x3e   :  { %693 = vmatpush1.bf16.msra.mxu0 %v1550_v18  ;;  %1533 = vmatpush1.bf16.msra.mxu1 %v1550_v18 }
  0x41   :  { %695 = vmatmul.mubr.bf16.vlgmr.msra.gmra.mrb[0].mxu0 %v1551_v19  ;;  %823 = vmatmul.mubr.bf16.vlgmr.msra.gmra.mrb[0].mxu1 %v1554_v20  ;;  %v1953_v19 = vld [vmem:[%s2278_s3] ss:$0 sm:$0xff] }
  0x42   :  { %702 = vmatprep.mubr.bf16.mxu0 %v1557_v21  ;;  %830 = vmatprep.mubr.bf16.mxu1 %v1559_v22 }
  0x49   :  { %703 = vmatmul.mubr.bf16.gmra.mrb[4].mxu0 %v1561_v23  ;;  %831 = vmatmul.mubr.bf16.gmra.mrb[4].mxu1 %v1562_v24 }
  0x4a   :  { %710 = vmatprep.mubr.bf16.mxu0 %v1563_v25  ;;  %838 = vmatprep.mubr.bf16.mxu1 %v1565_v26 }
  0x51   :  { %711 = vmatmul.mubr.bf16.gmra.mrb[8].mxu0 %v1567_v27  ;;  %839 = vmatmul.mubr.bf16.gmra.mrb[8].mxu1 %v1568_v28 }
  0x52   :  { %718 = vmatprep.mubr.bf16.mxu0 %v1569_v29  ;;  %846 = vmatprep.mubr.bf16.mxu1 %v1571_v30 }
  0x59   :  { %719 = vmatmul.mubr.bf16.gmra.mrb[12].mxu0 %v1573_v31  ;;  %847 = vmatmul.mubr.bf16.gmra.mrb[12].mxu1 %v1574_v32 }
  0x5a   :  { %726 = vmatprep.mubr.bf16.mxu0 %v1575_v33  ;;  %854 = vmatprep.mubr.bf16.mxu1 %v1577_v34 }
  0x61   :  { %727 = vmatmul.mubr.bf16.gmra.mrb[16].mxu0 %v1579_v35  ;;  %855 = vmatmul.mubr.bf16.gmra.mrb[16].mxu1 %v1580_v36 }
  0x62   :  { %734 = vmatprep.mubr.bf16.mxu0 %v1581_v37  ;;  %862 = vmatprep.mubr.bf16.mxu1 %v1583_v38 }
  0x69   :  { %735 = vmatmul.mubr.bf16.gmra.mrb[20].mxu0 %v1585_v39  ;;  %863 = vmatmul.mubr.bf16.gmra.mrb[20].mxu1 %v1586_v40 }
  0x6a   :  { %742 = vmatprep.mubr.bf16.mxu0 %v1587_v41  ;;  %870 = vmatprep.mubr.bf16.mxu1 %v1589_v42 }
  0x71   :  { %743 = vmatmul.mubr.bf16.gmra.mrb[24].mxu0 %v1591_v43  ;;  %871 = vmatmul.mubr.bf16.gmra.mrb[24].mxu1 %v1592_v44 }
  0x72   :  { %750 = vmatprep.mubr.bf16.mxu0 %v1593_v45  ;;  %878 = vmatprep.mubr.bf16.mxu1 %v1595_v46 }
  0x79   :  { %751 = vmatmul.mubr.bf16.gmra.mrb[28].mxu0 %v1597_v47  ;;  %879 = vmatmul.mubr.bf16.gmra.mrb[28].mxu1 %v1598_v48 }
  0x7a   :  { %758 = vmatprep.mubr.bf16.mxu0 %v1599_v49  ;;  %886 = vmatprep.mubr.bf16.mxu1 %v1601_v50 }
  0x81   :  { %759 = vmatmul.mubr.bf16.gmra.mrb[32].mxu0 %v1603_v51  ;;  %887 = vmatmul.mubr.bf16.gmra.mrb[32].mxu1 %v1604_v52 }
  0x82   :  { %766 = vmatprep.mubr.bf16.mxu0 %v1605_v53  ;;  %894 = vmatprep.mubr.bf16.mxu1 %v1607_v54 }
  0x89   :  { %767 = vmatmul.mubr.bf16.gmra.mrb[36].mxu0 %v1609_v55  ;;  %895 = vmatmul.mubr.bf16.gmra.mrb[36].mxu1 %v1610_v56 }
  0x8a   :  { %774 = vmatprep.mubr.bf16.mxu0 %v1611_v57  ;;  %902 = vmatprep.mubr.bf16.mxu1 %v1613_v58 }
  0x91   :  { %775 = vmatmul.mubr.bf16.gmra.mrb[40].mxu0 %v1615_v59  ;;  %903 = vmatmul.mubr.bf16.gmra.mrb[40].mxu1 %v1616_v60 }
  0x92   :  { %782 = vmatprep.mubr.bf16.mxu0 %v1617_v61  ;;  %910 = vmatprep.mubr.bf16.mxu1 %v1619_v62 }
  0x99   :  { %783 = vmatmul.mubr.bf16.gmra.mrb[44].mxu0 %v1621_v63  ;;  %911 = vmatmul.mubr.bf16.gmra.mrb[44].mxu1 %v1622_v0 }
  0x9a   :  { %790 = vmatprep.mubr.bf16.mxu0 %v1623_v1  ;;  %918 = vmatprep.mubr.bf16.mxu1 %v1625_v2 }
  0xa1   :  { %791 = vmatmul.mubr.bf16.gmra.mrb[48].mxu0 %v1627_v3  ;;  %919 = vmatmul.mubr.bf16.gmra.mrb[48].mxu1 %v1628_v4 }
  0xa2   :  { %798 = vmatprep.mubr.bf16.mxu0 %v1629_v5  ;;  %926 = vmatprep.mubr.bf16.mxu1 %v1631_v6 }
  0xa9   :  { %799 = vmatmul.mubr.bf16.gmra.mrb[52].mxu0 %v1633_v7  ;;  %927 = vmatmul.mubr.bf16.gmra.mrb[52].mxu1 %v1634_v8 }
  0xaa   :  { %806 = vmatprep.mubr.bf16.mxu0 %v1635_v9  ;;  %934 = vmatprep.mubr.bf16.mxu1 %v1637_v10 }
  0xb1   :  { %807 = vmatmul.mubr.bf16.gmra.mrb[56].mxu0 %v1639_v11  ;;  %935 = vmatmul.mubr.bf16.gmra.mrb[56].mxu1 %v1640_v12 }
  0xb2   :  { %814 = vmatprep.mubr.bf16.mxu0 %v1641_v13  ;;  %942 = vmatprep.mubr.bf16.mxu1 %v1643_v14 }
  0xb9   :  { %815 = vmatmul.mubr.bf16.gmra.mrb[60].mxu0 %v1645_v15  ;;  %943 = vmatmul.mubr.bf16.gmra.mrb[60].mxu1 %v1646_v16 }
 0x114   :  { %v696_v18 = vpop.f32.mrb[0].mxu0  ;;  %v824_v20 = vpop.f32.mrb[0].mxu1 }
 0x115   :  { %v1153_v21 = vmul.f32 %v1948_v17, %v696_v18  ;;  %v1185_v22 = vmul.f32 %v1948_v17, %v824_v20  ;;  %v698_v23 = vpop.f32.mrb[1].mxu0  ;;  %v826_v24 = vpop.f32.mrb[1].mxu1 }
 0x116   :  { %v699_v25 = vpop.f32.mrb[2].mxu0  ;;  %v827_v26 = vpop.f32.mrb[2].mxu1 }
 0x117   :  { %v1224_v27 = vadd.f32 %v1953_v19, %v1153_v21  ;;  %v1256_v28 = vadd.f32 %v1953_v19, %v1185_v22  ;;  %v1154_v29 = vmul.f32 %v1948_v17, %v699_v25  ;;  %v1186_v30 = vmul.f32 %v1948_v17, %v827_v26  ;;  %v701_v31 = vpop.f32.mrb[3].mxu0  ;;  %v829_v32 = vpop.f32.mrb[3].mxu1 }
 0x119   :  { %v1288_v33 = vmax.f32 %v1224_v27, 0.0  ;;  %v1320_v34 = vmax.f32 %v1256_v28, 0.0  ;;  %v1225_v35 = vadd.f32 %v1953_v19, %v1154_v29  ;;  %v1257_v36 = vadd.f32 %v1953_v19, %v1186_v30 }
 0x11b   :  { %1352 = vst [vmem:[%s2279_s4] sm:$0xff] %v1288_v33  ;;  %1384 = vst [vmem:[%s2279_s4 + $0x100] sm:$0xff] %v1320_v34  ;;  %v1289_v37 = vmax.f32 %v1225_v35, 0.0  ;;  %v1321_v38 = vmax.f32 %v1257_v36, 0.0 }
 0x11c   :  { %v704_v39 = vpop.f32.mrb[4].mxu0  ;;  %v832_v40 = vpop.f32.mrb[4].mxu1 }
 0x11d   :  { %1353 = vst [vmem:[%s2279_s4 + $0x8] sm:$0xff] %v1289_v37  ;;  %1385 = vst [vmem:[%s2279_s4 + $0x108] sm:$0xff] %v1321_v38  ;;  %v1155_v41 = vmul.f32 %v1948_v17, %v704_v39  ;;  %v1187_v42 = vmul.f32 %v1948_v17, %v832_v40  ;;  %v706_v43 = vpop.f32.mrb[5].mxu0  ;;  %v834_v44 = vpop.f32.mrb[5].mxu1 }
 0x11e   :  { %v707_v45 = vpop.f32.mrb[6].mxu0  ;;  %v835_v46 = vpop.f32.mrb[6].mxu1 }
 0x11f   :  { %v1226_v47 = vadd.f32 %v1953_v19, %v1155_v41  ;;  %v1258_v48 = vadd.f32 %v1953_v19, %v1187_v42  ;;  %v1156_v49 = vmul.f32 %v1948_v17, %v707_v45  ;;  %v1188_v50 = vmul.f32 %v1948_v17, %v835_v46  ;;  %v709_v51 = vpop.f32.mrb[7].mxu0  ;;  %v837_v52 = vpop.f32.mrb[7].mxu1 }
 0x121   :  { %v1290_v53 = vmax.f32 %v1226_v47, 0.0  ;;  %v1322_v54 = vmax.f32 %v1258_v48, 0.0  ;;  %v1227_v55 = vadd.f32 %v1953_v19, %v1156_v49  ;;  %v1259_v56 = vadd.f32 %v1953_v19, %v1188_v50 }
 0x123   :  { %1354 = vst [vmem:[%s2279_s4 + $0x10] sm:$0xff] %v1290_v53  ;;  %1386 = vst [vmem:[%s2279_s4 + $0x110] sm:$0xff] %v1322_v54  ;;  %v1291_v57 = vmax.f32 %v1227_v55, 0.0  ;;  %v1323_v58 = vmax.f32 %v1259_v56, 0.0 }
 0x124   :  { %v712_v59 = vpop.f32.mrb[8].mxu0  ;;  %v840_v60 = vpop.f32.mrb[8].mxu1 }
 0x125   :  { %1355 = vst [vmem:[%s2279_s4 + $0x18] sm:$0xff] %v1291_v57  ;;  %1387 = vst [vmem:[%s2279_s4 + $0x118] sm:$0xff] %v1323_v58  ;;  %v1157_v61 = vmul.f32 %v1948_v17, %v712_v59  ;;  %v1189_v62 = vmul.f32 %v1948_v17, %v840_v60  ;;  %v714_v63 = vpop.f32.mrb[9].mxu0  ;;  %v842_v0 = vpop.f32.mrb[9].mxu1 }
 0x126   :  { %v715_v1 = vpop.f32.mrb[10].mxu0  ;;  %v843_v2 = vpop.f32.mrb[10].mxu1 }
 0x127   :  { %v1228_v3 = vadd.f32 %v1953_v19, %v1157_v61  ;;  %v1260_v4 = vadd.f32 %v1953_v19, %v1189_v62  ;;  %v1158_v5 = vmul.f32 %v1948_v17, %v715_v1  ;;  %v1190_v6 = vmul.f32 %v1948_v17, %v843_v2  ;;  %v717_v7 = vpop.f32.mrb[11].mxu0  ;;  %v845_v8 = vpop.f32.mrb[11].mxu1 }
 0x129   :  { %v1292_v9 = vmax.f32 %v1228_v3, 0.0  ;;  %v1324_v10 = vmax.f32 %v1260_v4, 0.0  ;;  %v1229_v11 = vadd.f32 %v1953_v19, %v1158_v5  ;;  %v1261_v12 = vadd.f32 %v1953_v19, %v1190_v6 }
 0x12b   :  { %1356 = vst [vmem:[%s2279_s4 + $0x20] sm:$0xff] %v1292_v9  ;;  %1388 = vst [vmem:[%s2279_s4 + $0x120] sm:$0xff] %v1324_v10  ;;  %v1293_v13 = vmax.f32 %v1229_v11, 0.0  ;;  %v1325_v14 = vmax.f32 %v1261_v12, 0.0 }
 0x12c   :  { %v720_v15 = vpop.f32.mrb[12].mxu0  ;;  %v848_v16 = vpop.f32.mrb[12].mxu1 }
 0x12d   :  { %1357 = vst [vmem:[%s2279_s4 + $0x28] sm:$0xff] %v1293_v13  ;;  %1389 = vst [vmem:[%s2279_s4 + $0x128] sm:$0xff] %v1325_v14  ;;  %v1159_v18 = vmul.f32 %v1948_v17, %v720_v15  ;;  %v1191_v20 = vmul.f32 %v1948_v17, %v848_v16  ;;  %v722_v21 = vpop.f32.mrb[13].mxu0  ;;  %v850_v22 = vpop.f32.mrb[13].mxu1 }
 0x12e   :  { %v723_v23 = vpop.f32.mrb[14].mxu0  ;;  %v851_v24 = vpop.f32.mrb[14].mxu1 }
 0x12f   :  { %v1230_v25 = vadd.f32 %v1953_v19, %v1159_v18  ;;  %v1262_v26 = vadd.f32 %v1953_v19, %v1191_v20  ;;  %v1160_v27 = vmul.f32 %v1948_v17, %v723_v23  ;;  %v1192_v28 = vmul.f32 %v1948_v17, %v851_v24  ;;  %v725_v29 = vpop.f32.mrb[15].mxu0  ;;  %v853_v30 = vpop.f32.mrb[15].mxu1 }
 0x131   :  { %v1294_v31 = vmax.f32 %v1230_v25, 0.0  ;;  %v1326_v32 = vmax.f32 %v1262_v26, 0.0  ;;  %v1231_v33 = vadd.f32 %v1953_v19, %v1160_v27  ;;  %v1263_v34 = vadd.f32 %v1953_v19, %v1192_v28 }
 0x133   :  { %1358 = vst [vmem:[%s2279_s4 + $0x30] sm:$0xff] %v1294_v31  ;;  %1390 = vst [vmem:[%s2279_s4 + $0x130] sm:$0xff] %v1326_v32  ;;  %v1295_v35 = vmax.f32 %v1231_v33, 0.0  ;;  %v1327_v36 = vmax.f32 %v1263_v34, 0.0 }
 0x134   :  { %v728_v37 = vpop.f32.mrb[16].mxu0  ;;  %v856_v38 = vpop.f32.mrb[16].mxu1 }
 0x135   :  { %1359 = vst [vmem:[%s2279_s4 + $0x38] sm:$0xff] %v1295_v35  ;;  %1391 = vst [vmem:[%s2279_s4 + $0x138] sm:$0xff] %v1327_v36  ;;  %v1161_v39 = vmul.f32 %v1948_v17, %v728_v37  ;;  %v1193_v40 = vmul.f32 %v1948_v17, %v856_v38  ;;  %v730_v41 = vpop.f32.mrb[17].mxu0  ;;  %v858_v42 = vpop.f32.mrb[17].mxu1 }
 0x136   :  { %v731_v43 = vpop.f32.mrb[18].mxu0  ;;  %v859_v44 = vpop.f32.mrb[18].mxu1 }
 0x137   :  { %v1232_v45 = vadd.f32 %v1953_v19, %v1161_v39  ;;  %v1264_v46 = vadd.f32 %v1953_v19, %v1193_v40  ;;  %v1162_v47 = vmul.f32 %v1948_v17, %v731_v43  ;;  %v1194_v48 = vmul.f32 %v1948_v17, %v859_v44  ;;  %v733_v49 = vpop.f32.mrb[19].mxu0  ;;  %v861_v50 = vpop.f32.mrb[19].mxu1 }
 0x139   :  { %v1296_v51 = vmax.f32 %v1232_v45, 0.0  ;;  %v1328_v52 = vmax.f32 %v1264_v46, 0.0  ;;  %v1233_v53 = vadd.f32 %v1953_v19, %v1162_v47  ;;  %v1265_v54 = vadd.f32 %v1953_v19, %v1194_v48 }
 0x13b   :  { %1360 = vst [vmem:[%s2279_s4 + $0x40] sm:$0xff] %v1296_v51  ;;  %1392 = vst [vmem:[%s2279_s4 + $0x140] sm:$0xff] %v1328_v52  ;;  %v1297_v55 = vmax.f32 %v1233_v53, 0.0  ;;  %v1329_v56 = vmax.f32 %v1265_v54, 0.0 }
 0x13c   :  { %v736_v57 = vpop.f32.mrb[20].mxu0  ;;  %v864_v58 = vpop.f32.mrb[20].mxu1 }
 0x13d   :  { %1361 = vst [vmem:[%s2279_s4 + $0x48] sm:$0xff] %v1297_v55  ;;  %1393 = vst [vmem:[%s2279_s4 + $0x148] sm:$0xff] %v1329_v56  ;;  %v1163_v59 = vmul.f32 %v1948_v17, %v736_v57  ;;  %v1195_v60 = vmul.f32 %v1948_v17, %v864_v58  ;;  %v738_v61 = vpop.f32.mrb[21].mxu0  ;;  %v866_v62 = vpop.f32.mrb[21].mxu1 }
 0x13e   :  { %v739_v63 = vpop.f32.mrb[22].mxu0  ;;  %v867_v0 = vpop.f32.mrb[22].mxu1 }
 0x13f   :  { %v1234_v1 = vadd.f32 %v1953_v19, %v1163_v59  ;;  %v1266_v2 = vadd.f32 %v1953_v19, %v1195_v60  ;;  %v1164_v3 = vmul.f32 %v1948_v17, %v739_v63  ;;  %v1196_v4 = vmul.f32 %v1948_v17, %v867_v0  ;;  %v741_v5 = vpop.f32.mrb[23].mxu0  ;;  %v869_v6 = vpop.f32.mrb[23].mxu1 }
 0x141   :  { %v1298_v7 = vmax.f32 %v1234_v1, 0.0  ;;  %v1330_v8 = vmax.f32 %v1266_v2, 0.0  ;;  %v1235_v9 = vadd.f32 %v1953_v19, %v1164_v3  ;;  %v1267_v10 = vadd.f32 %v1953_v19, %v1196_v4 }
 0x143   :  { %1362 = vst [vmem:[%s2279_s4 + $0x50] sm:$0xff] %v1298_v7  ;;  %1394 = vst [vmem:[%s2279_s4 + $0x150] sm:$0xff] %v1330_v8  ;;  %v1299_v11 = vmax.f32 %v1235_v9, 0.0  ;;  %v1331_v12 = vmax.f32 %v1267_v10, 0.0 }
 0x144   :  { %v744_v13 = vpop.f32.mrb[24].mxu0  ;;  %v872_v14 = vpop.f32.mrb[24].mxu1 }
 0x145   :  { %1363 = vst [vmem:[%s2279_s4 + $0x58] sm:$0xff] %v1299_v11  ;;  %1395 = vst [vmem:[%s2279_s4 + $0x158] sm:$0xff] %v1331_v12  ;;  %v1165_v15 = vmul.f32 %v1948_v17, %v744_v13  ;;  %v1197_v16 = vmul.f32 %v1948_v17, %v872_v14  ;;  %v746_v18 = vpop.f32.mrb[25].mxu0  ;;  %v874_v20 = vpop.f32.mrb[25].mxu1 }
 0x146   :  { %v747_v21 = vpop.f32.mrb[26].mxu0  ;;  %v875_v22 = vpop.f32.mrb[26].mxu1 }
 0x147   :  { %v1236_v23 = vadd.f32 %v1953_v19, %v1165_v15  ;;  %v1268_v24 = vadd.f32 %v1953_v19, %v1197_v16  ;;  %v1166_v25 = vmul.f32 %v1948_v17, %v747_v21  ;;  %v1198_v26 = vmul.f32 %v1948_v17, %v875_v22  ;;  %v749_v27 = vpop.f32.mrb[27].mxu0  ;;  %v877_v28 = vpop.f32.mrb[27].mxu1 }
 0x149   :  { %v1300_v29 = vmax.f32 %v1236_v23, 0.0  ;;  %v1332_v30 = vmax.f32 %v1268_v24, 0.0  ;;  %v1237_v31 = vadd.f32 %v1953_v19, %v1166_v25  ;;  %v1269_v32 = vadd.f32 %v1953_v19, %v1198_v26 }
 0x14b   :  { %1364 = vst [vmem:[%s2279_s4 + $0x60] sm:$0xff] %v1300_v29  ;;  %1396 = vst [vmem:[%s2279_s4 + $0x160] sm:$0xff] %v1332_v30  ;;  %v1301_v33 = vmax.f32 %v1237_v31, 0.0  ;;  %v1333_v34 = vmax.f32 %v1269_v32, 0.0 }
 0x14c   :  { %v752_v35 = vpop.f32.mrb[28].mxu0  ;;  %v880_v36 = vpop.f32.mrb[28].mxu1 }
 0x14d   :  { %1365 = vst [vmem:[%s2279_s4 + $0x68] sm:$0xff] %v1301_v33  ;;  %1397 = vst [vmem:[%s2279_s4 + $0x168] sm:$0xff] %v1333_v34  ;;  %v1167_v37 = vmul.f32 %v1948_v17, %v752_v35  ;;  %v1199_v38 = vmul.f32 %v1948_v17, %v880_v36  ;;  %v754_v39 = vpop.f32.mrb[29].mxu0  ;;  %v882_v40 = vpop.f32.mrb[29].mxu1 }
 0x14e   :  { %v755_v41 = vpop.f32.mrb[30].mxu0  ;;  %v883_v42 = vpop.f32.mrb[30].mxu1 }
 0x14f   :  { %v1238_v43 = vadd.f32 %v1953_v19, %v1167_v37  ;;  %v1270_v44 = vadd.f32 %v1953_v19, %v1199_v38  ;;  %v1168_v45 = vmul.f32 %v1948_v17, %v755_v41  ;;  %v1200_v46 = vmul.f32 %v1948_v17, %v883_v42  ;;  %v757_v47 = vpop.f32.mrb[31].mxu0  ;;  %v885_v48 = vpop.f32.mrb[31].mxu1 }
 0x151   :  { %v1302_v49 = vmax.f32 %v1238_v43, 0.0  ;;  %v1334_v50 = vmax.f32 %v1270_v44, 0.0  ;;  %v1239_v51 = vadd.f32 %v1953_v19, %v1168_v45  ;;  %v1271_v52 = vadd.f32 %v1953_v19, %v1200_v46 }
 0x153   :  { %1366 = vst [vmem:[%s2279_s4 + $0x70] sm:$0xff] %v1302_v49  ;;  %1398 = vst [vmem:[%s2279_s4 + $0x170] sm:$0xff] %v1334_v50  ;;  %v1303_v53 = vmax.f32 %v1239_v51, 0.0  ;;  %v1335_v54 = vmax.f32 %v1271_v52, 0.0 }
 0x154   :  { %v760_v55 = vpop.f32.mrb[32].mxu0  ;;  %v888_v56 = vpop.f32.mrb[32].mxu1 }
 0x155   :  { %1367 = vst [vmem:[%s2279_s4 + $0x78] sm:$0xff] %v1303_v53  ;;  %1399 = vst [vmem:[%s2279_s4 + $0x178] sm:$0xff] %v1335_v54  ;;  %v1169_v57 = vmul.f32 %v1948_v17, %v760_v55  ;;  %v1201_v58 = vmul.f32 %v1948_v17, %v888_v56  ;;  %v762_v59 = vpop.f32.mrb[33].mxu0  ;;  %v890_v60 = vpop.f32.mrb[33].mxu1 }
 0x156   :  { %v763_v61 = vpop.f32.mrb[34].mxu0  ;;  %v891_v62 = vpop.f32.mrb[34].mxu1 }
 0x157   :  { %v1240_v63 = vadd.f32 %v1953_v19, %v1169_v57  ;;  %v1272_v0 = vadd.f32 %v1953_v19, %v1201_v58  ;;  %v1170_v1 = vmul.f32 %v1948_v17, %v763_v61  ;;  %v1202_v2 = vmul.f32 %v1948_v17, %v891_v62  ;;  %v765_v3 = vpop.f32.mrb[35].mxu0  ;;  %v893_v4 = vpop.f32.mrb[35].mxu1 }
 0x159   :  { %v1304_v5 = vmax.f32 %v1240_v63, 0.0  ;;  %v1336_v6 = vmax.f32 %v1272_v0, 0.0  ;;  %v1241_v7 = vadd.f32 %v1953_v19, %v1170_v1  ;;  %v1273_v8 = vadd.f32 %v1953_v19, %v1202_v2 }
 0x15b   :  { %1368 = vst [vmem:[%s2279_s4 + $0x80] sm:$0xff] %v1304_v5  ;;  %1400 = vst [vmem:[%s2279_s4 + $0x180] sm:$0xff] %v1336_v6  ;;  %v1305_v9 = vmax.f32 %v1241_v7, 0.0  ;;  %v1337_v10 = vmax.f32 %v1273_v8, 0.0 }
 0x15c   :  { %v768_v11 = vpop.f32.mrb[36].mxu0  ;;  %v896_v12 = vpop.f32.mrb[36].mxu1 }
 0x15d   :  { %1369 = vst [vmem:[%s2279_s4 + $0x88] sm:$0xff] %v1305_v9  ;;  %1401 = vst [vmem:[%s2279_s4 + $0x188] sm:$0xff] %v1337_v10  ;;  %v1171_v13 = vmul.f32 %v1948_v17, %v768_v11  ;;  %v1203_v14 = vmul.f32 %v1948_v17, %v896_v12  ;;  %v770_v15 = vpop.f32.mrb[37].mxu0  ;;  %v898_v16 = vpop.f32.mrb[37].mxu1 }
 0x15e   :  { %v771_v18 = vpop.f32.mrb[38].mxu0  ;;  %v899_v20 = vpop.f32.mrb[38].mxu1 }
 0x15f   :  { %v1242_v21 = vadd.f32 %v1953_v19, %v1171_v13  ;;  %v1274_v22 = vadd.f32 %v1953_v19, %v1203_v14  ;;  %v1172_v23 = vmul.f32 %v1948_v17, %v771_v18  ;;  %v1204_v24 = vmul.f32 %v1948_v17, %v899_v20  ;;  %v773_v25 = vpop.f32.mrb[39].mxu0  ;;  %v901_v26 = vpop.f32.mrb[39].mxu1 }
 0x161   :  { %v1306_v27 = vmax.f32 %v1242_v21, 0.0  ;;  %v1338_v28 = vmax.f32 %v1274_v22, 0.0  ;;  %v1243_v29 = vadd.f32 %v1953_v19, %v1172_v23  ;;  %v1275_v30 = vadd.f32 %v1953_v19, %v1204_v24 }
 0x163   :  { %1370 = vst [vmem:[%s2279_s4 + $0x90] sm:$0xff] %v1306_v27  ;;  %1402 = vst [vmem:[%s2279_s4 + $0x190] sm:$0xff] %v1338_v28  ;;  %v1307_v31 = vmax.f32 %v1243_v29, 0.0  ;;  %v1339_v32 = vmax.f32 %v1275_v30, 0.0 }
 0x164   :  { %v776_v33 = vpop.f32.mrb[40].mxu0  ;;  %v904_v34 = vpop.f32.mrb[40].mxu1 }
 0x165   :  { %1371 = vst [vmem:[%s2279_s4 + $0x98] sm:$0xff] %v1307_v31  ;;  %1403 = vst [vmem:[%s2279_s4 + $0x198] sm:$0xff] %v1339_v32  ;;  %v1173_v35 = vmul.f32 %v1948_v17, %v776_v33  ;;  %v1205_v36 = vmul.f32 %v1948_v17, %v904_v34  ;;  %v778_v37 = vpop.f32.mrb[41].mxu0  ;;  %v906_v38 = vpop.f32.mrb[41].mxu1 }
 0x166   :  { %v779_v39 = vpop.f32.mrb[42].mxu0  ;;  %v907_v40 = vpop.f32.mrb[42].mxu1 }
 0x167   :  { %v1244_v41 = vadd.f32 %v1953_v19, %v1173_v35  ;;  %v1276_v42 = vadd.f32 %v1953_v19, %v1205_v36  ;;  %v1174_v43 = vmul.f32 %v1948_v17, %v779_v39  ;;  %v1206_v44 = vmul.f32 %v1948_v17, %v907_v40  ;;  %v781_v45 = vpop.f32.mrb[43].mxu0  ;;  %v909_v46 = vpop.f32.mrb[43].mxu1 }
 0x169   :  { %v1308_v47 = vmax.f32 %v1244_v41, 0.0  ;;  %v1340_v48 = vmax.f32 %v1276_v42, 0.0  ;;  %v1245_v49 = vadd.f32 %v1953_v19, %v1174_v43  ;;  %v1277_v50 = vadd.f32 %v1953_v19, %v1206_v44 }
 0x16b   :  { %1372 = vst [vmem:[%s2279_s4 + $0xa0] sm:$0xff] %v1308_v47  ;;  %1404 = vst [vmem:[%s2279_s4 + $0x1a0] sm:$0xff] %v1340_v48  ;;  %v1309_v51 = vmax.f32 %v1245_v49, 0.0  ;;  %v1341_v52 = vmax.f32 %v1277_v50, 0.0 }
 0x16c   :  { %v784_v53 = vpop.f32.mrb[44].mxu0  ;;  %v912_v54 = vpop.f32.mrb[44].mxu1 }
 0x16d   :  { %1373 = vst [vmem:[%s2279_s4 + $0xa8] sm:$0xff] %v1309_v51  ;;  %1405 = vst [vmem:[%s2279_s4 + $0x1a8] sm:$0xff] %v1341_v52  ;;  %v1175_v55 = vmul.f32 %v1948_v17, %v784_v53  ;;  %v1207_v56 = vmul.f32 %v1948_v17, %v912_v54  ;;  %v786_v57 = vpop.f32.mrb[45].mxu0  ;;  %v914_v58 = vpop.f32.mrb[45].mxu1 }
 0x16e   :  { %v787_v59 = vpop.f32.mrb[46].mxu0  ;;  %v915_v60 = vpop.f32.mrb[46].mxu1 }
 0x16f   :  { %v1246_v61 = vadd.f32 %v1953_v19, %v1175_v55  ;;  %v1278_v62 = vadd.f32 %v1953_v19, %v1207_v56  ;;  %v1176_v63 = vmul.f32 %v1948_v17, %v787_v59  ;;  %v1208_v0 = vmul.f32 %v1948_v17, %v915_v60  ;;  %v789_v1 = vpop.f32.mrb[47].mxu0  ;;  %v917_v2 = vpop.f32.mrb[47].mxu1 }
 0x171   :  { %v1310_v3 = vmax.f32 %v1246_v61, 0.0  ;;  %v1342_v4 = vmax.f32 %v1278_v62, 0.0  ;;  %v1247_v5 = vadd.f32 %v1953_v19, %v1176_v63  ;;  %v1279_v6 = vadd.f32 %v1953_v19, %v1208_v0 }
 0x173   :  { %1374 = vst [vmem:[%s2279_s4 + $0xb0] sm:$0xff] %v1310_v3  ;;  %1406 = vst [vmem:[%s2279_s4 + $0x1b0] sm:$0xff] %v1342_v4  ;;  %v1311_v7 = vmax.f32 %v1247_v5, 0.0  ;;  %v1343_v8 = vmax.f32 %v1279_v6, 0.0 }
 0x174   :  { %v792_v9 = vpop.f32.mrb[48].mxu0  ;;  %v920_v10 = vpop.f32.mrb[48].mxu1 }
 0x175   :  { %1375 = vst [vmem:[%s2279_s4 + $0xb8] sm:$0xff] %v1311_v7  ;;  %1407 = vst [vmem:[%s2279_s4 + $0x1b8] sm:$0xff] %v1343_v8  ;;  %v1177_v11 = vmul.f32 %v1948_v17, %v792_v9  ;;  %v1209_v12 = vmul.f32 %v1948_v17, %v920_v10  ;;  %v794_v13 = vpop.f32.mrb[49].mxu0  ;;  %v922_v14 = vpop.f32.mrb[49].mxu1 }
 0x176   :  { %v795_v15 = vpop.f32.mrb[50].mxu0  ;;  %v923_v16 = vpop.f32.mrb[50].mxu1 }
 0x177   :  { %v1248_v18 = vadd.f32 %v1953_v19, %v1177_v11  ;;  %v1280_v20 = vadd.f32 %v1953_v19, %v1209_v12  ;;  %v1178_v21 = vmul.f32 %v1948_v17, %v795_v15  ;;  %v1210_v22 = vmul.f32 %v1948_v17, %v923_v16  ;;  %v797_v23 = vpop.f32.mrb[51].mxu0  ;;  %v925_v24 = vpop.f32.mrb[51].mxu1 }
 0x179   :  { %v1312_v25 = vmax.f32 %v1248_v18, 0.0  ;;  %v1344_v26 = vmax.f32 %v1280_v20, 0.0  ;;  %v1249_v27 = vadd.f32 %v1953_v19, %v1178_v21  ;;  %v1281_v28 = vadd.f32 %v1953_v19, %v1210_v22 }
 0x17b   :  { %1376 = vst [vmem:[%s2279_s4 + $0xc0] sm:$0xff] %v1312_v25  ;;  %1408 = vst [vmem:[%s2279_s4 + $0x1c0] sm:$0xff] %v1344_v26  ;;  %v1313_v29 = vmax.f32 %v1249_v27, 0.0  ;;  %v1345_v30 = vmax.f32 %v1281_v28, 0.0 }
 0x17c   :  { %v800_v31 = vpop.f32.mrb[52].mxu0  ;;  %v928_v32 = vpop.f32.mrb[52].mxu1 }
 0x17d   :  { %1377 = vst [vmem:[%s2279_s4 + $0xc8] sm:$0xff] %v1313_v29  ;;  %1409 = vst [vmem:[%s2279_s4 + $0x1c8] sm:$0xff] %v1345_v30  ;;  %v1179_v33 = vmul.f32 %v1948_v17, %v800_v31  ;;  %v1211_v34 = vmul.f32 %v1948_v17, %v928_v32  ;;  %v802_v35 = vpop.f32.mrb[53].mxu0  ;;  %v930_v36 = vpop.f32.mrb[53].mxu1 }
 0x17e   :  { %v803_v37 = vpop.f32.mrb[54].mxu0  ;;  %v931_v38 = vpop.f32.mrb[54].mxu1 }
 0x17f   :  { %v1250_v39 = vadd.f32 %v1953_v19, %v1179_v33  ;;  %v1282_v40 = vadd.f32 %v1953_v19, %v1211_v34  ;;  %v1180_v41 = vmul.f32 %v1948_v17, %v803_v37  ;;  %v1212_v42 = vmul.f32 %v1948_v17, %v931_v38  ;;  %v805_v43 = vpop.f32.mrb[55].mxu0  ;;  %v933_v44 = vpop.f32.mrb[55].mxu1 }
 0x181   :  { %v1314_v45 = vmax.f32 %v1250_v39, 0.0  ;;  %v1346_v46 = vmax.f32 %v1282_v40, 0.0  ;;  %v1251_v47 = vadd.f32 %v1953_v19, %v1180_v41  ;;  %v1283_v48 = vadd.f32 %v1953_v19, %v1212_v42 }
 0x183   :  { %1378 = vst [vmem:[%s2279_s4 + $0xd0] sm:$0xff] %v1314_v45  ;;  %1410 = vst [vmem:[%s2279_s4 + $0x1d0] sm:$0xff] %v1346_v46  ;;  %v1315_v49 = vmax.f32 %v1251_v47, 0.0  ;;  %v1347_v50 = vmax.f32 %v1283_v48, 0.0 }
 0x184   :  { %v808_v51 = vpop.f32.mrb[56].mxu0  ;;  %v936_v52 = vpop.f32.mrb[56].mxu1 }
 0x185   :  { %1379 = vst [vmem:[%s2279_s4 + $0xd8] sm:$0xff] %v1315_v49  ;;  %1411 = vst [vmem:[%s2279_s4 + $0x1d8] sm:$0xff] %v1347_v50  ;;  %v1181_v53 = vmul.f32 %v1948_v17, %v808_v51  ;;  %v1213_v54 = vmul.f32 %v1948_v17, %v936_v52  ;;  %v810_v55 = vpop.f32.mrb[57].mxu0  ;;  %v938_v56 = vpop.f32.mrb[57].mxu1 }
 0x186   :  { %v811_v57 = vpop.f32.mrb[58].mxu0  ;;  %v939_v58 = vpop.f32.mrb[58].mxu1 }
 0x187   :  { %v1252_v59 = vadd.f32 %v1953_v19, %v1181_v53  ;;  %v1284_v60 = vadd.f32 %v1953_v19, %v1213_v54  ;;  %v1182_v61 = vmul.f32 %v1948_v17, %v811_v57  ;;  %v1214_v62 = vmul.f32 %v1948_v17, %v939_v58  ;;  %v813_v63 = vpop.f32.mrb[59].mxu0  ;;  %v941_v0 = vpop.f32.mrb[59].mxu1 }
 0x189   :  { %v1316_v1 = vmax.f32 %v1252_v59, 0.0  ;;  %v1348_v2 = vmax.f32 %v1284_v60, 0.0  ;;  %v1253_v3 = vadd.f32 %v1953_v19, %v1182_v61  ;;  %v1285_v4 = vadd.f32 %v1953_v19, %v1214_v62 }
 0x18b   :  { %1380 = vst [vmem:[%s2279_s4 + $0xe0] sm:$0xff] %v1316_v1  ;;  %1412 = vst [vmem:[%s2279_s4 + $0x1e0] sm:$0xff] %v1348_v2  ;;  %v1317_v5 = vmax.f32 %v1253_v3, 0.0  ;;  %v1349_v6 = vmax.f32 %v1285_v4, 0.0 }
 0x18c   :  { %v816_v7 = vpop.f32.mrb[60].mxu0  ;;  %v944_v8 = vpop.f32.mrb[60].mxu1 }
 0x18d   :  { %1381 = vst [vmem:[%s2279_s4 + $0xe8] sm:$0xff] %v1317_v5  ;;  %1413 = vst [vmem:[%s2279_s4 + $0x1e8] sm:$0xff] %v1349_v6  ;;  %v1183_v9 = vmul.f32 %v1948_v17, %v816_v7  ;;  %v1215_v10 = vmul.f32 %v1948_v17, %v944_v8  ;;  %v818_v11 = vpop.f32.mrb[61].mxu0  ;;  %v946_v12 = vpop.f32.mrb[61].mxu1 }
 0x18e   :  { %v819_v13 = vpop.f32.mrb[62].mxu0  ;;  %v947_v14 = vpop.f32.mrb[62].mxu1 }
 0x18f   :  { %v1254_v15 = vadd.f32 %v1953_v19, %v1183_v9  ;;  %v1286_v16 = vadd.f32 %v1953_v19, %v1215_v10  ;;  %v1184_v18 = vmul.f32 %v1948_v17, %v819_v13  ;;  %v1216_v20 = vmul.f32 %v1948_v17, %v947_v14  ;;  %v821_v21 = vpop.f32.mrb[63].mxu0  ;;  %v949_v22 = vpop.f32.mrb[63].mxu1 }
 0x191   :  { %v1318_v23 = vmax.f32 %v1254_v15, 0.0  ;;  %v1350_v24 = vmax.f32 %v1286_v16, 0.0  ;;  %v1255_v25 = vadd.f32 %v1953_v19, %v1184_v18  ;;  %v1287_v26 = vadd.f32 %v1953_v19, %v1216_v20 }
 0x193   :  { %1382 = vst [vmem:[%s2279_s4 + $0xf0] sm:$0xff] %v1318_v23  ;;  %1414 = vst [vmem:[%s2279_s4 + $0x1f0] sm:$0xff] %v1350_v24  ;;  %v1319_v27 = vmax.f32 %v1255_v25, 0.0  ;;  %v1351_v28 = vmax.f32 %v1287_v26, 0.0 }
 0x195   :  { %1383 = vst [vmem:[%s2279_s4 + $0xf8] sm:$0xff] %v1319_v27  ;;  %1415 = vst [vmem:[%s2279_s4 + $0x1f8] sm:$0xff] %v1351_v28 }

// kernel: resnet_forward.18
= control target key start
LH: loop header
LB: loop body
LE: loop exit
PB: predicated region body
PF: predicated region fallthrough
CT: control target
= control target key end

     0   :  { %s621_s1 = inlined_call_operand.vmem [shape: bf16[128,128], index: 1, kind: input, shape index: {}]   ;;  %s622_s0 = inlined_call_operand.vmem [shape: bf16[128,128], index: 0, kind: input, shape index: {}]   ;;  %s623_s2 = inlined_call_operand.vmem [shape: f32[1,128], index: 2, kind: input, shape index: {}]   ;;  %s624_s3 = inlined_call_operand.vmem [shape: f32[1,128], index: 3, kind: input, shape index: {}]   ;;  %s625_s4 = inlined_call_operand.vmem [shape: f32[128,128], index: 4, kind: output, shape index: {}]  }
   0x1   :  { %v478_v0 = vld [vmem:[%s621_s1] sm:$0xff]   ;;  %v479_v1 = vld [vmem:[%s621_s1 + $0x8] sm:$0xff]   ;;  %v480_v2 = vld [vmem:[%s621_s1 + $0x10] sm:$0xff]  }
   0x2   :  { %430 = vmatprep.subr.bf16.mxu0 %v478_v0  ;;  %462 = vmatprep.subr.bf16.mxu1 %v478_v0  ;;  %v481_v3 = vld [vmem:[%s621_s1 + $0x18] sm:$0xff]   ;;  %v486_v4 = vld [vmem:[%s622_s0] sm:$0xff]   ;;  %v483_v7 = vld [vmem:[%s621_s1 + $0x28] sm:$0xff]  }
   0x3   :  { %431 = vmatpush3.bf16.msra.mxu0 %v478_v0  ;;  %470 = vmatpush3.bf16.msra.mxu1 %v478_v0  ;;  %v487_v5 = vld [vmem:[%s622_s0 + $0x20] sm:$0xff]   ;;  %v484_v8 = vld [vmem:[%s621_s1 + $0x30] sm:$0xff]   ;;  %v485_v9 = vld [vmem:[%s621_s1 + $0x38] sm:$0xff]  }
   0x4   :  { %432 = vmatprep.subr.bf16.mxu0 %v479_v1  ;;  %463 = vmatprep.subr.bf16.mxu1 %v479_v1  ;;  %v482_v6 = vld [vmem:[%s621_s1 + $0x20] sm:$0xff]   ;;  %v488_v10 = vld [vmem:[%s622_s0 + $0x8] sm:$0xff]   ;;  %v490_v12 = vld [vmem:[%s622_s0 + $0x10] sm:$0xff]  }
   0x5   :  { %446 = vmatprep.mubr.bf16.mxu0 %v486_v4  ;;  %454 = vmatprep.mubr.bf16.mxu1 %v487_v5  ;;  %v489_v11 = vld [vmem:[%s622_s0 + $0x28] sm:$0xff]   ;;  %v491_v13 = vld [vmem:[%s622_s0 + $0x30] sm:$0xff]   ;;  %v492_v14 = vld [vmem:[%s622_s0 + $0x18] sm:$0xff]  }
   0x6   :  { %v493_v15 = vld [vmem:[%s622_s0 + $0x38] sm:$0xff]   ;;  %v412_v16 = vld [vmem:[%s623_s2] ss:$0 sm:$0xff] }
   0x7   :  { %433 = vmatpush3.bf16.msra.mxu0 %v479_v1  ;;  %471 = vmatpush3.bf16.msra.mxu1 %v479_v1  ;;  %v413_v18 = vld [vmem:[%s624_s3] ss:$0 sm:$0xff] }
   0x8   :  { %434 = vmatprep.subr.bf16.mxu0 %v480_v2  ;;  %464 = vmatprep.subr.bf16.mxu1 %v480_v2 }
   0xb   :  { %435 = vmatpush3.bf16.msra.mxu0 %v480_v2  ;;  %472 = vmatpush3.bf16.msra.mxu1 %v480_v2 }
   0xc   :  { %436 = vmatprep.subr.bf16.mxu0 %v481_v3  ;;  %465 = vmatprep.subr.bf16.mxu1 %v481_v3 }
   0xf   :  { %437 = vmatpush3.bf16.msra.mxu0 %v481_v3  ;;  %473 = vmatpush3.bf16.msra.mxu1 %v481_v3 }
  0x10   :  { %438 = vmatprep.subr.bf16.mxu0 %v482_v6  ;;  %466 = vmatprep.subr.bf16.mxu1 %v482_v6 }
  0x13   :  { %439 = vmatpush3.bf16.msra.mxu0 %v482_v6  ;;  %474 = vmatpush3.bf16.msra.mxu1 %v482_v6 }
  0x14   :  { %440 = vmatprep.subr.bf16.mxu0 %v483_v7  ;;  %467 = vmatprep.subr.bf16.mxu1 %v483_v7 }
  0x17   :  { %441 = vmatpush3.bf16.msra.mxu0 %v483_v7  ;;  %475 = vmatpush3.bf16.msra.mxu1 %v483_v7 }
  0x18   :  { %442 = vmatprep.subr.bf16.mxu0 %v484_v8  ;;  %468 = vmatprep.subr.bf16.mxu1 %v484_v8 }
  0x1b   :  { %443 = vmatpush3.bf16.msra.mxu0 %v484_v8  ;;  %476 = vmatpush3.bf16.msra.mxu1 %v484_v8 }
  0x1c   :  { %444 = vmatprep.subr.bf16.mxu0 %v485_v9  ;;  %469 = vmatprep.subr.bf16.mxu1 %v485_v9 }
  0x1f   :  { %445 = vmatpush3.bf16.msra.mxu0 %v485_v9  ;;  %477 = vmatpush3.bf16.msra.mxu1 %v485_v9 }
  0x22   :  { %447 = vmatmul.mubr.bf16.vlgmr.msra.gmra.mrb[0].mxu0 %v488_v10  ;;  %455 = vmatmul.mubr.bf16.vlgmr.msra.gmra.mrb[0].mxu1 %v489_v11 }
  0x23   :  { %450 = vmatprep.mubr.bf16.mxu0 %v490_v12  ;;  %458 = vmatprep.mubr.bf16.mxu1 %v491_v13 }
  0x2a   :  { %451 = vmatmul.mubr.bf16.gmra.mrb[4].mxu0 %v492_v14  ;;  %459 = vmatmul.mubr.bf16.gmra.mrb[4].mxu1 %v493_v15 }
  0xf5   :  { %v448_v17 = vpop.f32.mrb[0].mxu0  ;;  %v456_v19 = vpop.f32.mrb[0].mxu1 }
  0xf6   :  { %v339_v20 = vmul.f32 %v448_v17, %v412_v16  ;;  %v347_v21 = vmul.f32 %v456_v19, %v412_v16  ;;  %v216_v22 = vpop.f32.mrb[1].mxu0  ;;  %v248_v23 = vpop.f32.mrb[1].mxu1 }
  0xf7   :  { %v337_v24 = vmul.f32 %v412_v16, %v216_v22  ;;  %v345_v25 = vmul.f32 %v412_v16, %v248_v23  ;;  %v449_v26 = vpop.f32.mrb[2].mxu0  ;;  %v457_v27 = vpop.f32.mrb[2].mxu1 }
  0xf8   :  { %v362_v28 = vadd.f32 %v413_v18, %v339_v20  ;;  %v370_v29 = vadd.f32 %v413_v18, %v347_v21  ;;  %v340_v30 = vmul.f32 %v449_v26, %v412_v16  ;;  %v348_v31 = vmul.f32 %v457_v27, %v412_v16  ;;  %v219_v32 = vpop.f32.mrb[3].mxu0  ;;  %v251_v33 = vpop.f32.mrb[3].mxu1 }
  0xf9   :  { %v360_v34 = vadd.f32 %v413_v18, %v337_v24  ;;  %v368_v35 = vadd.f32 %v413_v18, %v345_v25  ;;  %v338_v36 = vmul.f32 %v412_v16, %v219_v32  ;;  %v346_v37 = vmul.f32 %v412_v16, %v251_v33 }
  0xfa   :  { %378 = vst [vmem:[%s625_s4 + $0x10] sm:$0xff] %v362_v28  ;;  %386 = vst [vmem:[%s625_s4 + $0x50] sm:$0xff] %v370_v29  ;;  %v363_v38 = vadd.f32 %v413_v18, %v340_v30  ;;  %v371_v39 = vadd.f32 %v413_v18, %v348_v31 }
  0xfb   :  { %376 = vst [vmem:[%s625_s4] sm:$0xff] %v360_v34  ;;  %384 = vst [vmem:[%s625_s4 + $0x40] sm:$0xff] %v368_v35  ;;  %v361_v40 = vadd.f32 %v413_v18, %v338_v36  ;;  %v369_v41 = vadd.f32 %v413_v18, %v346_v37 }
  0xfc   :  { %379 = vst [vmem:[%s625_s4 + $0x18] sm:$0xff] %v363_v38  ;;  %387 = vst [vmem:[%s625_s4 + $0x58] sm:$0xff] %v371_v39 }
  0xfd   :  { %377 = vst [vmem:[%s625_s4 + $0x8] sm:$0xff] %v361_v40  ;;  %385 = vst [vmem:[%s625_s4 + $0x48] sm:$0xff] %v369_v41  ;;  %v452_v42 = vpop.f32.mrb[4].mxu0  ;;  %v460_v43 = vpop.f32.mrb[4].mxu1 }
  0xfe   :  { %v343_v44 = vmul.f32 %v452_v42, %v412_v16  ;;  %v351_v45 = vmul.f32 %v460_v43, %v412_v16  ;;  %v232_v46 = vpop.f32.mrb[5].mxu0  ;;  %v264_v47 = vpop.f32.mrb[5].mxu1 }
  0xff   :  { %v341_v48 = vmul.f32 %v412_v16, %v232_v46  ;;  %v349_v49 = vmul.f32 %v412_v16, %v264_v47  ;;  %v453_v50 = vpop.f32.mrb[6].mxu0  ;;  %v461_v51 = vpop.f32.mrb[6].mxu1 }
 0x100   :  { %v366_v52 = vadd.f32 %v413_v18, %v343_v44  ;;  %v374_v53 = vadd.f32 %v413_v18, %v351_v45  ;;  %v344_v54 = vmul.f32 %v453_v50, %v412_v16  ;;  %v352_v55 = vmul.f32 %v461_v51, %v412_v16  ;;  %v235_v56 = vpop.f32.mrb[7].mxu0  ;;  %v267_v57 = vpop.f32.mrb[7].mxu1 }
 0x101   :  { %v364_v58 = vadd.f32 %v413_v18, %v341_v48  ;;  %v372_v59 = vadd.f32 %v413_v18, %v349_v49  ;;  %v342_v60 = vmul.f32 %v412_v16, %v235_v56  ;;  %v350_v61 = vmul.f32 %v412_v16, %v267_v57 }
 0x102   :  { %382 = vst [vmem:[%s625_s4 + $0x30] sm:$0xff] %v366_v52  ;;  %390 = vst [vmem:[%s625_s4 + $0x70] sm:$0xff] %v374_v53  ;;  %v367_v62 = vadd.f32 %v413_v18, %v344_v54  ;;  %v375_v63 = vadd.f32 %v413_v18, %v352_v55 }
 0x103   :  { %380 = vst [vmem:[%s625_s4 + $0x20] sm:$0xff] %v364_v58  ;;  %388 = vst [vmem:[%s625_s4 + $0x60] sm:$0xff] %v372_v59  ;;  %v365_v0 = vadd.f32 %v413_v18, %v342_v60  ;;  %v373_v1 = vadd.f32 %v413_v18, %v350_v61 }
 0x104   :  { %383 = vst [vmem:[%s625_s4 + $0x38] sm:$0xff] %v367_v62  ;;  %391 = vst [vmem:[%s625_s4 + $0x78] sm:$0xff] %v375_v63 }
 0x105   :  { %381 = vst [vmem:[%s625_s4 + $0x28] sm:$0xff] %v365_v0  ;;  %389 = vst [vmem:[%s625_s4 + $0x68] sm:$0xff] %v373_v1 }

// kernel: resnet_forward.21
= control target key start
LH: loop header
LB: loop body
LE: loop exit
PB: predicated region body
PF: predicated region fallthrough
CT: control target
= control target key end

     0   :  { %s761_s1 = inlined_call_operand.vmem [shape: bf16[128,128], index: 1, kind: input, shape index: {}]   ;;  %s762_s0 = inlined_call_operand.vmem [shape: bf16[128,128], index: 0, kind: input, shape index: {}]   ;;  %s763_s2 = inlined_call_operand.vmem [shape: f32[1,128], index: 2, kind: input, shape index: {}]   ;;  %s764_s3 = inlined_call_operand.vmem [shape: f32[1,128], index: 3, kind: input, shape index: {}]   ;;  %s765_s4 = inlined_call_operand.vmem [shape: f32[128,128], index: 4, kind: input, shape index: {}]   ;;  %s766_s5 = inlined_call_operand.vmem [shape: f32[128,128], index: 5, kind: output, shape index: {}]  }
   0x1   :  { %v529_v0 = vld [vmem:[%s761_s1] sm:$0xff]   ;;  %v530_v1 = vld [vmem:[%s761_s1 + $0x8] sm:$0xff]   ;;  %v531_v2 = vld [vmem:[%s761_s1 + $0x10] sm:$0xff]  }
   0x2   :  { %481 = vmatprep.subr.bf16.mxu0 %v529_v0  ;;  %513 = vmatprep.subr.bf16.mxu1 %v529_v0  ;;  %v532_v3 = vld [vmem:[%s761_s1 + $0x18] sm:$0xff]   ;;  %v537_v4 = vld [vmem:[%s762_s0] sm:$0xff]   ;;  %v534_v7 = vld [vmem:[%s761_s1 + $0x28] sm:$0xff]  }
   0x3   :  { %482 = vmatpush3.bf16.msra.mxu0 %v529_v0  ;;  %521 = vmatpush3.bf16.msra.mxu1 %v529_v0  ;;  %v538_v5 = vld [vmem:[%s762_s0 + $0x20] sm:$0xff]   ;;  %v535_v8 = vld [vmem:[%s761_s1 + $0x30] sm:$0xff]   ;;  %v536_v9 = vld [vmem:[%s761_s1 + $0x38] sm:$0xff]  }
   0x4   :  { %483 = vmatprep.subr.bf16.mxu0 %v530_v1  ;;  %514 = vmatprep.subr.bf16.mxu1 %v530_v1  ;;  %v533_v6 = vld [vmem:[%s761_s1 + $0x20] sm:$0xff]   ;;  %v539_v10 = vld [vmem:[%s762_s0 + $0x8] sm:$0xff]   ;;  %v541_v12 = vld [vmem:[%s762_s0 + $0x10] sm:$0xff]  }
   0x5   :  { %497 = vmatprep.mubr.bf16.mxu0 %v537_v4  ;;  %505 = vmatprep.mubr.bf16.mxu1 %v538_v5  ;;  %v540_v11 = vld [vmem:[%s762_s0 + $0x28] sm:$0xff]   ;;  %v542_v13 = vld [vmem:[%s762_s0 + $0x30] sm:$0xff]   ;;  %v543_v14 = vld [vmem:[%s762_s0 + $0x18] sm:$0xff]  }
   0x6   :  { %v544_v15 = vld [vmem:[%s762_s0 + $0x38] sm:$0xff]   ;;  %v626_v16 = vld [vmem:[%s763_s2] ss:$0 sm:$0xff]  ;;  %v381_v24 = vld [vmem:[%s765_s4 + $0x10] sm:$0xff] }
   0x7   :  { %484 = vmatpush3.bf16.msra.mxu0 %v530_v1  ;;  %522 = vmatpush3.bf16.msra.mxu1 %v530_v1  ;;  %v631_v18 = vld [vmem:[%s764_s3] ss:$0 sm:$0xff]  ;;  %v389_v25 = vld [vmem:[%s765_s4 + $0x50] sm:$0xff]  ;;  %v382_v40 = vld [vmem:[%s765_s4 + $0x18] sm:$0xff] }
   0x8   :  { %485 = vmatprep.subr.bf16.mxu0 %v531_v2  ;;  %515 = vmatprep.subr.bf16.mxu1 %v531_v2  ;;  %v379_v32 = vld [vmem:[%s765_s4] sm:$0xff]  ;;  %v390_v41 = vld [vmem:[%s765_s4 + $0x58] sm:$0xff]  ;;  %v380_v48 = vld [vmem:[%s765_s4 + $0x8] sm:$0xff] }
   0x9   :  { %v387_v33 = vld [vmem:[%s765_s4 + $0x40] sm:$0xff]  ;;  %v388_v49 = vld [vmem:[%s765_s4 + $0x48] sm:$0xff] }
   0xb   :  { %486 = vmatpush3.bf16.msra.mxu0 %v531_v2  ;;  %523 = vmatpush3.bf16.msra.mxu1 %v531_v2 }
   0xc   :  { %487 = vmatprep.subr.bf16.mxu0 %v532_v3  ;;  %516 = vmatprep.subr.bf16.mxu1 %v532_v3 }
   0xf   :  { %488 = vmatpush3.bf16.msra.mxu0 %v532_v3  ;;  %524 = vmatpush3.bf16.msra.mxu1 %v532_v3 }
  0x10   :  { %489 = vmatprep.subr.bf16.mxu0 %v533_v6  ;;  %517 = vmatprep.subr.bf16.mxu1 %v533_v6 }
  0x13   :  { %490 = vmatpush3.bf16.msra.mxu0 %v533_v6  ;;  %525 = vmatpush3.bf16.msra.mxu1 %v533_v6 }
  0x14   :  { %491 = vmatprep.subr.bf16.mxu0 %v534_v7  ;;  %518 = vmatprep.subr.bf16.mxu1 %v534_v7 }
  0x17   :  { %492 = vmatpush3.bf16.msra.mxu0 %v534_v7  ;;  %526 = vmatpush3.bf16.msra.mxu1 %v534_v7 }
  0x18   :  { %493 = vmatprep.subr.bf16.mxu0 %v535_v8  ;;  %519 = vmatprep.subr.bf16.mxu1 %v535_v8 }
  0x1b   :  { %494 = vmatpush3.bf16.msra.mxu0 %v535_v8  ;;  %527 = vmatpush3.bf16.msra.mxu1 %v535_v8  ;;  %v385_v8 = vld [vmem:[%s765_s4 + $0x30] sm:$0xff] }
  0x1c   :  { %495 = vmatprep.subr.bf16.mxu0 %v536_v9  ;;  %520 = vmatprep.subr.bf16.mxu1 %v536_v9 }
  0x1f   :  { %496 = vmatpush3.bf16.msra.mxu0 %v536_v9  ;;  %528 = vmatpush3.bf16.msra.mxu1 %v536_v9  ;;  %v393_v9 = vld [vmem:[%s765_s4 + $0x70] sm:$0xff] }
  0x22   :  { %498 = vmatmul.mubr.bf16.vlgmr.msra.gmra.mrb[0].mxu0 %v539_v10  ;;  %506 = vmatmul.mubr.bf16.vlgmr.msra.gmra.mrb[0].mxu1 %v540_v11 }
  0x23   :  { %501 = vmatprep.mubr.bf16.mxu0 %v541_v12  ;;  %509 = vmatprep.mubr.bf16.mxu1 %v542_v13 }
  0x2a   :  { %502 = vmatmul.mubr.bf16.gmra.mrb[4].mxu0 %v543_v14  ;;  %510 = vmatmul.mubr.bf16.gmra.mrb[4].mxu1 %v544_v15 }
  0xf5   :  { %v499_v17 = vpop.f32.mrb[0].mxu0  ;;  %v507_v19 = vpop.f32.mrb[0].mxu1 }
  0xf6   :  { %v342_v20 = vmul.f32 %v499_v17, %v626_v16  ;;  %v350_v21 = vmul.f32 %v507_v19, %v626_v16  ;;  %v219_v22 = vpop.f32.mrb[1].mxu0  ;;  %v251_v23 = vpop.f32.mrb[1].mxu1  ;;  %v383_v17 = vld [vmem:[%s765_s4 + $0x20] sm:$0xff] }
  0xf7   :  { %v340_v26 = vmul.f32 %v626_v16, %v219_v22  ;;  %v348_v27 = vmul.f32 %v626_v16, %v251_v23  ;;  %v500_v28 = vpop.f32.mrb[2].mxu0  ;;  %v508_v29 = vpop.f32.mrb[2].mxu1  ;;  %v391_v19 = vld [vmem:[%s765_s4 + $0x60] sm:$0xff] }
  0xf8   :  { %v365_v30 = vadd.f32 %v631_v18, %v342_v20  ;;  %v373_v31 = vadd.f32 %v631_v18, %v350_v21  ;;  %v343_v34 = vmul.f32 %v500_v28, %v626_v16  ;;  %v351_v35 = vmul.f32 %v508_v29, %v626_v16  ;;  %v222_v36 = vpop.f32.mrb[3].mxu0  ;;  %v254_v37 = vpop.f32.mrb[3].mxu1 }
  0xf9   :  { %v363_v38 = vadd.f32 %v631_v18, %v340_v26  ;;  %v371_v39 = vadd.f32 %v631_v18, %v348_v27  ;;  %v341_v42 = vmul.f32 %v626_v16, %v222_v36  ;;  %v349_v43 = vmul.f32 %v626_v16, %v254_v37  ;;  %v386_v26 = vld [vmem:[%s765_s4 + $0x38] sm:$0xff] }
  0xfa   :  { %v397_v44 = vadd.f32 %v381_v24, %v365_v30  ;;  %v405_v45 = vadd.f32 %v389_v25, %v373_v31  ;;  %v366_v46 = vadd.f32 %v631_v18, %v343_v34  ;;  %v374_v47 = vadd.f32 %v631_v18, %v351_v35  ;;  %v394_v27 = vld [vmem:[%s765_s4 + $0x78] sm:$0xff]  ;;  %v384_v34 = vld [vmem:[%s765_s4 + $0x28] sm:$0xff] }
  0xfb   :  { %v395_v50 = vadd.f32 %v379_v32, %v363_v38  ;;  %v403_v51 = vadd.f32 %v387_v33, %v371_v39  ;;  %v364_v52 = vadd.f32 %v631_v18, %v341_v42  ;;  %v372_v53 = vadd.f32 %v631_v18, %v349_v43  ;;  %v392_v35 = vld [vmem:[%s765_s4 + $0x68] sm:$0xff] }
  0xfc   :  { %v413_v54 = vmax.f32 %v397_v44, 0.0  ;;  %v421_v55 = vmax.f32 %v405_v45, 0.0  ;;  %v398_v56 = vadd.f32 %v382_v40, %v366_v46  ;;  %v406_v57 = vadd.f32 %v390_v41, %v374_v47 }
  0xfd   :  { %v411_v58 = vmax.f32 %v395_v50, 0.0  ;;  %v419_v59 = vmax.f32 %v403_v51, 0.0  ;;  %v396_v60 = vadd.f32 %v380_v48, %v364_v52  ;;  %v404_v61 = vadd.f32 %v388_v49, %v372_v53  ;;  %v503_v62 = vpop.f32.mrb[4].mxu0  ;;  %v511_v63 = vpop.f32.mrb[4].mxu1 }
  0xfe   :  { %429 = vst [vmem:[%s766_s5 + $0x10] sm:$0xff] %v413_v54  ;;  %437 = vst [vmem:[%s766_s5 + $0x50] sm:$0xff] %v421_v55  ;;  %v414_v0 = vmax.f32 %v398_v56, 0.0  ;;  %v422_v1 = vmax.f32 %v406_v57, 0.0  ;;  %v346_v2 = vmul.f32 %v503_v62, %v626_v16  ;;  %v354_v3 = vmul.f32 %v511_v63, %v626_v16  ;;  %v235_v4 = vpop.f32.mrb[5].mxu0  ;;  %v267_v5 = vpop.f32.mrb[5].mxu1 }
  0xff   :  { %427 = vst [vmem:[%s766_s5] sm:$0xff] %v411_v58  ;;  %435 = vst [vmem:[%s766_s5 + $0x40] sm:$0xff] %v419_v59  ;;  %v412_v6 = vmax.f32 %v396_v60, 0.0  ;;  %v420_v7 = vmax.f32 %v404_v61, 0.0  ;;  %v344_v10 = vmul.f32 %v626_v16, %v235_v4  ;;  %v352_v11 = vmul.f32 %v626_v16, %v267_v5  ;;  %v504_v12 = vpop.f32.mrb[6].mxu0  ;;  %v512_v13 = vpop.f32.mrb[6].mxu1 }
 0x100   :  { %430 = vst [vmem:[%s766_s5 + $0x18] sm:$0xff] %v414_v0  ;;  %438 = vst [vmem:[%s766_s5 + $0x58] sm:$0xff] %v422_v1  ;;  %v369_v14 = vadd.f32 %v631_v18, %v346_v2  ;;  %v377_v15 = vadd.f32 %v631_v18, %v354_v3  ;;  %v347_v20 = vmul.f32 %v504_v12, %v626_v16  ;;  %v238_v22 = vpop.f32.mrb[7].mxu0  ;;  %v270_v23 = vpop.f32.mrb[7].mxu1 }
 0x101   :  { %v355_v21 = vmul.f32 %v512_v13, %v626_v16  ;;  %428 = vst [vmem:[%s766_s5 + $0x8] sm:$0xff] %v412_v6  ;;  %436 = vst [vmem:[%s766_s5 + $0x48] sm:$0xff] %v420_v7  ;;  %v367_v24 = vadd.f32 %v631_v18, %v344_v10  ;;  %v375_v25 = vadd.f32 %v631_v18, %v352_v11 }
 0x102   :  { %v345_v28 = vmul.f32 %v626_v16, %v238_v22  ;;  %v353_v29 = vmul.f32 %v626_v16, %v270_v23  ;;  %v401_v30 = vadd.f32 %v385_v8, %v369_v14  ;;  %v409_v31 = vadd.f32 %v393_v9, %v377_v15 }
 0x103   :  { %v370_v32 = vadd.f32 %v631_v18, %v347_v20  ;;  %v378_v33 = vadd.f32 %v631_v18, %v355_v21  ;;  %v399_v36 = vadd.f32 %v383_v17, %v367_v24  ;;  %v407_v37 = vadd.f32 %v391_v19, %v375_v25 }
 0x104   :  { %v368_v38 = vadd.f32 %v631_v18, %v345_v28  ;;  %v376_v16 = vadd.f32 %v631_v18, %v353_v29  ;;  %v417_v39 = vmax.f32 %v401_v30, 0.0  ;;  %v425_v40 = vmax.f32 %v409_v31, 0.0 }
 0x105   :  { %v402_v41 = vadd.f32 %v386_v26, %v370_v32  ;;  %v410_v42 = vadd.f32 %v394_v27, %v378_v33  ;;  %v415_v43 = vmax.f32 %v399_v36, 0.0  ;;  %v423_v44 = vmax.f32 %v407_v37, 0.0 }
 0x106   :  { %v400_v45 = vadd.f32 %v384_v34, %v368_v38  ;;  %v408_v46 = vadd.f32 %v392_v35, %v376_v16  ;;  %433 = vst [vmem:[%s766_s5 + $0x30] sm:$0xff] %v417_v39  ;;  %441 = vst [vmem:[%s766_s5 + $0x70] sm:$0xff] %v425_v40 }
 0x107   :  { %v418_v47 = vmax.f32 %v402_v41, 0.0  ;;  %v426_v48 = vmax.f32 %v410_v42, 0.0  ;;  %431 = vst [vmem:[%s766_s5 + $0x20] sm:$0xff] %v415_v43  ;;  %439 = vst [vmem:[%s766_s5 + $0x60] sm:$0xff] %v423_v44 }
 0x108   :  { %v416_v18 = vmax.f32 %v400_v45, 0.0  ;;  %v424_v49 = vmax.f32 %v408_v46, 0.0 }
 0x109   :  { %434 = vst [vmem:[%s766_s5 + $0x38] sm:$0xff] %v418_v47  ;;  %442 = vst [vmem:[%s766_s5 + $0x78] sm:$0xff] %v426_v48 }
 0x10a   :  { %432 = vst [vmem:[%s766_s5 + $0x28] sm:$0xff] %v416_v18  ;;  %440 = vst [vmem:[%s766_s5 + $0x68] sm:$0xff] %v424_v49 }

// kernel: resnet_forward.24
= control target key start
LH: loop header
LB: loop body
LE: loop exit
PB: predicated region body
PF: predicated region fallthrough
CT: control target
= control target key end

     0   :  { %s873_s1 = inlined_call_operand.vmem [shape: bf16[256,128], index: 1, kind: input, shape index: {}]   ;;  %s874_s0 = inlined_call_operand.vmem [shape: bf16[128,256], index: 0, kind: input, shape index: {}]   ;;  %s875_s2 = inlined_call_operand.vmem [shape: f32[1,128], index: 2, kind: input, shape index: {}]   ;;  %s876_s3 = inlined_call_operand.vmem [shape: f32[1,128], index: 3, kind: input, shape index: {}]   ;;  %s877_s4 = inlined_call_operand.vmem [shape: f32[128,128], index: 4, kind: output, shape index: {}]  }
   0x1   :  { %v622_v0 = vld [vmem:[%s873_s1 + $0x40] sm:$0xff]   ;;  %v624_v2 = vld [vmem:[%s873_s1 + $0x48] sm:$0xff]   ;;  %v626_v4 = vld [vmem:[%s873_s1 + $0x50] sm:$0xff]  }
   0x2   :  { %v623_v1 = vld [vmem:[%s873_s1] sm:$0xff]   ;;  %542 = vmatprep.subr.bf16.mxu0 %v622_v0  ;;  %606 = vmatprep.subr.bf16.mxu1 %v622_v0  ;;  %v625_v3 = vld [vmem:[%s873_s1 + $0x8] sm:$0xff]   ;;  %v627_v5 = vld [vmem:[%s873_s1 + $0x10] sm:$0xff]  }
   0x3   :  { %543 = vmatpush3.bf16.msra.mxu0 %v623_v1  ;;  %614 = vmatpush3.bf16.msra.mxu1 %v623_v1  ;;  %v628_v6 = vld [vmem:[%s873_s1 + $0x58] sm:$0xff]   ;;  %v630_v8 = vld [vmem:[%s873_s1 + $0x60] sm:$0xff]   ;;  %v632_v10 = vld [vmem:[%s873_s1 + $0x68] sm:$0xff]  }
   0x4   :  { %544 = vmatprep.subr.bf16.mxu0 %v624_v2  ;;  %607 = vmatprep.subr.bf16.mxu1 %v624_v2  ;;  %v629_v7 = vld [vmem:[%s873_s1 + $0x18] sm:$0xff]   ;;  %v631_v9 = vld [vmem:[%s873_s1 + $0x20] sm:$0xff]   ;;  %v633_v13 = vld [vmem:[%s873_s1 + $0x28] sm:$0xff]  }
   0x5   :  { %v640_v11 = vld [vmem:[%s874_s0 + $0x4] ss:$8 sps:$4 sm:$0xff]   ;;  %v634_v14 = vld [vmem:[%s873_s1 + $0x70] sm:$0xff]   ;;  %v636_v16 = vld [vmem:[%s873_s1 + $0x78] sm:$0xff]  }
   0x6   :  { %v643_v12 = vld [vmem:[%s874_s0 + $0x44] ss:$8 sps:$4 sm:$0xff]   ;;  %310 = vmatprep.mubr.bf16.mxu0 %v640_v11  ;;  %v635_v15 = vld [vmem:[%s873_s1 + $0x30] sm:$0xff]   ;;  %v637_v17 = vld [vmem:[%s873_s1 + $0x38] sm:$0xff]  }
   0x7   :  { %545 = vmatpush3.bf16.msra.mxu0 %v625_v3  ;;  %615 = vmatpush3.bf16.msra.mxu1 %v625_v3  ;;  %v638_v18 = vld [vmem:[%s874_s0] ss:$8 sps:$4 sm:$0xff]   ;;  %v644_v20 = vld [vmem:[%s874_s0 + $0x14] ss:$8 sps:$4 sm:$0xff]   ;;  %v648_v22 = vld [vmem:[%s874_s0 + $0x10] ss:$8 sps:$4 sm:$0xff]  }
   0x8   :  { %546 = vmatprep.subr.bf16.mxu0 %v626_v4  ;;  %608 = vmatprep.subr.bf16.mxu1 %v626_v4  ;;  %v641_v19 = vld [vmem:[%s874_s0 + $0x40] ss:$8 sps:$4 sm:$0xff]   ;;  %v646_v21 = vld [vmem:[%s874_s0 + $0x54] ss:$8 sps:$4 sm:$0xff]   ;;  %v649_v23 = vld [vmem:[%s874_s0 + $0x50] ss:$8 sps:$4 sm:$0xff]  }
   0x9   :  { %342 = vmatprep.mubr.bf16.mxu1 %v643_v12  ;;  %v650_v24 = vld [vmem:[%s874_s0 + $0x24] ss:$8 sps:$4 sm:$0xff]   ;;  %v654_v26 = vld [vmem:[%s874_s0 + $0x20] ss:$8 sps:$4 sm:$0xff]   ;;  %v656_v28 = vld [vmem:[%s874_s0 + $0x34] ss:$8 sps:$4 sm:$0xff]  }
   0xa   :  { %v652_v25 = vld [vmem:[%s874_s0 + $0x64] ss:$8 sps:$4 sm:$0xff]   ;;  %v655_v27 = vld [vmem:[%s874_s0 + $0x60] ss:$8 sps:$4 sm:$0xff]   ;;  %v658_v29 = vld [vmem:[%s874_s0 + $0x74] ss:$8 sps:$4 sm:$0xff]  }
   0xb   :  { %547 = vmatpush3.bf16.msra.mxu0 %v627_v5  ;;  %616 = vmatpush3.bf16.msra.mxu1 %v627_v5  ;;  %v660_v30 = vld [vmem:[%s874_s0 + $0x30] ss:$8 sps:$4 sm:$0xff]   ;;  %v786_v35 = vld [vmem:[%s875_s2] ss:$0 sm:$0xff] }
   0xc   :  { %548 = vmatprep.subr.bf16.mxu0 %v628_v6  ;;  %609 = vmatprep.subr.bf16.mxu1 %v628_v6  ;;  %v661_v31 = vld [vmem:[%s874_s0 + $0x70] ss:$8 sps:$4 sm:$0xff]   ;;  %v791_v41 = vld [vmem:[%s876_s3] ss:$0 sm:$0xff] }
   0xf   :  { %549 = vmatpush3.bf16.msra.mxu0 %v629_v7  ;;  %617 = vmatpush3.bf16.msra.mxu1 %v629_v7 }
  0x10   :  { %550 = vmatprep.subr.bf16.mxu0 %v630_v8  ;;  %610 = vmatprep.subr.bf16.mxu1 %v630_v8 }
  0x13   :  { %551 = vmatpush3.bf16.msra.mxu0 %v631_v9  ;;  %618 = vmatpush3.bf16.msra.mxu1 %v631_v9 }
  0x14   :  { %552 = vmatprep.subr.bf16.mxu0 %v632_v10  ;;  %611 = vmatprep.subr.bf16.mxu1 %v632_v10 }
  0x17   :  { %553 = vmatpush3.bf16.msra.mxu0 %v633_v13  ;;  %619 = vmatpush3.bf16.msra.mxu1 %v633_v13 }
  0x18   :  { %554 = vmatprep.subr.bf16.mxu0 %v634_v14  ;;  %612 = vmatprep.subr.bf16.mxu1 %v634_v14 }
  0x1b   :  { %555 = vmatpush3.bf16.msra.mxu0 %v635_v15  ;;  %620 = vmatpush3.bf16.msra.mxu1 %v635_v15 }
  0x1c   :  { %556 = vmatprep.subr.bf16.mxu0 %v636_v16  ;;  %613 = vmatprep.subr.bf16.mxu1 %v636_v16 }
  0x1f   :  { %557 = vmatpush3.bf16.msra.mxu0 %v637_v17  ;;  %621 = vmatpush3.bf16.msra.mxu1 %v637_v17 }
  0x22   :  { %311 = vmatmul.mubr.bf16.vlgmr.msra.gmra.mrb[0].mxu0 %v638_v18  ;;  %343 = vmatmul.mubr.bf16.vlgmr.msra.gmra.mrb[0].mxu1 %v641_v19 }
  0x23   :  { %318 = vmatprep.mubr.bf16.mxu0 %v644_v20  ;;  %350 = vmatprep.mubr.bf16.mxu1 %v646_v21 }
  0x2a   :  { %319 = vmatmul.mubr.bf16.gmra.mrb[4].mxu0 %v648_v22  ;;  %351 = vmatmul.mubr.bf16.gmra.mrb[4].mxu1 %v649_v23 }
  0x2b   :  { %326 = vmatprep.mubr.bf16.mxu0 %v650_v24  ;;  %358 = vmatprep.mubr.bf16.mxu1 %v652_v25 }
  0x32   :  { %327 = vmatmul.mubr.bf16.gmra.mrb[8].mxu0 %v654_v26  ;;  %359 = vmatmul.mubr.bf16.gmra.mrb[8].mxu1 %v655_v27 }
  0x33   :  { %334 = vmatprep.mubr.bf16.mxu0 %v656_v28  ;;  %366 = vmatprep.mubr.bf16.mxu1 %v658_v29 }
  0x3a   :  { %335 = vmatmul.mubr.bf16.gmra.mrb[12].mxu0 %v660_v30  ;;  %367 = vmatmul.mubr.bf16.gmra.mrb[12].mxu1 %v661_v31 }
  0xf5   :  { %v558_v32 = vpop.f32.mrb[0].mxu0  ;;  %v582_v33 = vpop.f32.mrb[0].mxu1 }
  0xf6   :  { %v559_v34 = vpop.f32.mrb[1].mxu0  ;;  %v583_v36 = vpop.f32.mrb[1].mxu1 }
  0xf7   :  { %v560_v37 = vadd.f32 %v559_v34, %v558_v32  ;;  %v584_v38 = vadd.f32 %v583_v36, %v582_v33  ;;  %v561_v39 = vpop.f32.mrb[2].mxu0  ;;  %v585_v40 = vpop.f32.mrb[2].mxu1 }
  0xf8   :  { %v562_v42 = vpop.f32.mrb[3].mxu0  ;;  %v586_v43 = vpop.f32.mrb[3].mxu1 }
  0xf9   :  { %v433_v44 = vmul.f32 %v560_v37, %v786_v35  ;;  %v441_v45 = vmul.f32 %v584_v38, %v786_v35  ;;  %v563_v46 = vadd.f32 %v562_v42, %v561_v39  ;;  %v587_v47 = vadd.f32 %v586_v43, %v585_v40 }
  0xfb   :  { %v456_v48 = vadd.f32 %v791_v41, %v433_v44  ;;  %v464_v49 = vadd.f32 %v791_v41, %v441_v45  ;;  %v434_v50 = vmul.f32 %v563_v46, %v786_v35  ;;  %v442_v51 = vmul.f32 %v587_v47, %v786_v35 }
  0xfd   :  { %v472_v52 = vmax.f32 %v456_v48, 0.0  ;;  %v480_v53 = vmax.f32 %v464_v49, 0.0  ;;  %v457_v54 = vadd.f32 %v791_v41, %v434_v50  ;;  %v465_v55 = vadd.f32 %v791_v41, %v442_v51  ;;  %v564_v56 = vpop.f32.mrb[4].mxu0  ;;  %v588_v57 = vpop.f32.mrb[4].mxu1 }
  0xfe   :  { %v565_v58 = vpop.f32.mrb[5].mxu0  ;;  %v589_v59 = vpop.f32.mrb[5].mxu1 }
  0xff   :  { %488 = vst [vmem:[%s877_s4] sm:$0xff] %v472_v52  ;;  %496 = vst [vmem:[%s877_s4 + $0x40] sm:$0xff] %v480_v53  ;;  %v473_v60 = vmax.f32 %v457_v54, 0.0  ;;  %v481_v61 = vmax.f32 %v465_v55, 0.0  ;;  %v566_v62 = vadd.f32 %v565_v58, %v564_v56  ;;  %v590_v63 = vadd.f32 %v589_v59, %v588_v57  ;;  %v567_v0 = vpop.f32.mrb[6].mxu0  ;;  %v591_v1 = vpop.f32.mrb[6].mxu1 }
 0x100   :  { %v568_v2 = vpop.f32.mrb[7].mxu0  ;;  %v592_v3 = vpop.f32.mrb[7].mxu1 }
 0x101   :  { %489 = vst [vmem:[%s877_s4 + $0x8] sm:$0xff] %v473_v60  ;;  %497 = vst [vmem:[%s877_s4 + $0x48] sm:$0xff] %v481_v61  ;;  %v435_v4 = vmul.f32 %v566_v62, %v786_v35  ;;  %v443_v5 = vmul.f32 %v590_v63, %v786_v35  ;;  %v569_v6 = vadd.f32 %v568_v2, %v567_v0 }
 0x102   :  { %v593_v7 = vadd.f32 %v592_v3, %v591_v1 }
 0x103   :  { %v458_v8 = vadd.f32 %v791_v41, %v435_v4  ;;  %v466_v9 = vadd.f32 %v791_v41, %v443_v5  ;;  %v436_v10 = vmul.f32 %v569_v6, %v786_v35 }
 0x104   :  { %v444_v11 = vmul.f32 %v593_v7, %v786_v35 }
 0x105   :  { %v474_v12 = vmax.f32 %v458_v8, 0.0  ;;  %v482_v13 = vmax.f32 %v466_v9, 0.0  ;;  %v459_v14 = vadd.f32 %v791_v41, %v436_v10  ;;  %v570_v16 = vpop.f32.mrb[8].mxu0  ;;  %v594_v17 = vpop.f32.mrb[8].mxu1 }
 0x106   :  { %v467_v15 = vadd.f32 %v791_v41, %v444_v11  ;;  %v571_v18 = vpop.f32.mrb[9].mxu0  ;;  %v595_v19 = vpop.f32.mrb[9].mxu1 }
 0x107   :  { %490 = vst [vmem:[%s877_s4 + $0x10] sm:$0xff] %v474_v12  ;;  %498 = vst [vmem:[%s877_s4 + $0x50] sm:$0xff] %v482_v13  ;;  %v475_v20 = vmax.f32 %v459_v14, 0.0  ;;  %v572_v22 = vadd.f32 %v571_v18, %v570_v16  ;;  %v596_v23 = vadd.f32 %v595_v19, %v594_v17  ;;  %v573_v24 = vpop.f32.mrb[10].mxu0  ;;  %v597_v25 = vpop.f32.mrb[10].mxu1 }
 0x108   :  { %v483_v21 = vmax.f32 %v467_v15, 0.0  ;;  %v574_v26 = vpop.f32.mrb[11].mxu0  ;;  %v598_v27 = vpop.f32.mrb[11].mxu1 }
 0x109   :  { %491 = vst [vmem:[%s877_s4 + $0x18] sm:$0xff] %v475_v20  ;;  %v437_v28 = vmul.f32 %v572_v22, %v786_v35  ;;  %v445_v29 = vmul.f32 %v596_v23, %v786_v35  ;;  %v575_v30 = vadd.f32 %v574_v26, %v573_v24  ;;  %v599_v31 = vadd.f32 %v598_v27, %v597_v25 }
 0x10a   :  { %499 = vst [vmem:[%s877_s4 + $0x58] sm:$0xff] %v483_v21 }
 0x10b   :  { %v460_v32 = vadd.f32 %v791_v41, %v437_v28  ;;  %v468_v33 = vadd.f32 %v791_v41, %v445_v29  ;;  %v438_v34 = vmul.f32 %v575_v30, %v786_v35  ;;  %v446_v36 = vmul.f32 %v599_v31, %v786_v35 }
 0x10d   :  { %v476_v37 = vmax.f32 %v460_v32, 0.0  ;;  %v484_v38 = vmax.f32 %v468_v33, 0.0  ;;  %v461_v39 = vadd.f32 %v791_v41, %v438_v34  ;;  %v469_v40 = vadd.f32 %v791_v41, %v446_v36  ;;  %v576_v42 = vpop.f32.mrb[12].mxu0  ;;  %v600_v43 = vpop.f32.mrb[12].mxu1 }
 0x10e   :  { %v577_v44 = vpop.f32.mrb[13].mxu0  ;;  %v601_v45 = vpop.f32.mrb[13].mxu1 }
 0x10f   :  { %492 = vst [vmem:[%s877_s4 + $0x20] sm:$0xff] %v476_v37  ;;  %500 = vst [vmem:[%s877_s4 + $0x60] sm:$0xff] %v484_v38  ;;  %v477_v46 = vmax.f32 %v461_v39, 0.0  ;;  %v485_v47 = vmax.f32 %v469_v40, 0.0  ;;  %v578_v48 = vadd.f32 %v577_v44, %v576_v42  ;;  %v602_v49 = vadd.f32 %v601_v45, %v600_v43  ;;  %v579_v50 = vpop.f32.mrb[14].mxu0  ;;  %v603_v51 = vpop.f32.mrb[14].mxu1 }
 0x110   :  { %v580_v52 = vpop.f32.mrb[15].mxu0  ;;  %v604_v53 = vpop.f32.mrb[15].mxu1 }
 0x111   :  { %493 = vst [vmem:[%s877_s4 + $0x28] sm:$0xff] %v477_v46  ;;  %501 = vst [vmem:[%s877_s4 + $0x68] sm:$0xff] %v485_v47  ;;  %v439_v54 = vmul.f32 %v578_v48, %v786_v35  ;;  %v447_v55 = vmul.f32 %v602_v49, %v786_v35  ;;  %v581_v56 = vadd.f32 %v580_v52, %v579_v50 }
 0x112   :  { %v605_v57 = vadd.f32 %v604_v53, %v603_v51 }
 0x113   :  { %v462_v58 = vadd.f32 %v791_v41, %v439_v54  ;;  %v470_v59 = vadd.f32 %v791_v41, %v447_v55  ;;  %v440_v60 = vmul.f32 %v581_v56, %v786_v35 }
 0x114   :  { %v448_v61 = vmul.f32 %v605_v57, %v786_v35 }
 0x115   :  { %v478_v62 = vmax.f32 %v462_v58, 0.0  ;;  %v486_v63 = vmax.f32 %v470_v59, 0.0  ;;  %v463_v0 = vadd.f32 %v791_v41, %v440_v60 }
 0x116   :  { %v471_v1 = vadd.f32 %v791_v41, %v448_v61 }
 0x117   :  { %494 = vst [vmem:[%s877_s4 + $0x30] sm:$0xff] %v478_v62  ;;  %502 = vst [vmem:[%s877_s4 + $0x70] sm:$0xff] %v486_v63  ;;  %v479_v2 = vmax.f32 %v463_v0, 0.0 }
 0x118   :  { %v487_v3 = vmax.f32 %v471_v1, 0.0 }
 0x119   :  { %495 = vst [vmem:[%s877_s4 + $0x38] sm:$0xff] %v479_v2 }
 0x11a   :  { %503 = vst [vmem:[%s877_s4 + $0x78] sm:$0xff] %v487_v3 }

// kernel: resnet_forward.28
= control target key start
LH: loop header
LB: loop body
LE: loop exit
PB: predicated region body
PF: predicated region fallthrough
CT: control target
= control target key end

     0   :  { %s1216_s1 = inlined_call_operand.vmem [shape: bf16[384,128], index: 1, kind: input, shape index: {}]   ;;  %s1217_s0 = inlined_call_operand.vmem [shape: bf16[128,384], index: 0, kind: input, shape index: {}]   ;;  %s1218_s2 = inlined_call_operand.vmem [shape: f32[1,128], index: 2, kind: input, shape index: {}]   ;;  %s1219_s3 = inlined_call_operand.vmem [shape: f32[1,128], index: 3, kind: input, shape index: {}]   ;;  %s1220_s4 = inlined_call_operand.vmem [shape: f32[128,128], index: 4, kind: output, shape index: {}]  }
   0x1   :  { %v895_v0 = vld [vmem:[%s1216_s1 + $0x40] sm:$0xff]   ;;  %v898_v3 = vld [vmem:[%s1216_s1 + $0x48] sm:$0xff]   ;;  %v901_v6 = vld [vmem:[%s1216_s1 + $0x50] sm:$0xff]  }
   0x2   :  { %v896_v1 = vld [vmem:[%s1216_s1] sm:$0xff]   ;;  %783 = vmatprep.subr.bf16.mxu0 %v895_v0  ;;  %v899_v4 = vld [vmem:[%s1216_s1 + $0x8] sm:$0xff]   ;;  %v902_v7 = vld [vmem:[%s1216_s1 + $0x10] sm:$0xff]  }
   0x3   :  { %v897_v2 = vld [vmem:[%s1216_s1 + $0x80] sm:$0xff]   ;;  %784 = vmatpush3.bf16.msra.mxu0 %v896_v1  ;;  %v900_v5 = vld [vmem:[%s1216_s1 + $0x88] sm:$0xff]   ;;  %v903_v8 = vld [vmem:[%s1216_s1 + $0x90] sm:$0xff]  }
   0x4   :  { %863 = vmatprep.subr.bf16.mxu1 %v897_v2  ;;  %785 = vmatprep.subr.bf16.mxu0 %v898_v3  ;;  %v904_v9 = vld [vmem:[%s1216_s1 + $0x58] sm:$0xff]   ;;  %v907_v12 = vld [vmem:[%s1216_s1 + $0x60] sm:$0xff]   ;;  %v910_v15 = vld [vmem:[%s1216_s1 + $0x68] sm:$0xff]  }
   0x5   :  { %864 = vmatpush3.bf16.msra.mxu1 %v897_v2  ;;  %v905_v10 = vld [vmem:[%s1216_s1 + $0x18] sm:$0xff]   ;;  %v909_v13 = vld [vmem:[%s1216_s1 + $0xa0] sm:$0xff]   ;;  %v912_v16 = vld [vmem:[%s1216_s1 + $0xa8] sm:$0xff]  }
   0x6   :  { %865 = vmatprep.subr.bf16.mxu1 %v900_v5  ;;  %v906_v11 = vld [vmem:[%s1216_s1 + $0x98] sm:$0xff]   ;;  %v908_v14 = vld [vmem:[%s1216_s1 + $0x20] sm:$0xff]   ;;  %v911_v17 = vld [vmem:[%s1216_s1 + $0x28] sm:$0xff]  }
   0x7   :  { %786 = vmatpush3.bf16.msra.mxu0 %v899_v4  ;;  %v913_v18 = vld [vmem:[%s1216_s1 + $0x70] sm:$0xff]   ;;  %v916_v21 = vld [vmem:[%s1216_s1 + $0x78] sm:$0xff]   ;;  %v919_v26 = vld [vmem:[%s1217_s0] ss:$12 sps:$4 sm:$0xff]  }
   0x8   :  { %787 = vmatprep.subr.bf16.mxu0 %v901_v6  ;;  %v914_v19 = vld [vmem:[%s1216_s1 + $0x30] sm:$0xff]   ;;  %v918_v22 = vld [vmem:[%s1216_s1 + $0xb8] sm:$0xff]   ;;  %v923_v28 = vld [vmem:[%s1217_s0 + $0x20] ss:$12 sps:$4 sm:$0xff]  }
   0x9   :  { %866 = vmatpush3.bf16.msra.mxu1 %v900_v5  ;;  %v915_v20 = vld [vmem:[%s1216_s1 + $0xb0] sm:$0xff]   ;;  %v917_v25 = vld [vmem:[%s1216_s1 + $0x38] sm:$0xff]   ;;  %v939_v36 = vld [vmem:[%s1217_s0 + $0x80] ss:$12 sps:$4 sm:$0xff]  }
   0xa   :  { %867 = vmatprep.subr.bf16.mxu1 %v903_v8  ;;  %v921_v23 = vld [vmem:[%s1217_s0 + $0x4] ss:$12 sps:$4 sm:$0xff]   ;;  %v922_v24 = vld [vmem:[%s1217_s0 + $0x8] ss:$12 sps:$4 sm:$0xff]   ;;  %v932_v35 = vld [vmem:[%s1217_s0 + $0x4c] ss:$12 sps:$4 sm:$0xff]  }
   0xb   :  { %788 = vmatpush3.bf16.msra.mxu0 %v902_v7  ;;  %438 = vmatprep.mubr.bf16.mxu0 %v921_v23  ;;  %v924_v27 = vld [vmem:[%s1217_s0 + $0x1c] ss:$12 sps:$4 sm:$0xff]   ;;  %v930_v29 = vld [vmem:[%s1217_s0 + $0x38] ss:$12 sps:$4 sm:$0xff]   ;;  %v927_v31 = vld [vmem:[%s1217_s0 + $0x34] ss:$12 sps:$4 sm:$0xff]  }
   0xc   :  { %789 = vmatprep.subr.bf16.mxu0 %v904_v9  ;;  %879 = vmatprep.mubr.bf16.mxu1 %v922_v24  ;;  %v926_v30 = vld [vmem:[%s1217_s0 + $0x18] ss:$12 sps:$4 sm:$0xff]   ;;  %v931_v32 = vld [vmem:[%s1217_s0 + $0x50] ss:$12 sps:$4 sm:$0xff]   ;;  %v938_v33 = vld [vmem:[%s1217_s0 + $0x68] ss:$12 sps:$4 sm:$0xff]  }
   0xd   :  { %868 = vmatpush3.bf16.msra.mxu1 %v903_v8  ;;  %v929_v34 = vld [vmem:[%s1217_s0 + $0x30] ss:$12 sps:$4 sm:$0xff]   ;;  %v946_v37 = vld [vmem:[%s1217_s0 + $0x98] ss:$12 sps:$4 sm:$0xff]   ;;  %v934_v38 = vld [vmem:[%s1217_s0 + $0x48] ss:$12 sps:$4 sm:$0xff]  }
   0xe   :  { %869 = vmatprep.subr.bf16.mxu1 %v906_v11  ;;  %v935_v39 = vld [vmem:[%s1217_s0 + $0x64] ss:$12 sps:$4 sm:$0xff]   ;;  %v937_v41 = vld [vmem:[%s1217_s0 + $0x60] ss:$12 sps:$4 sm:$0xff]   ;;  %v940_v42 = vld [vmem:[%s1217_s0 + $0x7c] ss:$12 sps:$4 sm:$0xff]  }
   0xf   :  { %790 = vmatpush3.bf16.msra.mxu0 %v905_v10  ;;  %v947_v40 = vld [vmem:[%s1217_s0 + $0xb0] ss:$12 sps:$4 sm:$0xff]   ;;  %v942_v43 = vld [vmem:[%s1217_s0 + $0x78] ss:$12 sps:$4 sm:$0xff]   ;;  %v943_v44 = vld [vmem:[%s1217_s0 + $0x94] ss:$12 sps:$4 sm:$0xff]  }
  0x10   :  { %791 = vmatprep.subr.bf16.mxu0 %v907_v12  ;;  %v945_v45 = vld [vmem:[%s1217_s0 + $0x90] ss:$12 sps:$4 sm:$0xff]   ;;  %v948_v46 = vld [vmem:[%s1217_s0 + $0xac] ss:$12 sps:$4 sm:$0xff]   ;;  %v950_v47 = vld [vmem:[%s1217_s0 + $0xa8] ss:$12 sps:$4 sm:$0xff]  }
  0x11   :  { %870 = vmatpush3.bf16.msra.mxu1 %v906_v11  ;;  %v1123_v55 = vld [vmem:[%s1218_s2] ss:$0 sm:$0xff] }
  0x12   :  { %871 = vmatprep.subr.bf16.mxu1 %v909_v13  ;;  %v1128_v59 = vld [vmem:[%s1219_s3] ss:$0 sm:$0xff] }
  0x13   :  { %792 = vmatpush3.bf16.msra.mxu0 %v908_v14 }
  0x14   :  { %793 = vmatprep.subr.bf16.mxu0 %v910_v15 }
  0x15   :  { %872 = vmatpush3.bf16.msra.mxu1 %v909_v13 }
  0x16   :  { %873 = vmatprep.subr.bf16.mxu1 %v912_v16 }
  0x17   :  { %794 = vmatpush3.bf16.msra.mxu0 %v911_v17 }
  0x18   :  { %795 = vmatprep.subr.bf16.mxu0 %v913_v18 }
  0x19   :  { %874 = vmatpush3.bf16.msra.mxu1 %v912_v16 }
  0x1a   :  { %875 = vmatprep.subr.bf16.mxu1 %v915_v20 }
  0x1b   :  { %796 = vmatpush3.bf16.msra.mxu0 %v914_v19 }
  0x1c   :  { %797 = vmatprep.subr.bf16.mxu0 %v916_v21 }
  0x1d   :  { %876 = vmatpush3.bf16.msra.mxu1 %v915_v20 }
  0x1e   :  { %877 = vmatprep.subr.bf16.mxu1 %v918_v22 }
  0x1f   :  { %798 = vmatpush3.bf16.msra.mxu0 %v917_v25 }
  0x21   :  { %878 = vmatpush3.bf16.msra.mxu1 %v918_v22 }
  0x22   :  { %439 = vmatmul.mubr.bf16.vlgmr.msra.gmra.mrb[0].mxu0 %v919_v26 }
  0x23   :  { %446 = vmatprep.mubr.bf16.mxu0 %v924_v27 }
  0x24   :  { %880 = vmatmul.mubr.bf16.vlgmr.msra.gmra.mrb[0].mxu1 %v923_v28 }
  0x25   :  { %883 = vmatprep.mubr.bf16.mxu1 %v930_v29 }
  0x2a   :  { %447 = vmatmul.mubr.bf16.gmra.mrb[4].mxu0 %v926_v30 }
  0x2b   :  { %454 = vmatprep.mubr.bf16.mxu0 %v927_v31 }
  0x2c   :  { %884 = vmatmul.mubr.bf16.gmra.mrb[4].mxu1 %v931_v32 }
  0x2d   :  { %887 = vmatprep.mubr.bf16.mxu1 %v938_v33 }
  0x32   :  { %455 = vmatmul.mubr.bf16.gmra.mrb[8].mxu0 %v929_v34 }
  0x33   :  { %462 = vmatprep.mubr.bf16.mxu0 %v932_v35 }
  0x34   :  { %888 = vmatmul.mubr.bf16.gmra.mrb[8].mxu1 %v939_v36 }
  0x35   :  { %891 = vmatprep.mubr.bf16.mxu1 %v946_v37 }
  0x3a   :  { %463 = vmatmul.mubr.bf16.gmra.mrb[12].mxu0 %v934_v38 }
  0x3b   :  { %470 = vmatprep.mubr.bf16.mxu0 %v935_v39 }
  0x3c   :  { %892 = vmatmul.mubr.bf16.gmra.mrb[12].mxu1 %v947_v40 }
  0x42   :  { %471 = vmatmul.mubr.bf16.gmra.mrb[16].mxu0 %v937_v41 }
  0x43   :  { %478 = vmatprep.mubr.bf16.mxu0 %v940_v42 }
  0x4a   :  { %479 = vmatmul.mubr.bf16.gmra.mrb[20].mxu0 %v942_v43 }
  0x4b   :  { %486 = vmatprep.mubr.bf16.mxu0 %v943_v44 }
  0x52   :  { %487 = vmatmul.mubr.bf16.gmra.mrb[24].mxu0 %v945_v45 }
  0x53   :  { %494 = vmatprep.mubr.bf16.mxu0 %v948_v46 }
  0x5a   :  { %495 = vmatmul.mubr.bf16.gmra.mrb[28].mxu0 %v950_v47 }
  0xf5   :  { %v799_v48 = vpop.f32.mrb[0].mxu0 }
  0xf6   :  { %v800_v49 = vpop.f32.mrb[1].mxu0 }
  0xf7   :  { %v801_v50 = vadd.f32 %v800_v49, %v799_v48  ;;  %v802_v51 = vpop.f32.mrb[2].mxu0  ;;  %v881_v52 = vpop.f32.mrb[0].mxu1 }
  0xf8   :  { %v803_v53 = vpop.f32.mrb[3].mxu0  ;;  %v537_v54 = vpop.f32.mrb[1].mxu1 }
  0xf9   :  { %v804_v56 = vadd.f32 %v803_v53, %v802_v51  ;;  %v538_v57 = vadd.f32 %v801_v50, %v537_v54  ;;  %v882_v58 = vpop.f32.mrb[2].mxu1 }
  0xfa   :  { %v540_v60 = vpop.f32.mrb[3].mxu1 }
  0xfb   :  { %v658_v61 = vmul.f32 %v1123_v55, %v538_v57  ;;  %v541_v62 = vadd.f32 %v804_v56, %v540_v60 }
  0xfd   :  { %v681_v63 = vadd.f32 %v1128_v59, %v658_v61  ;;  %v659_v0 = vmul.f32 %v1123_v55, %v541_v62  ;;  %v805_v1 = vpop.f32.mrb[4].mxu0 }
  0xfe   :  { %v806_v2 = vpop.f32.mrb[5].mxu0 }
  0xff   :  { %v697_v3 = vmax.f32 %v681_v63, 0.0  ;;  %v682_v4 = vadd.f32 %v1128_v59, %v659_v0  ;;  %v807_v5 = vadd.f32 %v806_v2, %v805_v1  ;;  %v808_v6 = vpop.f32.mrb[6].mxu0  ;;  %v885_v7 = vpop.f32.mrb[4].mxu1 }
 0x100   :  { %v809_v8 = vpop.f32.mrb[7].mxu0  ;;  %v553_v9 = vpop.f32.mrb[5].mxu1 }
 0x101   :  { %713 = vst [vmem:[%s1220_s4] sm:$0xff] %v697_v3  ;;  %v698_v10 = vmax.f32 %v682_v4, 0.0  ;;  %v546_v11 = vadd.f32 %v881_v52, %v807_v5  ;;  %v810_v12 = vadd.f32 %v809_v8, %v808_v6  ;;  %v886_v13 = vpop.f32.mrb[6].mxu1 }
 0x102   :  { %v556_v14 = vpop.f32.mrb[7].mxu1 }
 0x103   :  { %714 = vst [vmem:[%s1220_s4 + $0x8] sm:$0xff] %v698_v10  ;;  %v660_v15 = vmul.f32 %v1123_v55, %v546_v11  ;;  %v549_v16 = vadd.f32 %v882_v58, %v810_v12 }
 0x105   :  { %v683_v17 = vadd.f32 %v1128_v59, %v660_v15  ;;  %v661_v18 = vmul.f32 %v1123_v55, %v549_v16  ;;  %v811_v19 = vpop.f32.mrb[8].mxu0 }
 0x106   :  { %v812_v20 = vpop.f32.mrb[9].mxu0 }
 0x107   :  { %v699_v21 = vmax.f32 %v683_v17, 0.0  ;;  %v684_v22 = vadd.f32 %v1128_v59, %v661_v18  ;;  %v813_v23 = vadd.f32 %v812_v20, %v811_v19  ;;  %v814_v24 = vpop.f32.mrb[10].mxu0  ;;  %v889_v25 = vpop.f32.mrb[8].mxu1 }
 0x108   :  { %v815_v26 = vpop.f32.mrb[11].mxu0  ;;  %v569_v27 = vpop.f32.mrb[9].mxu1 }
 0x109   :  { %715 = vst [vmem:[%s1220_s4 + $0x10] sm:$0xff] %v699_v21  ;;  %v700_v28 = vmax.f32 %v684_v22, 0.0  ;;  %v816_v29 = vadd.f32 %v815_v26, %v814_v24  ;;  %v554_v30 = vadd.f32 %v813_v23, %v553_v9  ;;  %v890_v31 = vpop.f32.mrb[10].mxu1 }
 0x10a   :  { %v572_v32 = vpop.f32.mrb[11].mxu1 }
 0x10b   :  { %716 = vst [vmem:[%s1220_s4 + $0x18] sm:$0xff] %v700_v28  ;;  %v662_v33 = vmul.f32 %v1123_v55, %v554_v30  ;;  %v557_v34 = vadd.f32 %v816_v29, %v556_v14 }
 0x10d   :  { %v685_v35 = vadd.f32 %v1128_v59, %v662_v33  ;;  %v663_v36 = vmul.f32 %v1123_v55, %v557_v34  ;;  %v817_v37 = vpop.f32.mrb[12].mxu0 }
 0x10e   :  { %v818_v38 = vpop.f32.mrb[13].mxu0 }
 0x10f   :  { %v701_v39 = vmax.f32 %v685_v35, 0.0  ;;  %v686_v40 = vadd.f32 %v1128_v59, %v663_v36  ;;  %v819_v41 = vadd.f32 %v818_v38, %v817_v37  ;;  %v820_v42 = vpop.f32.mrb[14].mxu0  ;;  %v1154_v43 = vpop.f32.mrb[12].mxu1 }
 0x110   :  { %v821_v44 = vpop.f32.mrb[15].mxu0  ;;  %v585_v45 = vpop.f32.mrb[13].mxu1 }
 0x111   :  { %717 = vst [vmem:[%s1220_s4 + $0x20] sm:$0xff] %v701_v39  ;;  %v702_v46 = vmax.f32 %v686_v40, 0.0  ;;  %v562_v47 = vadd.f32 %v885_v7, %v819_v41  ;;  %v822_v48 = vadd.f32 %v821_v44, %v820_v42  ;;  %v1159_v49 = vpop.f32.mrb[14].mxu1 }
 0x112   :  { %v588_v50 = vpop.f32.mrb[15].mxu1 }
 0x113   :  { %718 = vst [vmem:[%s1220_s4 + $0x28] sm:$0xff] %v702_v46  ;;  %v664_v51 = vmul.f32 %v1123_v55, %v562_v47  ;;  %v565_v52 = vadd.f32 %v886_v13, %v822_v48 }
 0x115   :  { %v687_v53 = vadd.f32 %v1128_v59, %v664_v51  ;;  %v665_v54 = vmul.f32 %v1123_v55, %v565_v52  ;;  %v823_v56 = vpop.f32.mrb[16].mxu0 }
 0x116   :  { %v824_v57 = vpop.f32.mrb[17].mxu0 }
 0x117   :  { %v703_v58 = vmax.f32 %v687_v53, 0.0  ;;  %v688_v60 = vadd.f32 %v1128_v59, %v665_v54  ;;  %v825_v61 = vadd.f32 %v824_v57, %v823_v56  ;;  %v826_v62 = vpop.f32.mrb[18].mxu0 }
 0x118   :  { %v827_v63 = vpop.f32.mrb[19].mxu0 }
 0x119   :  { %719 = vst [vmem:[%s1220_s4 + $0x30] sm:$0xff] %v703_v58  ;;  %v704_v0 = vmax.f32 %v688_v60, 0.0  ;;  %v828_v1 = vadd.f32 %v827_v63, %v826_v62  ;;  %v570_v2 = vadd.f32 %v825_v61, %v569_v27 }
 0x11b   :  { %720 = vst [vmem:[%s1220_s4 + $0x38] sm:$0xff] %v704_v0  ;;  %v666_v3 = vmul.f32 %v1123_v55, %v570_v2  ;;  %v573_v4 = vadd.f32 %v828_v1, %v572_v32 }
 0x11d   :  { %v689_v5 = vadd.f32 %v1128_v59, %v666_v3  ;;  %v667_v6 = vmul.f32 %v1123_v55, %v573_v4  ;;  %v829_v7 = vpop.f32.mrb[20].mxu0 }
 0x11e   :  { %v830_v8 = vpop.f32.mrb[21].mxu0 }
 0x11f   :  { %v705_v9 = vmax.f32 %v689_v5, 0.0  ;;  %v690_v10 = vadd.f32 %v1128_v59, %v667_v6  ;;  %v831_v11 = vadd.f32 %v830_v8, %v829_v7  ;;  %v832_v12 = vpop.f32.mrb[22].mxu0 }
 0x120   :  { %v833_v13 = vpop.f32.mrb[23].mxu0 }
 0x121   :  { %721 = vst [vmem:[%s1220_s4 + $0x40] sm:$0xff] %v705_v9  ;;  %v706_v14 = vmax.f32 %v690_v10, 0.0  ;;  %v578_v15 = vadd.f32 %v889_v25, %v831_v11  ;;  %v834_v16 = vadd.f32 %v833_v13, %v832_v12 }
 0x123   :  { %722 = vst [vmem:[%s1220_s4 + $0x48] sm:$0xff] %v706_v14  ;;  %v668_v17 = vmul.f32 %v1123_v55, %v578_v15  ;;  %v581_v18 = vadd.f32 %v890_v31, %v834_v16 }
 0x125   :  { %v691_v19 = vadd.f32 %v1128_v59, %v668_v17  ;;  %v669_v20 = vmul.f32 %v1123_v55, %v581_v18  ;;  %v835_v21 = vpop.f32.mrb[24].mxu0 }
 0x126   :  { %v836_v22 = vpop.f32.mrb[25].mxu0 }
 0x127   :  { %v707_v23 = vmax.f32 %v691_v19, 0.0  ;;  %v692_v24 = vadd.f32 %v1128_v59, %v669_v20  ;;  %v837_v26 = vadd.f32 %v836_v22, %v835_v21  ;;  %v838_v27 = vpop.f32.mrb[26].mxu0 }
 0x128   :  { %v839_v25 = vpop.f32.mrb[27].mxu0 }
 0x129   :  { %723 = vst [vmem:[%s1220_s4 + $0x50] sm:$0xff] %v707_v23  ;;  %v708_v28 = vmax.f32 %v692_v24, 0.0  ;;  %v840_v29 = vadd.f32 %v839_v25, %v838_v27  ;;  %v586_v30 = vadd.f32 %v837_v26, %v585_v45 }
 0x12b   :  { %724 = vst [vmem:[%s1220_s4 + $0x58] sm:$0xff] %v708_v28  ;;  %v670_v31 = vmul.f32 %v1123_v55, %v586_v30  ;;  %v589_v32 = vadd.f32 %v840_v29, %v588_v50 }
 0x12d   :  { %v693_v33 = vadd.f32 %v1128_v59, %v670_v31  ;;  %v671_v34 = vmul.f32 %v1123_v55, %v589_v32  ;;  %v841_v35 = vpop.f32.mrb[28].mxu0 }
 0x12e   :  { %v842_v36 = vpop.f32.mrb[29].mxu0 }
 0x12f   :  { %v709_v37 = vmax.f32 %v693_v33, 0.0  ;;  %v694_v38 = vadd.f32 %v1128_v59, %v671_v34  ;;  %v843_v39 = vadd.f32 %v842_v36, %v841_v35  ;;  %v844_v40 = vpop.f32.mrb[30].mxu0 }
 0x130   :  { %v845_v41 = vpop.f32.mrb[31].mxu0 }
 0x131   :  { %725 = vst [vmem:[%s1220_s4 + $0x60] sm:$0xff] %v709_v37  ;;  %v710_v42 = vmax.f32 %v694_v38, 0.0  ;;  %v594_v44 = vadd.f32 %v1154_v43, %v843_v39  ;;  %v846_v45 = vadd.f32 %v845_v41, %v844_v40 }
 0x133   :  { %726 = vst [vmem:[%s1220_s4 + $0x68] sm:$0xff] %v710_v42  ;;  %v672_v46 = vmul.f32 %v1123_v55, %v594_v44  ;;  %v597_v47 = vadd.f32 %v1159_v49, %v846_v45 }
 0x135   :  { %v695_v48 = vadd.f32 %v1128_v59, %v672_v46  ;;  %v673_v50 = vmul.f32 %v1123_v55, %v597_v47 }
 0x137   :  { %v711_v51 = vmax.f32 %v695_v48, 0.0  ;;  %v696_v52 = vadd.f32 %v1128_v59, %v673_v50 }
 0x139   :  { %727 = vst [vmem:[%s1220_s4 + $0x70] sm:$0xff] %v711_v51  ;;  %v712_v43 = vmax.f32 %v696_v52, 0.0 }
 0x13b   :  { %728 = vst [vmem:[%s1220_s4 + $0x78] sm:$0xff] %v712_v43 }

// kernel: resnet_forward.32
= control target key start
LH: loop header
LB: loop body
LE: loop exit
PB: predicated region body
PF: predicated region fallthrough
CT: control target
= control target key end

     0   :  { %s1815_s1 = inlined_call_operand.vmem [shape: bf16[640,128], index: 1, kind: input, shape index: {}]   ;;  %s1816_s0 = inlined_call_operand.vmem [shape: bf16[128,640], index: 0, kind: input, shape index: {}]   ;;  %s1817_s2 = inlined_call_operand.vmem [shape: f32[1,128], index: 2, kind: input, shape index: {}]   ;;  %s1818_s3 = inlined_call_operand.vmem [shape: f32[1,128], index: 3, kind: input, shape index: {}]   ;;  %s1819_s4 = inlined_call_operand.vmem [shape: f32[128,128], index: 4, kind: output, shape index: {}]  }
   0x1   :  { %v1328_v0 = vld [vmem:[%s1815_s1 + $0x40] sm:$0xff]   ;;  %v1332_v4 = vld [vmem:[%s1815_s1 + $0x48] sm:$0xff]   ;;  %v1336_v8 = vld [vmem:[%s1815_s1 + $0x50] sm:$0xff]  }
   0x2   :  { %v1329_v1 = vld [vmem:[%s1815_s1 + $0xc0] sm:$0xff]   ;;  %1136 = vmatprep.subr.bf16.mxu0 %v1328_v0  ;;  %v1333_v5 = vld [vmem:[%s1815_s1 + $0xc8] sm:$0xff]   ;;  %v1337_v9 = vld [vmem:[%s1815_s1 + $0xd0] sm:$0xff]  }
   0x3   :  { %v1330_v2 = vld [vmem:[%s1815_s1] sm:$0xff]   ;;  %1200 = vmatprep.subr.bf16.mxu1 %v1329_v1  ;;  %v1334_v6 = vld [vmem:[%s1815_s1 + $0x8] sm:$0xff]   ;;  %v1338_v10 = vld [vmem:[%s1815_s1 + $0x10] sm:$0xff]  }
   0x4   :  { %v1331_v3 = vld [vmem:[%s1815_s1 + $0x80] sm:$0xff]   ;;  %1137 = vmatpush3.bf16.msra.mxu0 %v1330_v2  ;;  %v1335_v7 = vld [vmem:[%s1815_s1 + $0x88] sm:$0xff]   ;;  %v1339_v11 = vld [vmem:[%s1815_s1 + $0x90] sm:$0xff]  }
   0x5   :  { %1201 = vmatpush3.bf16.msra.mxu1 %v1331_v3  ;;  %1138 = vmatprep.subr.bf16.mxu0 %v1332_v4  ;;  %v1340_v12 = vld [vmem:[%s1815_s1 + $0x58] sm:$0xff]   ;;  %v1344_v16 = vld [vmem:[%s1815_s1 + $0x60] sm:$0xff]   ;;  %v1348_v20 = vld [vmem:[%s1815_s1 + $0x68] sm:$0xff]  }
   0x6   :  { %1202 = vmatprep.subr.bf16.mxu1 %v1333_v5  ;;  %v1341_v13 = vld [vmem:[%s1815_s1 + $0xd8] sm:$0xff]   ;;  %v1345_v17 = vld [vmem:[%s1815_s1 + $0xe0] sm:$0xff]   ;;  %v1349_v21 = vld [vmem:[%s1815_s1 + $0xe8] sm:$0xff]  }
   0x7   :  { %v1342_v14 = vld [vmem:[%s1815_s1 + $0x18] sm:$0xff]   ;;  %v1346_v18 = vld [vmem:[%s1815_s1 + $0x20] sm:$0xff]   ;;  %v1350_v22 = vld [vmem:[%s1815_s1 + $0x28] sm:$0xff]  }
   0x8   :  { %1139 = vmatpush3.bf16.msra.mxu0 %v1334_v6  ;;  %v1343_v15 = vld [vmem:[%s1815_s1 + $0x98] sm:$0xff]   ;;  %v1347_v19 = vld [vmem:[%s1815_s1 + $0xa0] sm:$0xff]   ;;  %v1351_v23 = vld [vmem:[%s1815_s1 + $0xa8] sm:$0xff]  }
   0x9   :  { %1203 = vmatpush3.bf16.msra.mxu1 %v1335_v7  ;;  %1140 = vmatprep.subr.bf16.mxu0 %v1336_v8  ;;  %v1352_v24 = vld [vmem:[%s1815_s1 + $0x70] sm:$0xff]   ;;  %v1356_v28 = vld [vmem:[%s1815_s1 + $0x78] sm:$0xff]   ;;  %v1365_v35 = vld [vmem:[%s1816_s0 + $0xc] ss:$20 sps:$4 sm:$0xff]  }
   0xa   :  { %1204 = vmatprep.subr.bf16.mxu1 %v1337_v9  ;;  %v1353_v25 = vld [vmem:[%s1815_s1 + $0xf0] sm:$0xff]   ;;  %v1357_v29 = vld [vmem:[%s1815_s1 + $0xf8] sm:$0xff]   ;;  %v1366_v36 = vld [vmem:[%s1815_s1 + $0x100] sm:$0xff]   ;;  %759 = vmatprep.mubr.bf16.mxu1 %v1365_v35 }
   0xb   :  { %v1354_v26 = vld [vmem:[%s1815_s1 + $0x30] sm:$0xff]   ;;  %v1358_v30 = vld [vmem:[%s1815_s1 + $0x38] sm:$0xff]   ;;  %v1367_v37 = vld [vmem:[%s1816_s0 + $0x2c] ss:$20 sps:$4 sm:$0xff]  }
   0xc   :  { %1141 = vmatpush3.bf16.msra.mxu0 %v1338_v10  ;;  %v1355_v27 = vld [vmem:[%s1815_s1 + $0xb0] sm:$0xff]   ;;  %v1359_v31 = vld [vmem:[%s1815_s1 + $0xb8] sm:$0xff]   ;;  %v1373_v39 = vld [vmem:[%s1815_s1 + $0x108] sm:$0xff]  }
   0xd   :  { %1205 = vmatpush3.bf16.msra.mxu1 %v1339_v11  ;;  %1142 = vmatprep.subr.bf16.mxu0 %v1340_v12  ;;  %v1360_v32 = vld [vmem:[%s1816_s0] ss:$20 sps:$4 sm:$0xff]   ;;  %v1362_v33 = vld [vmem:[%s1816_s0 + $0x4] ss:$20 sps:$4 sm:$0xff]   ;;  %v1363_v34 = vld [vmem:[%s1816_s0 + $0x8] ss:$20 sps:$4 sm:$0xff]  }
   0xe   :  { %1206 = vmatprep.subr.bf16.mxu1 %v1341_v13  ;;  %662 = vmatprep.mubr.bf16.mxu0 %v1362_v33  ;;  %v1369_v38 = vld [vmem:[%s1816_s0 + $0x34] ss:$20 sps:$4 sm:$0xff]   ;;  %v1372_v41 = vld [vmem:[%s1816_s0 + $0x30] ss:$20 sps:$4 sm:$0xff]   ;;  %v1387_v45 = vld [vmem:[%s1815_s1 + $0x118] sm:$0xff]  }
   0xf   :  { %v1371_v40 = vld [vmem:[%s1816_s0 + $0x28] ss:$20 sps:$4 sm:$0xff]   ;;  %v1380_v44 = vld [vmem:[%s1815_s1 + $0x110] sm:$0xff]   ;;  %v1379_v47 = vld [vmem:[%s1816_s0 + $0x58] ss:$20 sps:$4 sm:$0xff]  }
  0x10   :  { %1143 = vmatpush3.bf16.msra.mxu0 %v1342_v14  ;;  %v1374_v42 = vld [vmem:[%s1816_s0 + $0x54] ss:$20 sps:$4 sm:$0xff]   ;;  %v1376_v43 = vld [vmem:[%s1816_s0 + $0x5c] ss:$20 sps:$4 sm:$0xff]   ;;  %v1383_v49 = vld [vmem:[%s1816_s0 + $0x84] ss:$20 sps:$4 sm:$0xff]  }
  0x11   :  { %1207 = vmatpush3.bf16.msra.mxu1 %v1343_v15  ;;  %1144 = vmatprep.subr.bf16.mxu0 %v1344_v16  ;;  %v1378_v46 = vld [vmem:[%s1816_s0 + $0x50] ss:$20 sps:$4 sm:$0xff]   ;;  %v1401_v51 = vld [vmem:[%s1815_s1 + $0x128] sm:$0xff]   ;;  %v1386_v53 = vld [vmem:[%s1816_s0 + $0x80] ss:$20 sps:$4 sm:$0xff]  }
  0x12   :  { %1208 = vmatprep.subr.bf16.mxu1 %v1345_v17  ;;  %v1381_v48 = vld [vmem:[%s1816_s0 + $0x7c] ss:$20 sps:$4 sm:$0xff]   ;;  %v1394_v50 = vld [vmem:[%s1815_s1 + $0x120] sm:$0xff]   ;;  %v1385_v52 = vld [vmem:[%s1816_s0 + $0x78] ss:$20 sps:$4 sm:$0xff]  }
  0x13   :  { %v1388_v54 = vld [vmem:[%s1816_s0 + $0xa4] ss:$20 sps:$4 sm:$0xff]   ;;  %v1408_v55 = vld [vmem:[%s1815_s1 + $0x130] sm:$0xff]   ;;  %v1390_v56 = vld [vmem:[%s1816_s0 + $0xac] ss:$20 sps:$4 sm:$0xff]  }
  0x14   :  { %1145 = vmatpush3.bf16.msra.mxu0 %v1346_v18  ;;  %v1415_v57 = vld [vmem:[%s1815_s1 + $0x138] sm:$0xff]   ;;  %v1392_v58 = vld [vmem:[%s1816_s0 + $0xa0] ss:$20 sps:$4 sm:$0xff]   ;;  %v1400_v63 = vld [vmem:[%s1816_s0 + $0xd0] ss:$20 sps:$4 sm:$0xff]  }
  0x15   :  { %1209 = vmatpush3.bf16.msra.mxu1 %v1347_v19  ;;  %1146 = vmatprep.subr.bf16.mxu0 %v1348_v20  ;;  %v1393_v59 = vld [vmem:[%s1816_s0 + $0xa8] ss:$20 sps:$4 sm:$0xff]   ;;  %v1395_v60 = vld [vmem:[%s1816_s0 + $0xcc] ss:$20 sps:$4 sm:$0xff]   ;;  %v1406_v2 = vld [vmem:[%s1816_s0 + $0xf0] ss:$20 sps:$4 sm:$0xff]  }
  0x16   :  { %1210 = vmatprep.subr.bf16.mxu1 %v1349_v21  ;;  %v1397_v61 = vld [vmem:[%s1816_s0 + $0xd4] ss:$20 sps:$4 sm:$0xff]   ;;  %v1404_v1 = vld [vmem:[%s1816_s0 + $0xfc] ss:$20 sps:$4 sm:$0xff]   ;;  %v1407_v3 = vld [vmem:[%s1816_s0 + $0xf8] ss:$20 sps:$4 sm:$0xff]  }
  0x17   :  { %v1399_v62 = vld [vmem:[%s1816_s0 + $0xc8] ss:$20 sps:$4 sm:$0xff]   ;;  %v1411_v5 = vld [vmem:[%s1816_s0 + $0x124] ss:$20 sps:$4 sm:$0xff]   ;;  %v1414_v7 = vld [vmem:[%s1816_s0 + $0x120] ss:$20 sps:$4 sm:$0xff]  }
  0x18   :  { %1147 = vmatpush3.bf16.msra.mxu0 %v1350_v22  ;;  %v1402_v0 = vld [vmem:[%s1816_s0 + $0xf4] ss:$20 sps:$4 sm:$0xff]   ;;  %v1409_v4 = vld [vmem:[%s1816_s0 + $0x11c] ss:$20 sps:$4 sm:$0xff]   ;;  %v1413_v6 = vld [vmem:[%s1816_s0 + $0x118] ss:$20 sps:$4 sm:$0xff]  }
  0x19   :  { %1211 = vmatpush3.bf16.msra.mxu1 %v1351_v23  ;;  %1148 = vmatprep.subr.bf16.mxu0 %v1352_v24  ;;  %v1416_v8 = vld [vmem:[%s1816_s0 + $0x10] ss:$20 sps:$4 sm:$0xff]   ;;  %v1418_v10 = vld [vmem:[%s1816_s0 + $0x38] ss:$20 sps:$4 sm:$0xff]   ;;  %v1420_v12 = vld [vmem:[%s1816_s0 + $0x60] ss:$20 sps:$4 sm:$0xff]  }
  0x1a   :  { %1212 = vmatprep.subr.bf16.mxu1 %v1353_v25  ;;  %v1417_v9 = vld [vmem:[%s1816_s0 + $0xb0] ss:$20 sps:$4 sm:$0xff]   ;;  %v1419_v11 = vld [vmem:[%s1816_s0 + $0xd8] ss:$20 sps:$4 sm:$0xff]   ;;  %v1421_v13 = vld [vmem:[%s1816_s0 + $0x100] ss:$20 sps:$4 sm:$0xff]  }
  0x1b   :  { %v1422_v14 = vld [vmem:[%s1816_s0 + $0x88] ss:$20 sps:$4 sm:$0xff]  }
  0x1c   :  { %1149 = vmatpush3.bf16.msra.mxu0 %v1354_v26  ;;  %v1423_v15 = vld [vmem:[%s1816_s0 + $0x128] ss:$20 sps:$4 sm:$0xff]  }
  0x1d   :  { %1213 = vmatpush3.bf16.msra.mxu1 %v1355_v27  ;;  %1150 = vmatprep.subr.bf16.mxu0 %v1356_v28 }
  0x1e   :  { %1214 = vmatprep.subr.bf16.mxu1 %v1357_v29 }
  0x20   :  { %1151 = vmatpush3.bf16.msra.mxu0 %v1358_v30 }
  0x21   :  { %1215 = vmatpush3.bf16.msra.mxu1 %v1359_v31  ;;  %1280 = vmatprep.subr.bf16.mxu0 %v1366_v36 }
  0x22   :  { %1312 = vmatprep.subr.bf16.mxu1 %v1366_v36 }
  0x23   :  { %663 = vmatmul.mubr.bf16.vlgmr.msra.gmra.mrb[0].mxu0 %v1360_v32 }
  0x24   :  { %760 = vmatmul.mubr.bf16.vlgmr.msra.gmra.mrb[0].mxu1 %v1363_v34  ;;  %1281 = vmatpush3.bf16.msra.mxu0 %v1366_v36 }
  0x25   :  { %1320 = vmatpush3.bf16.msra.mxu1 %v1366_v36  ;;  %670 = vmatprep.mubr.bf16.mxu0 %v1367_v37 }
  0x26   :  { %767 = vmatprep.mubr.bf16.mxu1 %v1369_v38  ;;  %1282 = vmatprep.subr.bf16.mxu0 %v1373_v39 }
  0x27   :  { %1313 = vmatprep.subr.bf16.mxu1 %v1373_v39 }
  0x28   :  { %1283 = vmatpush3.bf16.msra.mxu0 %v1373_v39 }
  0x29   :  { %1321 = vmatpush3.bf16.msra.mxu1 %v1373_v39  ;;  %1284 = vmatprep.subr.bf16.mxu0 %v1380_v44 }
  0x2a   :  { %1314 = vmatprep.subr.bf16.mxu1 %v1380_v44 }
  0x2b   :  { %671 = vmatmul.mubr.bf16.gmra.mrb[4].mxu0 %v1371_v40 }
  0x2c   :  { %768 = vmatmul.mubr.bf16.gmra.mrb[4].mxu1 %v1372_v41  ;;  %678 = vmatprep.mubr.bf16.mxu0 %v1374_v42 }
  0x2d   :  { %775 = vmatprep.mubr.bf16.mxu1 %v1376_v43  ;;  %1285 = vmatpush3.bf16.msra.mxu0 %v1380_v44 }
  0x2e   :  { %1322 = vmatpush3.bf16.msra.mxu1 %v1380_v44  ;;  %1286 = vmatprep.subr.bf16.mxu0 %v1387_v45 }
  0x2f   :  { %1315 = vmatprep.subr.bf16.mxu1 %v1387_v45 }
  0x31   :  { %1287 = vmatpush3.bf16.msra.mxu0 %v1387_v45 }
  0x32   :  { %1323 = vmatpush3.bf16.msra.mxu1 %v1387_v45  ;;  %1288 = vmatprep.subr.bf16.mxu0 %v1394_v50 }
  0x33   :  { %679 = vmatmul.mubr.bf16.gmra.mrb[8].mxu0 %v1378_v46  ;;  %1316 = vmatprep.subr.bf16.mxu1 %v1394_v50 }
  0x34   :  { %776 = vmatmul.mubr.bf16.gmra.mrb[8].mxu1 %v1379_v47  ;;  %686 = vmatprep.mubr.bf16.mxu0 %v1381_v48 }
  0x35   :  { %783 = vmatprep.mubr.bf16.mxu1 %v1383_v49  ;;  %1289 = vmatpush3.bf16.msra.mxu0 %v1394_v50 }
  0x36   :  { %1324 = vmatpush3.bf16.msra.mxu1 %v1394_v50  ;;  %1290 = vmatprep.subr.bf16.mxu0 %v1401_v51 }
  0x37   :  { %1317 = vmatprep.subr.bf16.mxu1 %v1401_v51 }
  0x39   :  { %1291 = vmatpush3.bf16.msra.mxu0 %v1401_v51 }
  0x3a   :  { %1325 = vmatpush3.bf16.msra.mxu1 %v1401_v51  ;;  %1292 = vmatprep.subr.bf16.mxu0 %v1408_v55 }
  0x3b   :  { %687 = vmatmul.mubr.bf16.gmra.mrb[12].mxu0 %v1385_v52  ;;  %1318 = vmatprep.subr.bf16.mxu1 %v1408_v55 }
  0x3c   :  { %784 = vmatmul.mubr.bf16.gmra.mrb[12].mxu1 %v1386_v53  ;;  %694 = vmatprep.mubr.bf16.mxu0 %v1388_v54 }
  0x3d   :  { %791 = vmatprep.mubr.bf16.mxu1 %v1390_v56  ;;  %1293 = vmatpush3.bf16.msra.mxu0 %v1408_v55 }
  0x3e   :  { %1326 = vmatpush3.bf16.msra.mxu1 %v1408_v55  ;;  %1294 = vmatprep.subr.bf16.mxu0 %v1415_v57 }
  0x3f   :  { %1319 = vmatprep.subr.bf16.mxu1 %v1415_v57 }
  0x41   :  { %1295 = vmatpush3.bf16.msra.mxu0 %v1415_v57 }
  0x42   :  { %1327 = vmatpush3.bf16.msra.mxu1 %v1415_v57 }
  0x43   :  { %695 = vmatmul.mubr.bf16.gmra.mrb[16].mxu0 %v1392_v58 }
  0x44   :  { %792 = vmatmul.mubr.bf16.gmra.mrb[16].mxu1 %v1393_v59  ;;  %702 = vmatprep.mubr.bf16.mxu0 %v1395_v60 }
  0x45   :  { %799 = vmatprep.mubr.bf16.mxu1 %v1397_v61 }
  0x4b   :  { %703 = vmatmul.mubr.bf16.gmra.mrb[20].mxu0 %v1399_v62 }
  0x4c   :  { %800 = vmatmul.mubr.bf16.gmra.mrb[20].mxu1 %v1400_v63  ;;  %710 = vmatprep.mubr.bf16.mxu0 %v1402_v0 }
  0x4d   :  { %807 = vmatprep.mubr.bf16.mxu1 %v1404_v1 }
  0x53   :  { %711 = vmatmul.mubr.bf16.gmra.mrb[24].mxu0 %v1406_v2 }
  0x54   :  { %808 = vmatmul.mubr.bf16.gmra.mrb[24].mxu1 %v1407_v3  ;;  %718 = vmatprep.mubr.bf16.mxu0 %v1409_v4 }
  0x55   :  { %815 = vmatprep.mubr.bf16.mxu1 %v1411_v5 }
  0x5b   :  { %719 = vmatmul.mubr.bf16.gmra.mrb[28].mxu0 %v1413_v6 }
  0x5c   :  { %816 = vmatmul.mubr.bf16.gmra.mrb[28].mxu1 %v1414_v7  ;;  %1296 = vmatprep.mubr.bf16.mxu0 %v1416_v8 }
  0x5d   :  { %1304 = vmatprep.mubr.bf16.mxu1 %v1417_v9 }
  0x63   :  { %1297 = vmatmul.mubr.bf16.vlgmr.msra.gmra.mrb[32].mxu0 %v1418_v10 }
  0x64   :  { %1305 = vmatmul.mubr.bf16.vlgmr.msra.gmra.mrb[32].mxu1 %v1419_v11  ;;  %1300 = vmatprep.mubr.bf16.mxu0 %v1420_v12 }
  0x65   :  { %1308 = vmatprep.mubr.bf16.mxu1 %v1421_v13 }
  0x6b   :  { %1301 = vmatmul.mubr.bf16.gmra.mrb[36].mxu0 %v1422_v14 }
  0x6c   :  { %1309 = vmatmul.mubr.bf16.gmra.mrb[36].mxu1 %v1423_v15 }
  0xf6   :  { %v1152_v16 = vpop.f32.mrb[0].mxu0 }
  0xf7   :  { %v1216_v17 = vpop.f32.mrb[0].mxu1  ;;  %v1153_v18 = vpop.f32.mrb[1].mxu0 }
  0xf8   :  { %v1154_v19 = vadd.f32 %v1153_v18, %v1152_v16  ;;  %v1217_v20 = vpop.f32.mrb[1].mxu1  ;;  %v1155_v21 = vpop.f32.mrb[2].mxu0 }
  0xf9   :  { %v1218_v22 = vadd.f32 %v1217_v20, %v1216_v17  ;;  %v1219_v23 = vpop.f32.mrb[2].mxu1  ;;  %v1156_v24 = vpop.f32.mrb[3].mxu0 }
  0xfa   :  { %v1157_v25 = vadd.f32 %v1156_v24, %v1155_v21  ;;  %v1220_v26 = vpop.f32.mrb[3].mxu1 }
  0xfb   :  { %v1221_v27 = vadd.f32 %v1220_v26, %v1219_v23  ;;  %v1689_v28 = vadd.f32 %v1218_v22, %v1154_v19 }
  0xfd   :  { %v1691_v29 = vadd.f32 %v1221_v27, %v1157_v25 }
  0xfe   :  { %v1158_v30 = vpop.f32.mrb[4].mxu0 }
  0xff   :  { %v1222_v31 = vpop.f32.mrb[4].mxu1  ;;  %v1159_v32 = vpop.f32.mrb[5].mxu0 }
 0x100   :  { %v1160_v33 = vadd.f32 %v1159_v32, %v1158_v30  ;;  %v1223_v34 = vpop.f32.mrb[5].mxu1  ;;  %v1161_v35 = vpop.f32.mrb[6].mxu0 }
 0x101   :  { %v1224_v36 = vadd.f32 %v1223_v34, %v1222_v31  ;;  %v1225_v37 = vpop.f32.mrb[6].mxu1  ;;  %v1162_v38 = vpop.f32.mrb[7].mxu0 }
 0x102   :  { %v1163_v39 = vadd.f32 %v1162_v38, %v1161_v35  ;;  %v1226_v40 = vpop.f32.mrb[7].mxu1 }
 0x103   :  { %v1227_v41 = vadd.f32 %v1226_v40, %v1225_v37  ;;  %v1693_v42 = vadd.f32 %v1224_v36, %v1160_v33 }
 0x105   :  { %v1695_v43 = vadd.f32 %v1227_v41, %v1163_v39 }
 0x106   :  { %v1164_v44 = vpop.f32.mrb[8].mxu0 }
 0x107   :  { %v1228_v45 = vpop.f32.mrb[8].mxu1  ;;  %v1165_v46 = vpop.f32.mrb[9].mxu0 }
 0x108   :  { %v1166_v47 = vadd.f32 %v1165_v46, %v1164_v44  ;;  %v1229_v48 = vpop.f32.mrb[9].mxu1  ;;  %v1167_v49 = vpop.f32.mrb[10].mxu0 }
 0x109   :  { %v1230_v50 = vadd.f32 %v1229_v48, %v1228_v45  ;;  %v1231_v51 = vpop.f32.mrb[10].mxu1  ;;  %v1168_v52 = vpop.f32.mrb[11].mxu0 }
 0x10a   :  { %v1169_v53 = vadd.f32 %v1168_v52, %v1167_v49  ;;  %v1232_v54 = vpop.f32.mrb[11].mxu1 }
 0x10b   :  { %v1233_v55 = vadd.f32 %v1232_v54, %v1231_v51  ;;  %v1697_v56 = vadd.f32 %v1230_v50, %v1166_v47 }
 0x10d   :  { %v1699_v57 = vadd.f32 %v1233_v55, %v1169_v53 }
 0x10e   :  { %v1170_v58 = vpop.f32.mrb[12].mxu0 }
 0x10f   :  { %v1234_v59 = vpop.f32.mrb[12].mxu1  ;;  %v1171_v60 = vpop.f32.mrb[13].mxu0 }
 0x110   :  { %v1172_v61 = vadd.f32 %v1171_v60, %v1170_v58  ;;  %v1235_v62 = vpop.f32.mrb[13].mxu1  ;;  %v1173_v63 = vpop.f32.mrb[14].mxu0 }
 0x111   :  { %v1236_v0 = vadd.f32 %v1235_v62, %v1234_v59  ;;  %v1237_v1 = vpop.f32.mrb[14].mxu1  ;;  %v1174_v2 = vpop.f32.mrb[15].mxu0 }
 0x112   :  { %v1175_v3 = vadd.f32 %v1174_v2, %v1173_v63  ;;  %v1238_v4 = vpop.f32.mrb[15].mxu1 }
 0x113   :  { %v1239_v5 = vadd.f32 %v1238_v4, %v1237_v1  ;;  %v1701_v6 = vadd.f32 %v1236_v0, %v1172_v61 }
 0x115   :  { %v1703_v7 = vadd.f32 %v1239_v5, %v1175_v3 }
 0x116   :  { %v1176_v8 = vpop.f32.mrb[16].mxu0 }
 0x117   :  { %v1240_v9 = vpop.f32.mrb[16].mxu1  ;;  %v1177_v10 = vpop.f32.mrb[17].mxu0 }
 0x118   :  { %v1178_v11 = vadd.f32 %v1177_v10, %v1176_v8  ;;  %v1241_v12 = vpop.f32.mrb[17].mxu1  ;;  %v1179_v13 = vpop.f32.mrb[18].mxu0 }
 0x119   :  { %v1242_v14 = vadd.f32 %v1241_v12, %v1240_v9  ;;  %v1243_v15 = vpop.f32.mrb[18].mxu1  ;;  %v1180_v16 = vpop.f32.mrb[19].mxu0  ;;  %v1716_v9 = vld [vmem:[%s1817_s2] ss:$0 sm:$0xff] }
 0x11a   :  { %v1181_v17 = vadd.f32 %v1180_v16, %v1179_v13  ;;  %v1244_v18 = vpop.f32.mrb[19].mxu1  ;;  %v1722_v13 = vld [vmem:[%s1818_s3] ss:$0 sm:$0xff] }
 0x11b   :  { %v1245_v19 = vadd.f32 %v1244_v18, %v1243_v15  ;;  %v794_v20 = vadd.f32 %v1242_v14, %v1178_v11 }
 0x11d   :  { %v1705_v21 = vadd.f32 %v1245_v19, %v1181_v17 }
 0x11e   :  { %v1182_v22 = vpop.f32.mrb[20].mxu0 }
 0x11f   :  { %v1246_v23 = vpop.f32.mrb[20].mxu1  ;;  %v1183_v24 = vpop.f32.mrb[21].mxu0 }
 0x120   :  { %v1184_v25 = vadd.f32 %v1183_v24, %v1182_v22  ;;  %v1247_v26 = vpop.f32.mrb[21].mxu1  ;;  %v1185_v27 = vpop.f32.mrb[22].mxu0 }
 0x121   :  { %v1248_v30 = vadd.f32 %v1247_v26, %v1246_v23  ;;  %v1249_v31 = vpop.f32.mrb[22].mxu1  ;;  %v1186_v32 = vpop.f32.mrb[23].mxu0 }
 0x122   :  { %v1187_v33 = vadd.f32 %v1186_v32, %v1185_v27  ;;  %v1250_v34 = vpop.f32.mrb[23].mxu1 }
 0x123   :  { %v1251_v35 = vadd.f32 %v1250_v34, %v1249_v31  ;;  %v802_v36 = vadd.f32 %v1248_v30, %v1184_v25 }
 0x125   :  { %v805_v37 = vadd.f32 %v1251_v35, %v1187_v33 }
 0x126   :  { %v1188_v38 = vpop.f32.mrb[24].mxu0 }
 0x127   :  { %v1252_v39 = vpop.f32.mrb[24].mxu1  ;;  %v1189_v40 = vpop.f32.mrb[25].mxu0 }
 0x128   :  { %v1190_v41 = vadd.f32 %v1189_v40, %v1188_v38  ;;  %v1253_v44 = vpop.f32.mrb[25].mxu1  ;;  %v1191_v45 = vpop.f32.mrb[26].mxu0 }
 0x129   :  { %v1254_v46 = vadd.f32 %v1253_v44, %v1252_v39  ;;  %v1255_v47 = vpop.f32.mrb[26].mxu1  ;;  %v1192_v48 = vpop.f32.mrb[27].mxu0 }
 0x12a   :  { %v1193_v49 = vadd.f32 %v1192_v48, %v1191_v45  ;;  %v1256_v50 = vpop.f32.mrb[27].mxu1 }
 0x12b   :  { %v1257_v51 = vadd.f32 %v1256_v50, %v1255_v47  ;;  %v1707_v52 = vadd.f32 %v1254_v46, %v1190_v41 }
 0x12d   :  { %v1709_v53 = vadd.f32 %v1257_v51, %v1193_v49 }
 0x12e   :  { %v1194_v54 = vpop.f32.mrb[28].mxu0 }
 0x12f   :  { %v1258_v55 = vpop.f32.mrb[28].mxu1  ;;  %v1195_v58 = vpop.f32.mrb[29].mxu0 }
 0x130   :  { %v1196_v59 = vadd.f32 %v1195_v58, %v1194_v54  ;;  %v1259_v60 = vpop.f32.mrb[29].mxu1  ;;  %v1197_v61 = vpop.f32.mrb[30].mxu0 }
 0x131   :  { %v1260_v62 = vadd.f32 %v1259_v60, %v1258_v55  ;;  %v1261_v63 = vpop.f32.mrb[30].mxu1  ;;  %v1198_v0 = vpop.f32.mrb[31].mxu0 }
 0x132   :  { %v1199_v1 = vadd.f32 %v1198_v0, %v1197_v61  ;;  %v1262_v2 = vpop.f32.mrb[31].mxu1 }
 0x133   :  { %v1263_v3 = vadd.f32 %v1262_v2, %v1261_v63  ;;  %v818_v4 = vadd.f32 %v1260_v62, %v1196_v59 }
 0x135   :  { %v1711_v5 = vadd.f32 %v1263_v3, %v1199_v1 }
 0x136   :  { %v1298_v8 = vpop.f32.mrb[32].mxu0 }
 0x137   :  { %v867_v10 = vadd.f32 %v1298_v8, %v1693_v42  ;;  %v1306_v11 = vpop.f32.mrb[32].mxu1  ;;  %v858_v12 = vpop.f32.mrb[33].mxu0 }
 0x138   :  { %v899_v14 = vadd.f32 %v1306_v11, %v802_v36  ;;  %v859_v15 = vadd.f32 %v858_v12, %v1689_v28  ;;  %v890_v16 = vpop.f32.mrb[33].mxu1  ;;  %v1299_v17 = vpop.f32.mrb[34].mxu0 }
 0x139   :  { %v981_v18 = vmul.f32 %v1716_v9, %v867_v10  ;;  %v891_v19 = vadd.f32 %v890_v16, %v794_v20  ;;  %v870_v22 = vadd.f32 %v1299_v17, %v1695_v43  ;;  %v1307_v23 = vpop.f32.mrb[34].mxu1  ;;  %v861_v24 = vpop.f32.mrb[35].mxu0 }
 0x13a   :  { %v989_v42 = vmul.f32 %v1716_v9, %v899_v14  ;;  %v979_v25 = vmul.f32 %v1716_v9, %v859_v15  ;;  %v902_v26 = vadd.f32 %v1307_v23, %v805_v37  ;;  %v862_v27 = vadd.f32 %v861_v24, %v1691_v29  ;;  %v893_v30 = vpop.f32.mrb[35].mxu1 }
 0x13b   :  { %v1004_v31 = vadd.f32 %v1722_v13, %v981_v18  ;;  %v987_v28 = vmul.f32 %v1716_v9, %v891_v19  ;;  %v982_v32 = vmul.f32 %v1716_v9, %v870_v22  ;;  %v894_v20 = vadd.f32 %v893_v30, %v1705_v21 }
 0x13c   :  { %v1012_v43 = vadd.f32 %v1722_v13, %v989_v42  ;;  %v1002_v33 = vadd.f32 %v1722_v13, %v979_v25  ;;  %v990_v34 = vmul.f32 %v1716_v9, %v902_v26  ;;  %v980_v35 = vmul.f32 %v1716_v9, %v862_v27 }
 0x13d   :  { %v1020_v36 = vmax.f32 %v1004_v31, 0.0  ;;  %v1010_v29 = vadd.f32 %v1722_v13, %v987_v28  ;;  %v1005_v37 = vadd.f32 %v1722_v13, %v982_v32  ;;  %v988_v38 = vmul.f32 %v1716_v9, %v894_v20 }
 0x13e   :  { %v1028_v39 = vmax.f32 %v1012_v43, 0.0  ;;  %v1018_v40 = vmax.f32 %v1002_v33, 0.0  ;;  %v1013_v41 = vadd.f32 %v1722_v13, %v990_v34  ;;  %v1003_v21 = vadd.f32 %v1722_v13, %v980_v35  ;;  %v1302_v44 = vpop.f32.mrb[36].mxu0 }
 0x13f   :  { %1036 = vst [vmem:[%s1819_s4 + $0x10] sm:$0xff] %v1020_v36  ;;  %v1026_v45 = vmax.f32 %v1010_v29, 0.0  ;;  %v1021_v46 = vmax.f32 %v1005_v37, 0.0  ;;  %v1011_v47 = vadd.f32 %v1722_v13, %v988_v38  ;;  %v883_v48 = vadd.f32 %v1302_v44, %v1701_v6  ;;  %v1310_v49 = vpop.f32.mrb[36].mxu1  ;;  %v874_v50 = vpop.f32.mrb[37].mxu0 }
 0x140   :  { %1044 = vst [vmem:[%s1819_s4 + $0x50] sm:$0xff] %v1028_v39  ;;  %1034 = vst [vmem:[%s1819_s4] sm:$0xff] %v1018_v40  ;;  %v1029_v51 = vmax.f32 %v1013_v41, 0.0  ;;  %v1019_v54 = vmax.f32 %v1003_v21, 0.0  ;;  %v915_v55 = vadd.f32 %v1310_v49, %v818_v4  ;;  %v875_v58 = vadd.f32 %v874_v50, %v1697_v56  ;;  %v906_v59 = vpop.f32.mrb[37].mxu1  ;;  %v1303_v60 = vpop.f32.mrb[38].mxu0 }
 0x141   :  { %1042 = vst [vmem:[%s1819_s4 + $0x40] sm:$0xff] %v1026_v45  ;;  %1037 = vst [vmem:[%s1819_s4 + $0x18] sm:$0xff] %v1021_v46  ;;  %v1027_v6 = vmax.f32 %v1011_v47, 0.0  ;;  %v985_v61 = vmul.f32 %v1716_v9, %v883_v48  ;;  %v907_v62 = vadd.f32 %v906_v59, %v1707_v52  ;;  %v886_v63 = vadd.f32 %v1303_v60, %v1703_v7  ;;  %v1311_v0 = vpop.f32.mrb[38].mxu1  ;;  %v877_v1 = vpop.f32.mrb[39].mxu0 }
 0x142   :  { %1045 = vst [vmem:[%s1819_s4 + $0x58] sm:$0xff] %v1029_v51  ;;  %1035 = vst [vmem:[%s1819_s4 + $0x8] sm:$0xff] %v1019_v54  ;;  %v993_v56 = vmul.f32 %v1716_v9, %v915_v55  ;;  %v983_v2 = vmul.f32 %v1716_v9, %v875_v58  ;;  %v918_v3 = vadd.f32 %v1311_v0, %v1711_v5  ;;  %v909_v4 = vpop.f32.mrb[39].mxu1 }
 0x143   :  { %v878_v52 = vadd.f32 %v877_v1, %v1699_v57  ;;  %1043 = vst [vmem:[%s1819_s4 + $0x48] sm:$0xff] %v1027_v6  ;;  %v1008_v7 = vadd.f32 %v1722_v13, %v985_v61  ;;  %v991_v8 = vmul.f32 %v1716_v9, %v907_v62  ;;  %v986_v10 = vmul.f32 %v1716_v9, %v886_v63 }
 0x144   :  { %v910_v11 = vadd.f32 %v909_v4, %v1709_v53  ;;  %v1016_v12 = vadd.f32 %v1722_v13, %v993_v56  ;;  %v1006_v14 = vadd.f32 %v1722_v13, %v983_v2  ;;  %v994_v5 = vmul.f32 %v1716_v9, %v918_v3 }
 0x145   :  { %v984_v57 = vmul.f32 %v1716_v9, %v878_v52  ;;  %v1024_v15 = vmax.f32 %v1008_v7, 0.0  ;;  %v1014_v16 = vadd.f32 %v1722_v13, %v991_v8  ;;  %v1009_v17 = vadd.f32 %v1722_v13, %v986_v10 }
 0x146   :  { %v992_v18 = vmul.f32 %v1716_v9, %v910_v11  ;;  %v1032_v19 = vmax.f32 %v1016_v12, 0.0  ;;  %v1022_v22 = vmax.f32 %v1006_v14, 0.0  ;;  %v1017_v23 = vadd.f32 %v1722_v13, %v994_v5 }
 0x147   :  { %v1007_v53 = vadd.f32 %v1722_v13, %v984_v57  ;;  %1040 = vst [vmem:[%s1819_s4 + $0x30] sm:$0xff] %v1024_v15  ;;  %v1030_v24 = vmax.f32 %v1014_v16, 0.0  ;;  %v1025_v42 = vmax.f32 %v1009_v17, 0.0 }
 0x148   :  { %v1015_v25 = vadd.f32 %v1722_v13, %v992_v18  ;;  %1048 = vst [vmem:[%s1819_s4 + $0x70] sm:$0xff] %v1032_v19  ;;  %1038 = vst [vmem:[%s1819_s4 + $0x20] sm:$0xff] %v1022_v22  ;;  %v1033_v9 = vmax.f32 %v1017_v23, 0.0 }
 0x149   :  { %v1023_v26 = vmax.f32 %v1007_v53, 0.0  ;;  %1046 = vst [vmem:[%s1819_s4 + $0x60] sm:$0xff] %v1030_v24  ;;  %1041 = vst [vmem:[%s1819_s4 + $0x38] sm:$0xff] %v1025_v42 }
 0x14a   :  { %v1031_v27 = vmax.f32 %v1015_v25, 0.0  ;;  %1049 = vst [vmem:[%s1819_s4 + $0x78] sm:$0xff] %v1033_v9 }
 0x14b   :  { %1039 = vst [vmem:[%s1819_s4 + $0x28] sm:$0xff] %v1023_v26 }
 0x14c   :  { %1047 = vst [vmem:[%s1819_s4 + $0x68] sm:$0xff] %v1031_v27 }

// kernel: resnet_forward.30
= control target key start
LH: loop header
LB: loop body
LE: loop exit
PB: predicated region body
PF: predicated region fallthrough
CT: control target
= control target key end

     0   :  { %v655_v1 = vmov 0   ;;  %v460_v25 = vlaneseq  ;;  %s935_s1 = inlined_call_operand.vmem [shape: bf16[128,256], index: 1, kind: input, shape index: {}]   ;;  %s936_s0 = inlined_call_operand.vmem [shape: bf16[128,128], index: 0, kind: input, shape index: {}]   ;;  %s937_s2 = inlined_call_operand.vmem [shape: f32[1,256], index: 2, kind: input, shape index: {}]   ;;  %s938_s3 = inlined_call_operand.vmem [shape: f32[1,256], index: 3, kind: input, shape index: {}]   ;;  %s939_s4 = inlined_call_operand.vmem [shape: f32[128,256], index: 4, kind: output, shape index: {}]  }
   0x1   :  { %v623_v0 = vld [vmem:[%s935_s1 + $0x4] ss:$8 sps:$4 sm:$0xff]   ;;  %278 = vmatprep.mubr.bf16.mxu0 %v655_v1  ;;  %318 = vmatprep.mubr.bf16.mxu1 %v655_v1  ;;  %v625_v2 = vld [vmem:[%s935_s1] ss:$8 sps:$4 sm:$0xff]   ;;  %v626_v3 = vld [vmem:[%s935_s1 + $0x14] ss:$8 sps:$4 sm:$0xff]  }
   0x2   :  { %246 = vmatprep.subr.bf16.mxu0 %v623_v0  ;;  %606 = vmatprep.subr.bf16.mxu1 %v623_v0  ;;  %v628_v4 = vld [vmem:[%s935_s1 + $0x10] ss:$8 sps:$4 sm:$0xff]   ;;  %v629_v5 = vld [vmem:[%s935_s1 + $0x24] ss:$8 sps:$4 sm:$0xff]   ;;  %v631_v6 = vld [vmem:[%s935_s1 + $0x20] ss:$8 sps:$4 sm:$0xff]  }
   0x3   :  { %247 = vmatpush1.bf16.msra.mxu0 %v625_v2  ;;  %614 = vmatpush1.bf16.msra.mxu1 %v625_v2  ;;  %v632_v7 = vld [vmem:[%s935_s1 + $0x34] ss:$8 sps:$4 sm:$0xff]   ;;  %v634_v8 = vld [vmem:[%s935_s1 + $0x30] ss:$8 sps:$4 sm:$0xff]   ;;  %v635_v9 = vld [vmem:[%s935_s1 + $0x44] ss:$8 sps:$4 sm:$0xff]  }
   0x4   :  { %248 = vmatprep.subr.bf16.mxu0 %v626_v3  ;;  %607 = vmatprep.subr.bf16.mxu1 %v626_v3  ;;  %v637_v10 = vld [vmem:[%s935_s1 + $0x40] ss:$8 sps:$4 sm:$0xff]   ;;  %v638_v11 = vld [vmem:[%s935_s1 + $0x54] ss:$8 sps:$4 sm:$0xff]   ;;  %v640_v12 = vld [vmem:[%s935_s1 + $0x50] ss:$8 sps:$4 sm:$0xff]  }
   0x5   :  { %v641_v13 = vld [vmem:[%s935_s1 + $0x64] ss:$8 sps:$4 sm:$0xff]   ;;  %v643_v14 = vld [vmem:[%s935_s1 + $0x60] ss:$8 sps:$4 sm:$0xff]   ;;  %v644_v15 = vld [vmem:[%s935_s1 + $0x74] ss:$8 sps:$4 sm:$0xff]  }
   0x6   :  { %v646_v16 = vld [vmem:[%s935_s1 + $0x70] ss:$8 sps:$4 sm:$0xff]   ;;  %v647_v17 = vld [vmem:[%s936_s0] sm:$0xff]   ;;  %v649_v19 = vld [vmem:[%s936_s0 + $0x8] sm:$0xff]   ;;  %v461_v26 = vshrl.u32 %v460_v25, 7 }
   0x7   :  { %249 = vmatpush1.bf16.msra.mxu0 %v628_v4  ;;  %615 = vmatpush1.bf16.msra.mxu1 %v628_v4  ;;  %v648_v18 = vld [vmem:[%s936_s0 + $0x20] sm:$0xff]   ;;  %v650_v20 = vld [vmem:[%s936_s0 + $0x28] sm:$0xff]   ;;  %v651_v21 = vld [vmem:[%s936_s0 + $0x10] sm:$0xff]  }
   0x8   :  { %250 = vmatprep.subr.bf16.mxu0 %v629_v5  ;;  %608 = vmatprep.subr.bf16.mxu1 %v629_v5  ;;  %v652_v22 = vld [vmem:[%s936_s0 + $0x30] sm:$0xff]   ;;  %v653_v23 = vld [vmem:[%s936_s0 + $0x18] sm:$0xff]   ;;  %v462_v27 = vsub.s32 0, %v461_v26  ;;  %v458_v28 = vld [vmem:[%s937_s2] sm:$0x3]  ;;  %v466_v29 = vsub.s32 1, %v461_v26 }
   0x9   :  { %v654_v24 = vld [vmem:[%s936_s0 + $0x38] sm:$0xff]   ;;  %v502_v30 = vld [vmem:[%s938_s3] sm:$0x3] }
   0xa   :  { %v767_v31 = vrot.slane %v458_v28, %v462_v27  ;;  %v769_v32 = vrot.slane %v458_v28, %v466_v29  ;;  %v771_v33 = vrot.slane %v502_v30, %v462_v27  ;;  %v773_v36 = vrot.slane %v502_v30, %v466_v29 }
   0xb   :  { %251 = vmatpush1.bf16.msra.mxu0 %v631_v6  ;;  %616 = vmatpush1.bf16.msra.mxu1 %v631_v6 }
   0xc   :  { %252 = vmatprep.subr.bf16.mxu0 %v632_v7  ;;  %609 = vmatprep.subr.bf16.mxu1 %v632_v7 }
   0xf   :  { %253 = vmatpush1.bf16.msra.mxu0 %v634_v8  ;;  %617 = vmatpush1.bf16.msra.mxu1 %v634_v8 }
  0x10   :  { %254 = vmatprep.subr.bf16.mxu0 %v635_v9  ;;  %610 = vmatprep.subr.bf16.mxu1 %v635_v9 }
  0x13   :  { %255 = vmatpush1.bf16.msra.mxu0 %v637_v10  ;;  %618 = vmatpush1.bf16.msra.mxu1 %v637_v10 }
  0x14   :  { %256 = vmatprep.subr.bf16.mxu0 %v638_v11  ;;  %611 = vmatprep.subr.bf16.mxu1 %v638_v11 }
  0x17   :  { %257 = vmatpush1.bf16.msra.mxu0 %v640_v12  ;;  %619 = vmatpush1.bf16.msra.mxu1 %v640_v12 }
  0x18   :  { %258 = vmatprep.subr.bf16.mxu0 %v641_v13  ;;  %612 = vmatprep.subr.bf16.mxu1 %v641_v13 }
  0x1b   :  { %259 = vmatpush1.bf16.msra.mxu0 %v643_v14  ;;  %620 = vmatpush1.bf16.msra.mxu1 %v643_v14 }
  0x1c   :  { %260 = vmatprep.subr.bf16.mxu0 %v644_v15  ;;  %613 = vmatprep.subr.bf16.mxu1 %v644_v15 }
  0x1f   :  { %261 = vmatpush1.bf16.msra.mxu0 %v646_v16  ;;  %621 = vmatpush1.bf16.msra.mxu1 %v646_v16 }
  0x22   :  { %279 = vmatmul.mubr.bf16.vlgmr.msra.gmra.mrb[0].mxu0 %v647_v17  ;;  %319 = vmatmul.mubr.bf16.vlgmr.msra.gmra.mrb[0].mxu1 %v648_v18 }
  0x23   :  { %288 = vmatprep.mubr.bf16.mxu0 %v655_v1  ;;  %328 = vmatprep.mubr.bf16.mxu1 %v655_v1 }
  0x2a   :  { %289 = vmatmul.mubr.bf16.gmra.mrb[4].mxu0 %v649_v19  ;;  %329 = vmatmul.mubr.bf16.gmra.mrb[4].mxu1 %v650_v20 }
  0x2b   :  { %298 = vmatprep.mubr.bf16.mxu0 %v655_v1  ;;  %338 = vmatprep.mubr.bf16.mxu1 %v655_v1 }
  0x32   :  { %299 = vmatmul.mubr.bf16.gmra.mrb[8].mxu0 %v651_v21  ;;  %339 = vmatmul.mubr.bf16.gmra.mrb[8].mxu1 %v652_v22 }
  0x33   :  { %308 = vmatprep.mubr.bf16.mxu0 %v655_v1  ;;  %348 = vmatprep.mubr.bf16.mxu1 %v655_v1 }
  0x3a   :  { %309 = vmatmul.mubr.bf16.gmra.mrb[12].mxu0 %v653_v23  ;;  %349 = vmatmul.mubr.bf16.gmra.mrb[12].mxu1 %v654_v24 }
  0xf5   :  { %v280_v34 = vpop.f32.mrb[0].mxu0  ;;  %v320_v35 = vpop.f32.mrb[0].mxu1 }
  0xf6   :  { %v470_v37 = vmul.f32 %v767_v31, %v280_v34  ;;  %v486_v38 = vmul.f32 %v767_v31, %v320_v35  ;;  %v282_v39 = vpop.f32.mrb[1].mxu0  ;;  %v322_v40 = vpop.f32.mrb[1].mxu1 }
  0xf7   :  { %v471_v41 = vmul.f32 %v769_v32, %v282_v39  ;;  %v487_v42 = vmul.f32 %v769_v32, %v322_v40  ;;  %v284_v43 = vpop.f32.mrb[2].mxu0  ;;  %v324_v44 = vpop.f32.mrb[2].mxu1 }
  0xf8   :  { %v514_v45 = vadd.f32 %v771_v33, %v470_v37  ;;  %v530_v46 = vadd.f32 %v771_v33, %v486_v38  ;;  %v472_v47 = vmul.f32 %v767_v31, %v284_v43  ;;  %v488_v48 = vmul.f32 %v767_v31, %v324_v44  ;;  %v286_v49 = vpop.f32.mrb[3].mxu0  ;;  %v326_v50 = vpop.f32.mrb[3].mxu1 }
  0xf9   :  { %v515_v51 = vadd.f32 %v773_v36, %v471_v41  ;;  %v531_v52 = vadd.f32 %v773_v36, %v487_v42  ;;  %v473_v53 = vmul.f32 %v769_v32, %v286_v49  ;;  %v489_v54 = vmul.f32 %v769_v32, %v326_v50 }
  0xfa   :  { %546 = vst [vmem:[%s939_s4] sm:$0xff] %v514_v45  ;;  %562 = vst [vmem:[%s939_s4 + $0x80] sm:$0xff] %v530_v46  ;;  %v516_v55 = vadd.f32 %v771_v33, %v472_v47  ;;  %v532_v56 = vadd.f32 %v771_v33, %v488_v48 }
  0xfb   :  { %547 = vst [vmem:[%s939_s4 + $0x8] sm:$0xff] %v515_v51  ;;  %563 = vst [vmem:[%s939_s4 + $0x88] sm:$0xff] %v531_v52  ;;  %v517_v57 = vadd.f32 %v773_v36, %v473_v53  ;;  %v533_v58 = vadd.f32 %v773_v36, %v489_v54 }
  0xfc   :  { %548 = vst [vmem:[%s939_s4 + $0x10] sm:$0xff] %v516_v55  ;;  %564 = vst [vmem:[%s939_s4 + $0x90] sm:$0xff] %v532_v56 }
  0xfd   :  { %549 = vst [vmem:[%s939_s4 + $0x18] sm:$0xff] %v517_v57  ;;  %565 = vst [vmem:[%s939_s4 + $0x98] sm:$0xff] %v533_v58  ;;  %v290_v59 = vpop.f32.mrb[4].mxu0  ;;  %v330_v60 = vpop.f32.mrb[4].mxu1 }
  0xfe   :  { %v474_v61 = vmul.f32 %v767_v31, %v290_v59  ;;  %v490_v62 = vmul.f32 %v767_v31, %v330_v60  ;;  %v292_v63 = vpop.f32.mrb[5].mxu0  ;;  %v332_v0 = vpop.f32.mrb[5].mxu1 }
  0xff   :  { %v475_v1 = vmul.f32 %v769_v32, %v292_v63  ;;  %v491_v2 = vmul.f32 %v769_v32, %v332_v0  ;;  %v294_v3 = vpop.f32.mrb[6].mxu0  ;;  %v334_v4 = vpop.f32.mrb[6].mxu1 }
 0x100   :  { %v518_v5 = vadd.f32 %v771_v33, %v474_v61  ;;  %v534_v6 = vadd.f32 %v771_v33, %v490_v62  ;;  %v476_v7 = vmul.f32 %v767_v31, %v294_v3  ;;  %v492_v8 = vmul.f32 %v767_v31, %v334_v4  ;;  %v296_v9 = vpop.f32.mrb[7].mxu0  ;;  %v336_v10 = vpop.f32.mrb[7].mxu1 }
 0x101   :  { %v519_v11 = vadd.f32 %v773_v36, %v475_v1  ;;  %v535_v12 = vadd.f32 %v773_v36, %v491_v2  ;;  %v477_v13 = vmul.f32 %v769_v32, %v296_v9  ;;  %v493_v14 = vmul.f32 %v769_v32, %v336_v10 }
 0x102   :  { %550 = vst [vmem:[%s939_s4 + $0x20] sm:$0xff] %v518_v5  ;;  %566 = vst [vmem:[%s939_s4 + $0xa0] sm:$0xff] %v534_v6  ;;  %v520_v15 = vadd.f32 %v771_v33, %v476_v7  ;;  %v536_v16 = vadd.f32 %v771_v33, %v492_v8 }
 0x103   :  { %551 = vst [vmem:[%s939_s4 + $0x28] sm:$0xff] %v519_v11  ;;  %567 = vst [vmem:[%s939_s4 + $0xa8] sm:$0xff] %v535_v12  ;;  %v521_v17 = vadd.f32 %v773_v36, %v477_v13  ;;  %v537_v18 = vadd.f32 %v773_v36, %v493_v14 }
 0x104   :  { %552 = vst [vmem:[%s939_s4 + $0x30] sm:$0xff] %v520_v15  ;;  %568 = vst [vmem:[%s939_s4 + $0xb0] sm:$0xff] %v536_v16 }
 0x105   :  { %553 = vst [vmem:[%s939_s4 + $0x38] sm:$0xff] %v521_v17  ;;  %569 = vst [vmem:[%s939_s4 + $0xb8] sm:$0xff] %v537_v18  ;;  %v300_v19 = vpop.f32.mrb[8].mxu0  ;;  %v340_v20 = vpop.f32.mrb[8].mxu1 }
 0x106   :  { %v478_v21 = vmul.f32 %v767_v31, %v300_v19  ;;  %v494_v22 = vmul.f32 %v767_v31, %v340_v20  ;;  %v302_v23 = vpop.f32.mrb[9].mxu0  ;;  %v342_v24 = vpop.f32.mrb[9].mxu1 }
 0x107   :  { %v479_v25 = vmul.f32 %v769_v32, %v302_v23  ;;  %v495_v26 = vmul.f32 %v769_v32, %v342_v24  ;;  %v304_v27 = vpop.f32.mrb[10].mxu0  ;;  %v344_v28 = vpop.f32.mrb[10].mxu1 }
 0x108   :  { %v522_v29 = vadd.f32 %v771_v33, %v478_v21  ;;  %v538_v30 = vadd.f32 %v771_v33, %v494_v22  ;;  %v480_v34 = vmul.f32 %v767_v31, %v304_v27  ;;  %v496_v35 = vmul.f32 %v767_v31, %v344_v28  ;;  %v306_v37 = vpop.f32.mrb[11].mxu0  ;;  %v346_v38 = vpop.f32.mrb[11].mxu1 }
 0x109   :  { %v523_v39 = vadd.f32 %v773_v36, %v479_v25  ;;  %v539_v40 = vadd.f32 %v773_v36, %v495_v26  ;;  %v481_v41 = vmul.f32 %v769_v32, %v306_v37  ;;  %v497_v42 = vmul.f32 %v769_v32, %v346_v38 }
 0x10a   :  { %554 = vst [vmem:[%s939_s4 + $0x40] sm:$0xff] %v522_v29  ;;  %570 = vst [vmem:[%s939_s4 + $0xc0] sm:$0xff] %v538_v30  ;;  %v524_v43 = vadd.f32 %v771_v33, %v480_v34  ;;  %v540_v44 = vadd.f32 %v771_v33, %v496_v35 }
 0x10b   :  { %555 = vst [vmem:[%s939_s4 + $0x48] sm:$0xff] %v523_v39  ;;  %571 = vst [vmem:[%s939_s4 + $0xc8] sm:$0xff] %v539_v40  ;;  %v525_v45 = vadd.f32 %v773_v36, %v481_v41  ;;  %v541_v46 = vadd.f32 %v773_v36, %v497_v42 }
 0x10c   :  { %556 = vst [vmem:[%s939_s4 + $0x50] sm:$0xff] %v524_v43  ;;  %572 = vst [vmem:[%s939_s4 + $0xd0] sm:$0xff] %v540_v44 }
 0x10d   :  { %557 = vst [vmem:[%s939_s4 + $0x58] sm:$0xff] %v525_v45  ;;  %573 = vst [vmem:[%s939_s4 + $0xd8] sm:$0xff] %v541_v46  ;;  %v310_v47 = vpop.f32.mrb[12].mxu0  ;;  %v350_v48 = vpop.f32.mrb[12].mxu1 }
 0x10e   :  { %v482_v49 = vmul.f32 %v767_v31, %v310_v47  ;;  %v498_v50 = vmul.f32 %v767_v31, %v350_v48  ;;  %v312_v51 = vpop.f32.mrb[13].mxu0  ;;  %v352_v52 = vpop.f32.mrb[13].mxu1 }
 0x10f   :  { %v483_v53 = vmul.f32 %v769_v32, %v312_v51  ;;  %v499_v54 = vmul.f32 %v769_v32, %v352_v52  ;;  %v314_v55 = vpop.f32.mrb[14].mxu0  ;;  %v354_v56 = vpop.f32.mrb[14].mxu1 }
 0x110   :  { %v526_v57 = vadd.f32 %v771_v33, %v482_v49  ;;  %v542_v58 = vadd.f32 %v771_v33, %v498_v50  ;;  %v484_v59 = vmul.f32 %v767_v31, %v314_v55  ;;  %v500_v60 = vmul.f32 %v767_v31, %v354_v56  ;;  %v316_v61 = vpop.f32.mrb[15].mxu0  ;;  %v356_v62 = vpop.f32.mrb[15].mxu1 }
 0x111   :  { %v527_v63 = vadd.f32 %v773_v36, %v483_v53  ;;  %v543_v0 = vadd.f32 %v773_v36, %v499_v54  ;;  %v485_v1 = vmul.f32 %v769_v32, %v316_v61  ;;  %v501_v2 = vmul.f32 %v769_v32, %v356_v62 }
 0x112   :  { %558 = vst [vmem:[%s939_s4 + $0x60] sm:$0xff] %v526_v57  ;;  %574 = vst [vmem:[%s939_s4 + $0xe0] sm:$0xff] %v542_v58  ;;  %v528_v31 = vadd.f32 %v771_v33, %v484_v59  ;;  %v544_v3 = vadd.f32 %v771_v33, %v500_v60 }
 0x113   :  { %559 = vst [vmem:[%s939_s4 + $0x68] sm:$0xff] %v527_v63  ;;  %575 = vst [vmem:[%s939_s4 + $0xe8] sm:$0xff] %v543_v0  ;;  %v529_v32 = vadd.f32 %v773_v36, %v485_v1  ;;  %v545_v4 = vadd.f32 %v773_v36, %v501_v2 }
 0x114   :  { %560 = vst [vmem:[%s939_s4 + $0x70] sm:$0xff] %v528_v31  ;;  %576 = vst [vmem:[%s939_s4 + $0xf0] sm:$0xff] %v544_v3 }
 0x115   :  { %561 = vst [vmem:[%s939_s4 + $0x78] sm:$0xff] %v529_v32  ;;  %577 = vst [vmem:[%s939_s4 + $0xf8] sm:$0xff] %v545_v4 }

// kernel: resnet_forward.33
= control target key start
LH: loop header
LB: loop body
LE: loop exit
PB: predicated region body
PF: predicated region fallthrough
CT: control target
= control target key end

     0   :  { %v754_v1 = vmov 0   ;;  %v463_v25 = vlaneseq  ;;  %s1135_s1 = inlined_call_operand.vmem [shape: bf16[128,256], index: 1, kind: input, shape index: {}]   ;;  %s1136_s0 = inlined_call_operand.vmem [shape: bf16[128,128], index: 0, kind: input, shape index: {}]   ;;  %s1137_s2 = inlined_call_operand.vmem [shape: f32[1,256], index: 2, kind: input, shape index: {}]   ;;  %s1138_s3 = inlined_call_operand.vmem [shape: f32[1,256], index: 3, kind: input, shape index: {}]   ;;  %s1139_s4 = inlined_call_operand.vmem [shape: f32[128,256], index: 4, kind: input, shape index: {}]   ;;  %s1140_s5 = inlined_call_operand.vmem [shape: f32[128,256], index: 5, kind: output, shape index: {}]  }
   0x1   :  { %v722_v0 = vld [vmem:[%s1135_s1 + $0x4] ss:$8 sps:$4 sm:$0xff]   ;;  %281 = vmatprep.mubr.bf16.mxu0 %v754_v1  ;;  %321 = vmatprep.mubr.bf16.mxu1 %v754_v1  ;;  %v724_v2 = vld [vmem:[%s1135_s1] ss:$8 sps:$4 sm:$0xff]   ;;  %v725_v3 = vld [vmem:[%s1135_s1 + $0x14] ss:$8 sps:$4 sm:$0xff]  }
   0x2   :  { %249 = vmatprep.subr.bf16.mxu0 %v722_v0  ;;  %705 = vmatprep.subr.bf16.mxu1 %v722_v0  ;;  %v727_v4 = vld [vmem:[%s1135_s1 + $0x10] ss:$8 sps:$4 sm:$0xff]   ;;  %v728_v5 = vld [vmem:[%s1135_s1 + $0x24] ss:$8 sps:$4 sm:$0xff]   ;;  %v730_v6 = vld [vmem:[%s1135_s1 + $0x20] ss:$8 sps:$4 sm:$0xff]  }
   0x3   :  { %250 = vmatpush1.bf16.msra.mxu0 %v724_v2  ;;  %713 = vmatpush1.bf16.msra.mxu1 %v724_v2  ;;  %v731_v7 = vld [vmem:[%s1135_s1 + $0x34] ss:$8 sps:$4 sm:$0xff]   ;;  %v733_v8 = vld [vmem:[%s1135_s1 + $0x30] ss:$8 sps:$4 sm:$0xff]   ;;  %v734_v9 = vld [vmem:[%s1135_s1 + $0x44] ss:$8 sps:$4 sm:$0xff]  }
   0x4   :  { %251 = vmatprep.subr.bf16.mxu0 %v725_v3  ;;  %706 = vmatprep.subr.bf16.mxu1 %v725_v3  ;;  %v736_v10 = vld [vmem:[%s1135_s1 + $0x40] ss:$8 sps:$4 sm:$0xff]   ;;  %v737_v11 = vld [vmem:[%s1135_s1 + $0x54] ss:$8 sps:$4 sm:$0xff]   ;;  %v739_v12 = vld [vmem:[%s1135_s1 + $0x50] ss:$8 sps:$4 sm:$0xff]  }
   0x5   :  { %v740_v13 = vld [vmem:[%s1135_s1 + $0x64] ss:$8 sps:$4 sm:$0xff]   ;;  %v742_v14 = vld [vmem:[%s1135_s1 + $0x60] ss:$8 sps:$4 sm:$0xff]   ;;  %v743_v15 = vld [vmem:[%s1135_s1 + $0x74] ss:$8 sps:$4 sm:$0xff]  }
   0x6   :  { %v745_v16 = vld [vmem:[%s1135_s1 + $0x70] ss:$8 sps:$4 sm:$0xff]   ;;  %v746_v17 = vld [vmem:[%s1136_s0] sm:$0xff]   ;;  %v748_v19 = vld [vmem:[%s1136_s0 + $0x8] sm:$0xff]   ;;  %v464_v26 = vshrl.u32 %v463_v25, 7 }
   0x7   :  { %252 = vmatpush1.bf16.msra.mxu0 %v727_v4  ;;  %714 = vmatpush1.bf16.msra.mxu1 %v727_v4  ;;  %v747_v18 = vld [vmem:[%s1136_s0 + $0x20] sm:$0xff]   ;;  %v749_v20 = vld [vmem:[%s1136_s0 + $0x28] sm:$0xff]   ;;  %v750_v21 = vld [vmem:[%s1136_s0 + $0x10] sm:$0xff]  }
   0x8   :  { %253 = vmatprep.subr.bf16.mxu0 %v728_v5  ;;  %707 = vmatprep.subr.bf16.mxu1 %v728_v5  ;;  %v751_v22 = vld [vmem:[%s1136_s0 + $0x30] sm:$0xff]   ;;  %v752_v23 = vld [vmem:[%s1136_s0 + $0x18] sm:$0xff]   ;;  %v465_v27 = vsub.s32 0, %v464_v26  ;;  %v461_v28 = vld [vmem:[%s1137_s2] sm:$0x3]  ;;  %v469_v29 = vsub.s32 1, %v464_v26 }
   0x9   :  { %v753_v24 = vld [vmem:[%s1136_s0 + $0x38] sm:$0xff]   ;;  %v505_v30 = vld [vmem:[%s1138_s3] sm:$0x3]  ;;  %v550_v49 = vld [vmem:[%s1139_s4 + $0x8] sm:$0xff] }
   0xa   :  { %v871_v31 = vrot.slane %v461_v28, %v465_v27  ;;  %v873_v32 = vrot.slane %v461_v28, %v469_v29  ;;  %v875_v33 = vrot.slane %v505_v30, %v465_v27  ;;  %v877_v36 = vrot.slane %v505_v30, %v469_v29  ;;  %v549_v41 = vld [vmem:[%s1139_s4] sm:$0xff]  ;;  %v566_v50 = vld [vmem:[%s1139_s4 + $0x88] sm:$0xff]  ;;  %v551_v57 = vld [vmem:[%s1139_s4 + $0x10] sm:$0xff] }
   0xb   :  { %254 = vmatpush1.bf16.msra.mxu0 %v730_v6  ;;  %715 = vmatpush1.bf16.msra.mxu1 %v730_v6  ;;  %v565_v42 = vld [vmem:[%s1139_s4 + $0x80] sm:$0xff]  ;;  %v567_v58 = vld [vmem:[%s1139_s4 + $0x90] sm:$0xff]  ;;  %v568_v2 = vld [vmem:[%s1139_s4 + $0x98] sm:$0xff] }
   0xc   :  { %255 = vmatprep.subr.bf16.mxu0 %v731_v7  ;;  %708 = vmatprep.subr.bf16.mxu1 %v731_v7  ;;  %v553_v25 = vld [vmem:[%s1139_s4 + $0x20] sm:$0xff] }
   0xd   :  { %v569_v26 = vld [vmem:[%s1139_s4 + $0xa0] sm:$0xff] }
   0xf   :  { %256 = vmatpush1.bf16.msra.mxu0 %v733_v8  ;;  %716 = vmatpush1.bf16.msra.mxu1 %v733_v8 }
  0x10   :  { %257 = vmatprep.subr.bf16.mxu0 %v734_v9  ;;  %709 = vmatprep.subr.bf16.mxu1 %v734_v9 }
  0x13   :  { %258 = vmatpush1.bf16.msra.mxu0 %v736_v10  ;;  %717 = vmatpush1.bf16.msra.mxu1 %v736_v10 }
  0x14   :  { %259 = vmatprep.subr.bf16.mxu0 %v737_v11  ;;  %710 = vmatprep.subr.bf16.mxu1 %v737_v11 }
  0x17   :  { %260 = vmatpush1.bf16.msra.mxu0 %v739_v12  ;;  %718 = vmatpush1.bf16.msra.mxu1 %v739_v12 }
  0x18   :  { %261 = vmatprep.subr.bf16.mxu0 %v740_v13  ;;  %711 = vmatprep.subr.bf16.mxu1 %v740_v13 }
  0x1b   :  { %262 = vmatpush1.bf16.msra.mxu0 %v742_v14  ;;  %719 = vmatpush1.bf16.msra.mxu1 %v742_v14 }
  0x1c   :  { %263 = vmatprep.subr.bf16.mxu0 %v743_v15  ;;  %712 = vmatprep.subr.bf16.mxu1 %v743_v15 }
  0x1f   :  { %264 = vmatpush1.bf16.msra.mxu0 %v745_v16  ;;  %720 = vmatpush1.bf16.msra.mxu1 %v745_v16 }
  0x22   :  { %282 = vmatmul.mubr.bf16.vlgmr.msra.gmra.mrb[0].mxu0 %v746_v17  ;;  %322 = vmatmul.mubr.bf16.vlgmr.msra.gmra.mrb[0].mxu1 %v747_v18 }
  0x23   :  { %291 = vmatprep.mubr.bf16.mxu0 %v754_v1  ;;  %331 = vmatprep.mubr.bf16.mxu1 %v754_v1 }
  0x2a   :  { %292 = vmatmul.mubr.bf16.gmra.mrb[4].mxu0 %v748_v19  ;;  %332 = vmatmul.mubr.bf16.gmra.mrb[4].mxu1 %v749_v20 }
  0x2b   :  { %301 = vmatprep.mubr.bf16.mxu0 %v754_v1  ;;  %341 = vmatprep.mubr.bf16.mxu1 %v754_v1 }
  0x32   :  { %302 = vmatmul.mubr.bf16.gmra.mrb[8].mxu0 %v750_v21  ;;  %342 = vmatmul.mubr.bf16.gmra.mrb[8].mxu1 %v751_v22 }
  0x33   :  { %311 = vmatprep.mubr.bf16.mxu0 %v754_v1  ;;  %351 = vmatprep.mubr.bf16.mxu1 %v754_v1  ;;  %v552_v1 = vld [vmem:[%s1139_s4 + $0x18] sm:$0xff] }
  0x3a   :  { %312 = vmatmul.mubr.bf16.gmra.mrb[12].mxu0 %v752_v23  ;;  %352 = vmatmul.mubr.bf16.gmra.mrb[12].mxu1 %v753_v24 }
  0xf5   :  { %v283_v34 = vpop.f32.mrb[0].mxu0  ;;  %v323_v35 = vpop.f32.mrb[0].mxu1 }
  0xf6   :  { %v473_v37 = vmul.f32 %v871_v31, %v283_v34  ;;  %v489_v38 = vmul.f32 %v871_v31, %v323_v35  ;;  %v285_v39 = vpop.f32.mrb[1].mxu0  ;;  %v325_v40 = vpop.f32.mrb[1].mxu1 }
  0xf7   :  { %v474_v43 = vmul.f32 %v873_v32, %v285_v39  ;;  %v490_v44 = vmul.f32 %v873_v32, %v325_v40  ;;  %v287_v45 = vpop.f32.mrb[2].mxu0  ;;  %v327_v46 = vpop.f32.mrb[2].mxu1 }
  0xf8   :  { %v517_v47 = vadd.f32 %v875_v33, %v473_v37  ;;  %v533_v48 = vadd.f32 %v875_v33, %v489_v38  ;;  %v475_v51 = vmul.f32 %v871_v31, %v287_v45  ;;  %v491_v52 = vmul.f32 %v871_v31, %v327_v46  ;;  %v289_v53 = vpop.f32.mrb[3].mxu0  ;;  %v329_v54 = vpop.f32.mrb[3].mxu1  ;;  %v554_v37 = vld [vmem:[%s1139_s4 + $0x28] sm:$0xff]  ;;  %v555_v45 = vld [vmem:[%s1139_s4 + $0x30] sm:$0xff] }
  0xf9   :  { %v518_v55 = vadd.f32 %v877_v36, %v474_v43  ;;  %v534_v56 = vadd.f32 %v877_v36, %v490_v44  ;;  %v476_v59 = vmul.f32 %v873_v32, %v289_v53  ;;  %v492_v60 = vmul.f32 %v873_v32, %v329_v54  ;;  %v570_v38 = vld [vmem:[%s1139_s4 + $0xa8] sm:$0xff]  ;;  %v571_v46 = vld [vmem:[%s1139_s4 + $0xb0] sm:$0xff]  ;;  %v556_v53 = vld [vmem:[%s1139_s4 + $0x38] sm:$0xff] }
  0xfa   :  { %v581_v61 = vadd.f32 %v549_v41, %v517_v47  ;;  %v597_v62 = vadd.f32 %v565_v42, %v533_v48  ;;  %v519_v63 = vadd.f32 %v875_v33, %v475_v51  ;;  %v535_v0 = vadd.f32 %v875_v33, %v491_v52  ;;  %v572_v54 = vld [vmem:[%s1139_s4 + $0xb8] sm:$0xff] }
  0xfb   :  { %v582_v3 = vadd.f32 %v550_v49, %v518_v55  ;;  %v598_v4 = vadd.f32 %v566_v50, %v534_v56  ;;  %v520_v5 = vadd.f32 %v877_v36, %v476_v59  ;;  %v536_v6 = vadd.f32 %v877_v36, %v492_v60 }
  0xfc   :  { %v613_v7 = vmax.f32 %v581_v61, 0.0  ;;  %v629_v8 = vmax.f32 %v597_v62, 0.0  ;;  %v583_v9 = vadd.f32 %v551_v57, %v519_v63  ;;  %v599_v10 = vadd.f32 %v567_v58, %v535_v0 }
  0xfd   :  { %v614_v11 = vmax.f32 %v582_v3, 0.0  ;;  %v630_v12 = vmax.f32 %v598_v4, 0.0  ;;  %v584_v13 = vadd.f32 %v552_v1, %v520_v5  ;;  %v600_v14 = vadd.f32 %v568_v2, %v536_v6  ;;  %v293_v15 = vpop.f32.mrb[4].mxu0  ;;  %v333_v16 = vpop.f32.mrb[4].mxu1 }
  0xfe   :  { %645 = vst [vmem:[%s1140_s5] sm:$0xff] %v613_v7  ;;  %661 = vst [vmem:[%s1140_s5 + $0x80] sm:$0xff] %v629_v8  ;;  %v615_v17 = vmax.f32 %v583_v9, 0.0  ;;  %v631_v18 = vmax.f32 %v599_v10, 0.0  ;;  %v477_v19 = vmul.f32 %v871_v31, %v293_v15  ;;  %v493_v20 = vmul.f32 %v871_v31, %v333_v16  ;;  %v295_v21 = vpop.f32.mrb[5].mxu0  ;;  %v335_v22 = vpop.f32.mrb[5].mxu1 }
  0xff   :  { %646 = vst [vmem:[%s1140_s5 + $0x8] sm:$0xff] %v614_v11  ;;  %662 = vst [vmem:[%s1140_s5 + $0x88] sm:$0xff] %v630_v12  ;;  %v616_v23 = vmax.f32 %v584_v13, 0.0  ;;  %v632_v24 = vmax.f32 %v600_v14, 0.0  ;;  %v478_v27 = vmul.f32 %v873_v32, %v295_v21  ;;  %v494_v28 = vmul.f32 %v873_v32, %v335_v22  ;;  %v297_v29 = vpop.f32.mrb[6].mxu0  ;;  %v337_v30 = vpop.f32.mrb[6].mxu1 }
 0x100   :  { %647 = vst [vmem:[%s1140_s5 + $0x10] sm:$0xff] %v615_v17  ;;  %663 = vst [vmem:[%s1140_s5 + $0x90] sm:$0xff] %v631_v18  ;;  %v521_v34 = vadd.f32 %v875_v33, %v477_v19  ;;  %v537_v35 = vadd.f32 %v875_v33, %v493_v20  ;;  %v479_v39 = vmul.f32 %v871_v31, %v297_v29  ;;  %v299_v41 = vpop.f32.mrb[7].mxu0  ;;  %v339_v42 = vpop.f32.mrb[7].mxu1  ;;  %v557_v13 = vld [vmem:[%s1139_s4 + $0x40] sm:$0xff]  ;;  %v558_v21 = vld [vmem:[%s1139_s4 + $0x48] sm:$0xff] }
 0x101   :  { %v495_v40 = vmul.f32 %v871_v31, %v337_v30  ;;  %648 = vst [vmem:[%s1140_s5 + $0x18] sm:$0xff] %v616_v23  ;;  %664 = vst [vmem:[%s1140_s5 + $0x98] sm:$0xff] %v632_v24  ;;  %v522_v43 = vadd.f32 %v877_v36, %v478_v27  ;;  %v538_v44 = vadd.f32 %v877_v36, %v494_v28  ;;  %v573_v14 = vld [vmem:[%s1139_s4 + $0xc0] sm:$0xff]  ;;  %v574_v22 = vld [vmem:[%s1139_s4 + $0xc8] sm:$0xff] }
 0x102   :  { %v480_v47 = vmul.f32 %v873_v32, %v299_v41  ;;  %v496_v48 = vmul.f32 %v873_v32, %v339_v42  ;;  %v585_v49 = vadd.f32 %v553_v25, %v521_v34  ;;  %v601_v50 = vadd.f32 %v569_v26, %v537_v35  ;;  %v559_v29 = vld [vmem:[%s1139_s4 + $0x50] sm:$0xff]  ;;  %v560_v41 = vld [vmem:[%s1139_s4 + $0x58] sm:$0xff] }
 0x103   :  { %v523_v51 = vadd.f32 %v875_v33, %v479_v39  ;;  %v539_v52 = vadd.f32 %v875_v33, %v495_v40  ;;  %v586_v55 = vadd.f32 %v554_v37, %v522_v43  ;;  %v602_v56 = vadd.f32 %v570_v38, %v538_v44  ;;  %v575_v30 = vld [vmem:[%s1139_s4 + $0xd0] sm:$0xff]  ;;  %v576_v42 = vld [vmem:[%s1139_s4 + $0xd8] sm:$0xff] }
 0x104   :  { %v524_v57 = vadd.f32 %v877_v36, %v480_v47  ;;  %v540_v58 = vadd.f32 %v877_v36, %v496_v48  ;;  %v617_v59 = vmax.f32 %v585_v49, 0.0  ;;  %v633_v60 = vmax.f32 %v601_v50, 0.0 }
 0x105   :  { %v587_v61 = vadd.f32 %v555_v45, %v523_v51  ;;  %v603_v62 = vadd.f32 %v571_v46, %v539_v52  ;;  %v618_v63 = vmax.f32 %v586_v55, 0.0  ;;  %v634_v0 = vmax.f32 %v602_v56, 0.0  ;;  %v303_v3 = vpop.f32.mrb[8].mxu0  ;;  %v343_v4 = vpop.f32.mrb[8].mxu1 }
 0x106   :  { %v588_v1 = vadd.f32 %v556_v53, %v524_v57  ;;  %v604_v2 = vadd.f32 %v572_v54, %v540_v58  ;;  %649 = vst [vmem:[%s1140_s5 + $0x20] sm:$0xff] %v617_v59  ;;  %665 = vst [vmem:[%s1140_s5 + $0xa0] sm:$0xff] %v633_v60  ;;  %v481_v7 = vmul.f32 %v871_v31, %v303_v3  ;;  %v305_v9 = vpop.f32.mrb[9].mxu0  ;;  %v345_v10 = vpop.f32.mrb[9].mxu1 }
 0x107   :  { %v619_v5 = vmax.f32 %v587_v61, 0.0  ;;  %v635_v6 = vmax.f32 %v603_v62, 0.0  ;;  %v497_v8 = vmul.f32 %v871_v31, %v343_v4  ;;  %650 = vst [vmem:[%s1140_s5 + $0x28] sm:$0xff] %v618_v63  ;;  %666 = vst [vmem:[%s1140_s5 + $0xa8] sm:$0xff] %v634_v0  ;;  %v482_v15 = vmul.f32 %v873_v32, %v305_v9  ;;  %v307_v17 = vpop.f32.mrb[10].mxu0  ;;  %v347_v18 = vpop.f32.mrb[10].mxu1 }
 0x108   :  { %v620_v11 = vmax.f32 %v588_v1, 0.0  ;;  %v636_v12 = vmax.f32 %v604_v2, 0.0  ;;  %v498_v16 = vmul.f32 %v873_v32, %v345_v10  ;;  %v525_v19 = vadd.f32 %v875_v33, %v481_v7  ;;  %v309_v25 = vpop.f32.mrb[11].mxu0  ;;  %v349_v26 = vpop.f32.mrb[11].mxu1  ;;  %v561_v1 = vld [vmem:[%s1139_s4 + $0x60] sm:$0xff]  ;;  %v562_v9 = vld [vmem:[%s1139_s4 + $0x68] sm:$0xff] }
 0x109   :  { %651 = vst [vmem:[%s1140_s5 + $0x30] sm:$0xff] %v619_v5  ;;  %667 = vst [vmem:[%s1140_s5 + $0xb0] sm:$0xff] %v635_v6  ;;  %v541_v20 = vadd.f32 %v875_v33, %v497_v8  ;;  %v483_v23 = vmul.f32 %v871_v31, %v307_v17  ;;  %v499_v24 = vmul.f32 %v871_v31, %v347_v18  ;;  %v577_v2 = vld [vmem:[%s1139_s4 + $0xe0] sm:$0xff]  ;;  %v578_v10 = vld [vmem:[%s1139_s4 + $0xe8] sm:$0xff] }
 0x10a   :  { %652 = vst [vmem:[%s1140_s5 + $0x38] sm:$0xff] %v620_v11  ;;  %668 = vst [vmem:[%s1140_s5 + $0xb8] sm:$0xff] %v636_v12  ;;  %v526_v27 = vadd.f32 %v877_v36, %v482_v15  ;;  %v542_v28 = vadd.f32 %v877_v36, %v498_v16  ;;  %v484_v34 = vmul.f32 %v873_v32, %v309_v25  ;;  %v563_v17 = vld [vmem:[%s1139_s4 + $0x70] sm:$0xff]  ;;  %v580_v25 = vld [vmem:[%s1139_s4 + $0xf8] sm:$0xff] }
 0x10b   :  { %v500_v35 = vmul.f32 %v873_v32, %v349_v26  ;;  %v589_v37 = vadd.f32 %v557_v13, %v525_v19  ;;  %v605_v38 = vadd.f32 %v573_v14, %v541_v20  ;;  %v527_v39 = vadd.f32 %v875_v33, %v483_v23 }
 0x10c   :  { %v543_v40 = vadd.f32 %v875_v33, %v499_v24  ;;  %v590_v43 = vadd.f32 %v558_v21, %v526_v27  ;;  %v606_v44 = vadd.f32 %v574_v22, %v542_v28  ;;  %v528_v45 = vadd.f32 %v877_v36, %v484_v34  ;;  %v564_v24 = vld [vmem:[%s1139_s4 + $0x78] sm:$0xff] }
 0x10d   :  { %v544_v46 = vadd.f32 %v877_v36, %v500_v35  ;;  %v621_v47 = vmax.f32 %v589_v37, 0.0  ;;  %v637_v48 = vmax.f32 %v605_v38, 0.0  ;;  %v591_v49 = vadd.f32 %v559_v29, %v527_v39  ;;  %v313_v55 = vpop.f32.mrb[12].mxu0  ;;  %v353_v56 = vpop.f32.mrb[12].mxu1 }
 0x10e   :  { %v607_v50 = vadd.f32 %v575_v30, %v543_v40  ;;  %v622_v51 = vmax.f32 %v590_v43, 0.0  ;;  %v638_v52 = vmax.f32 %v606_v44, 0.0  ;;  %v592_v53 = vadd.f32 %v560_v41, %v528_v45  ;;  %v315_v61 = vpop.f32.mrb[13].mxu0  ;;  %v355_v62 = vpop.f32.mrb[13].mxu1 }
 0x10f   :  { %v608_v54 = vadd.f32 %v576_v42, %v544_v46  ;;  %653 = vst [vmem:[%s1140_s5 + $0x40] sm:$0xff] %v621_v47  ;;  %669 = vst [vmem:[%s1140_s5 + $0xc0] sm:$0xff] %v637_v48  ;;  %v623_v57 = vmax.f32 %v591_v49, 0.0  ;;  %v485_v59 = vmul.f32 %v871_v31, %v313_v55  ;;  %v501_v60 = vmul.f32 %v871_v31, %v353_v56  ;;  %v317_v5 = vpop.f32.mrb[14].mxu0  ;;  %v357_v6 = vpop.f32.mrb[14].mxu1 }
 0x110   :  { %v639_v58 = vmax.f32 %v607_v50, 0.0  ;;  %654 = vst [vmem:[%s1140_s5 + $0x48] sm:$0xff] %v622_v51  ;;  %670 = vst [vmem:[%s1140_s5 + $0xc8] sm:$0xff] %v638_v52  ;;  %v624_v63 = vmax.f32 %v592_v53, 0.0  ;;  %v486_v3 = vmul.f32 %v873_v32, %v315_v61  ;;  %v502_v4 = vmul.f32 %v873_v32, %v355_v62  ;;  %v319_v13 = vpop.f32.mrb[15].mxu0  ;;  %v359_v14 = vpop.f32.mrb[15].mxu1 }
 0x111   :  { %v640_v0 = vmax.f32 %v608_v54, 0.0  ;;  %655 = vst [vmem:[%s1140_s5 + $0x50] sm:$0xff] %v623_v57  ;;  %v529_v7 = vadd.f32 %v875_v33, %v485_v59  ;;  %v545_v8 = vadd.f32 %v875_v33, %v501_v60  ;;  %v487_v11 = vmul.f32 %v871_v31, %v317_v5 }
 0x112   :  { %671 = vst [vmem:[%s1140_s5 + $0xd0] sm:$0xff] %v639_v58  ;;  %v503_v12 = vmul.f32 %v871_v31, %v357_v6  ;;  %656 = vst [vmem:[%s1140_s5 + $0x58] sm:$0xff] %v624_v63  ;;  %v530_v15 = vadd.f32 %v877_v36, %v486_v3  ;;  %v546_v16 = vadd.f32 %v877_v36, %v502_v4  ;;  %v579_v31 = vld [vmem:[%s1139_s4 + $0xf0] sm:$0xff] }
 0x113   :  { %672 = vst [vmem:[%s1140_s5 + $0xd8] sm:$0xff] %v640_v0  ;;  %v488_v18 = vmul.f32 %v873_v32, %v319_v13  ;;  %v504_v19 = vmul.f32 %v873_v32, %v359_v14  ;;  %v593_v20 = vadd.f32 %v561_v1, %v529_v7  ;;  %v609_v21 = vadd.f32 %v577_v2, %v545_v8 }
 0x114   :  { %v531_v22 = vadd.f32 %v875_v33, %v487_v11  ;;  %v547_v23 = vadd.f32 %v875_v33, %v503_v12  ;;  %v594_v26 = vadd.f32 %v562_v9, %v530_v15  ;;  %v610_v27 = vadd.f32 %v578_v10, %v546_v16 }
 0x115   :  { %v532_v28 = vadd.f32 %v877_v36, %v488_v18  ;;  %v548_v32 = vadd.f32 %v877_v36, %v504_v19  ;;  %v625_v29 = vmax.f32 %v593_v20, 0.0  ;;  %v641_v30 = vmax.f32 %v609_v21, 0.0 }
 0x116   :  { %v595_v34 = vadd.f32 %v563_v17, %v531_v22  ;;  %v611_v35 = vadd.f32 %v579_v31, %v547_v23  ;;  %v626_v37 = vmax.f32 %v594_v26, 0.0  ;;  %v642_v33 = vmax.f32 %v610_v27, 0.0 }
 0x117   :  { %v596_v38 = vadd.f32 %v564_v24, %v532_v28  ;;  %v612_v39 = vadd.f32 %v580_v25, %v548_v32  ;;  %657 = vst [vmem:[%s1140_s5 + $0x60] sm:$0xff] %v625_v29  ;;  %673 = vst [vmem:[%s1140_s5 + $0xe0] sm:$0xff] %v641_v30 }
 0x118   :  { %v627_v40 = vmax.f32 %v595_v34, 0.0  ;;  %v643_v41 = vmax.f32 %v611_v35, 0.0  ;;  %658 = vst [vmem:[%s1140_s5 + $0x68] sm:$0xff] %v626_v37  ;;  %674 = vst [vmem:[%s1140_s5 + $0xe8] sm:$0xff] %v642_v33 }
 0x119   :  { %v628_v36 = vmax.f32 %v596_v38, 0.0  ;;  %v644_v42 = vmax.f32 %v612_v39, 0.0 }
 0x11a   :  { %659 = vst [vmem:[%s1140_s5 + $0x70] sm:$0xff] %v627_v40  ;;  %675 = vst [vmem:[%s1140_s5 + $0xf0] sm:$0xff] %v643_v41 }
 0x11b   :  { %660 = vst [vmem:[%s1140_s5 + $0x78] sm:$0xff] %v628_v36  ;;  %676 = vst [vmem:[%s1140_s5 + $0xf8] sm:$0xff] %v644_v42 }

</bundles_post_ra>
